<compile_context>
chip_gen: v6e
topology: v6e:2x2x1
jax: 0.10.0
libtpu: 0.0.40
codegen_flags: <defaults>
</compile_context>

<pallas_src>
import functools
import numpy as np
import jax
import jax.numpy as jnp
from jax import lax
from jax.experimental import pallas as pl
from jax.experimental.pallas import tpu as pltpu


def _round_up(x, m):
    return ((x + m - 1) // m) * m


# ----------------------------------------------------------------------------
# Phase-fused (sub-pixel) + block-Toeplitz-over-W weights.
# conv(upsample2x(x)) == pixel_shuffle(phase_conv(x)); for output j = s*m + q,
# tap k reads original offset r = (q + k - p) // s.
# ----------------------------------------------------------------------------
def _toeplitz_phase_weights(weight, scale, W):
    """weight: (K, K, K, Cin, Cout) with tap order (kd, kh, kw).
    Returns (T, pad_lo, pad_hi, K_eff, Wp) with
      T: (K_eff, K_eff, Wp*Cin, W * s^3 * Cout)  per-(rd, rh) Toeplitz RHS."""
    K = weight.shape[0]
    Cin, Cout = weight.shape[3], weight.shape[4]
    p = K // 2
    offs = np.array([[(q + k - p) // scale for k in range(K)]
                     for q in range(scale)], dtype=np.int64)
    r_min, r_max = int(offs.min()), int(offs.max())
    K_eff = r_max - r_min + 1
    pad_lo, pad_hi = -r_min, r_max
    Wp = W + pad_lo + pad_hi

    # A[q, k, r] = 1 iff tap k of output phase q reads original offset r.
    A = np.zeros((scale, K, K_eff), dtype=np.float32)
    for q in range(scale):
        for k in range(K):
            A[q, k, offs[q, k] - r_min] = 1.0
    A = jnp.asarray(A)

    # w_eff[rd, rh, rw, cin, qd, qh, qw, cout]
    w_eff = jnp.einsum('aix,bjy,ckz,ijkmn->xyzmabcn', A, A, A,
                       weight.astype(jnp.float32))
    PC = (scale ** 3) * Cout
    w_eff = w_eff.reshape(K_eff, K_eff, K_eff, Cin, PC)

    # Block-Toeplitz over W: S[rw, w', w] = 1 iff w' == w + rw (padded coords).
    S = np.zeros((K_eff, Wp, W), dtype=np.float32)
    for rw in range(K_eff):
        for w in range(W):
            S[rw, w + rw, w] = 1.0
    S = jnp.asarray(S)
    # T[rd, rh, w'*Cin + cin, w*PC + pc]
    T = jnp.einsum('rvw,xyrmp->xyvmwp', S, w_eff)
    T = T.reshape(K_eff, K_eff, Wp * Cin, W * PC)
    return T, pad_lo, pad_hi, K_eff, Wp


# ----------------------------------------------------------------------------
# Fused (upsample +) Conv3d + bias + BN-partial-stats kernel.
# Grid = (N,): each step produces ALL phases for one batch element (whole D).
# ----------------------------------------------------------------------------
def _conv_phase_kernel(x_ref, w_ref, b_ref, y_ref, stat_ref, *,
                       K_eff, D, H, CKp, L):
    xs = x_ref[0]                                       # (Dp, Hp, CKp)
    acc = jnp.zeros((D * H, L), jnp.float32)
    # K_eff^2 accumulated, 128-aligned MXU dots; no lane concatenation.
    for rd in range(K_eff):
        for rh in range(K_eff):
            lhs = xs[rd:rd + D, rh:rh + H, :].reshape(D * H, CKp)
            acc = acc + jnp.dot(lhs, w_ref[rd, rh],
                                preferred_element_type=jnp.float32)
    y = acc + b_ref[...]                                # (D*H, L) + (1, L)

    # Fused BatchNorm partial stats, one lane-dense (1, 1, 2L) store.
    row_sum = jnp.sum(y, axis=0, keepdims=True)         # (1, L)
    row_sq = jnp.sum(y * y, axis=0, keepdims=True)      # (1, L)
    stat_ref[...] = jnp.concatenate([row_sum, row_sq], axis=-1)[None]

    y_ref[...] = y[None].astype(y_ref.dtype)            # (1, D*H, L) lane-dense


def conv3d_upsample_fused(xr, w_toep, bias_lane, *, N, D, H, K_eff,
                          out_dtype=jnp.float32):
    """xr: (N, Dp, Hp, CKp) padded, lane-flattened input.
       w_toep: (K_eff, K_eff, CKp, L). bias_lane: (1, L)."""
    _, Dp, Hp, CKp = xr.shape
    L = w_toep.shape[-1]

    kernel = functools.partial(_conv_phase_kernel,
                               K_eff=K_eff, D=D, H=H, CKp=CKp, L=L)

    # TODO(synk): for large D, add depth blocking (overlapping window via
    # pl.Element / manual DMA) so the per-step output fits 64 MiB VMEM on v7x.
    return pl.pallas_call(
        kernel,
        out_shape=(
            jax.ShapeDtypeStruct((N, D * H, L), out_dtype),      # conv + bias
            jax.ShapeDtypeStruct((N, 1, 2 * L), jnp.float32),     # sum | sum-sq
        ),
        grid_spec=pltpu.PrefetchScalarGridSpec(
            num_scalar_prefetch=0,
            grid=(N,),
            in_specs=[
                pl.BlockSpec((1, Dp, Hp, CKp), lambda n: (n, 0, 0, 0)),
                pl.BlockSpec((K_eff, K_eff, CKp, L), lambda n: (0, 0, 0, 0)),
                pl.BlockSpec((1, L), lambda n: (0, 0)),
            ],
            out_specs=(
                pl.BlockSpec((1, D * H, L), lambda n: (n, 0, 0)),
                pl.BlockSpec((1, 1, 2 * L), lambda n: (n, 0, 0)),
            ),
        ),
        compiler_params=pltpu.CompilerParams(
            dimension_semantics=("parallel",),   # no reduction axis; 2-TC on v7x
        ),
    )(xr, w_toep, bias_lane)


# ----------------------------------------------------------------------------
# Full Upsample_3DBlock forward.
# ----------------------------------------------------------------------------
def upsample_3d_block_forward(x_ncdhw, weight, bias, gamma, beta, *,
                              kernel_size, scale_factor=2, eps=1e-5,
                              compute_dtype=jnp.float32):
    """x_ncdhw: (N, Cin, D, H, W). weight: (K, K, K, Cin, Cout).
    compute_dtype=jnp.bfloat16 halves MXU-operand/input traffic on v6e/v7x
    (accumulation, stats and BN math stay f32)."""
    N, Cin, D, H, W = x_ncdhw.shape
    s = scale_factor
    Cout = weight.shape[-1]
    PC = (s ** 3) * Cout
    L = W * PC

    # One-time (tiny) weight rework: phase fusion + W Toeplitz + 128-pad depth.
    w_toep, pad_lo, pad_hi, K_eff, Wp = _toeplitz_phase_weights(weight, s, W)
    CK = Wp * Cin
    CKp = _round_up(CK, 128)                      # aligned MXU contraction depth
    w_toep = jnp.pad(w_toep, ((0, 0), (0, 0), (0, CKp - CK), (0, 0)))
    w_toep = w_toep.astype(compute_dtype)
    bias_lane = jnp.tile(jnp.tile(bias, s ** 3), W).reshape(1, L)
    bias_lane = bias_lane.astype(jnp.float32)

    # NCDHW -> NDHWC, zero-pad the ORIGINAL (pre-upsample) grid, flatten (Wp,Cin)
    # into the lane dim and zero-pad lanes to CKp.
    x = jnp.transpose(x_ncdhw, (0, 2, 3, 4, 1))
    xp = jnp.pad(x, ((0, 0), (pad_lo, pad_hi), (pad_lo, pad_hi),
                     (pad_lo, pad_hi), (0, 0)))
    Dp, Hp = D + pad_lo + pad_hi, H + pad_lo + pad_hi
    xr = jnp.pad(xp.reshape(N, Dp, Hp, CK),
                 ((0, 0), (0, 0), (0, 0), (0, CKp - CK))).astype(compute_dtype)

    # Fused upsample + conv + bias + BN partial stats (Pallas).
    y, stats = conv3d_upsample_fused(xr, w_toep, bias_lane, N=N, D=D, H=H,
                                     K_eff=K_eff, out_dtype=jnp.float32)
    # y: (N, D*H, W*PC) phase-major conv output; stats: (N, 1, 2*W*PC).

    # BatchNorm3d training-mode batch statistics from fused partial sums.
    # TODO(synk): E[x^2]-mean^2 can cancel for large-magnitude activations;
    # a Welford / two-pass variance would be safer at large dynamic range.
    count = N * D * H * W * (s ** 3)
    st = stats.reshape(N, 2, W, s ** 3, Cout).sum(axis=(0, 2, 3))   # (2, Cout)
    mean = st[0] / count
    var = jnp.maximum(st[1] / count - mean * mean, 0.0)   # biased var (BN train)
    inv_std = lax.rsqrt(var + eps)
    scale = gamma * inv_std
    shift = beta - mean * scale

    # BN-apply + ReLU fused by XLA into the pixel-shuffle / NCDHW transpose
    # (single pass over the large tensor; a channels-last consumer could skip
    # the transpose entirely and take (N, sD, sH, sW, Cout)).
    y8 = y.reshape(N, D, H, W, s, s, s, Cout)
    out = jnp.maximum(y8 * scale + shift, 0.0)
    out = jnp.transpose(out, (0, 7, 1, 4, 2, 5, 3, 6))
    return out.reshape(N, Cout, s * D, s * H, s * W)


# ----------------------------------------------------------------------------
# Pure-JAX reference (upsample -> conv -> BN(train stats) -> ReLU).
# ----------------------------------------------------------------------------
def reference_forward(x_ncdhw, weight, bias, gamma, beta,
                      *, kernel_size, scale_factor=2, eps=1e-5):
    s = scale_factor
    x = jnp.repeat(jnp.repeat(jnp.repeat(x_ncdhw, s, axis=2), s, axis=3), s, axis=4)
    w_oidhw = jnp.transpose(weight, (4, 3, 0, 1, 2))
    pad = kernel_size // 2
    y = lax.conv_general_dilated(
        x, w_oidhw, window_strides=(1, 1, 1), padding=[(pad, pad)] * 3,
        dimension_numbers=("NCDHW", "OIDHW", "NCDHW"),
    ) + bias.reshape(1, -1, 1, 1, 1)
    mean = jnp.mean(y, axis=(0, 2, 3, 4), keepdims=True)
    var = jnp.mean((y - mean) ** 2, axis=(0, 2, 3, 4), keepdims=True)
    y = (y - mean) / jnp.sqrt(var + eps)
    y = y * gamma.reshape(1, -1, 1, 1, 1) + beta.reshape(1, -1, 1, 1, 1)
    return jnp.maximum(y, 0.0)


if __name__ == "__main__":
    # Small shapes consistent with the module: N=2, Cin=4, Cout=8, D=H=W=8, k=3.
    N, Cin, Cout = 2, 4, 8
    D = H = W = 8
    K = 3

    key = jax.random.PRNGKey(0)
    k_x, k_w, k_b, k_g, k_beta = jax.random.split(key, 5)

    x = jax.random.normal(k_x, (N, Cin, D, H, W), dtype=jnp.float32)
    weight = jax.random.normal(k_w, (K, K, K, Cin, Cout), dtype=jnp.float32) * 0.1
    bias = jax.random.normal(k_b, (Cout,), dtype=jnp.float32) * 0.1
    gamma = 1.0 + 0.1 * jax.random.normal(k_g, (Cout,), dtype=jnp.float32)
    beta = 0.1 * jax.random.normal(k_beta, (Cout,), dtype=jnp.float32)

    fwd = jax.jit(functools.partial(
        upsample_3d_block_forward, kernel_size=K, scale_factor=2))
    out = jax.block_until_ready(fwd(x, weight, bias, gamma, beta))

    ref = jax.block_until_ready(reference_forward(
        x, weight, bias, gamma, beta, kernel_size=K, scale_factor=2))

    np.testing.assert_allclose(np.asarray(out), np.asarray(ref),
                               rtol=1e-4, atol=1e-4)
    print("KERNEL_OK")
</pallas_src>

<mosaic_0001>
module attributes {stable_mosaic.version = 11 : i64} {
  func.func @_conv_phase_kernel(%arg0: i32, %arg1: memref<1x10x10x128xf32, #tpu.memory_space<vmem>>, %arg2: memref<3x3x128x512xf32, #tpu.memory_space<vmem>>, %arg3: memref<1x512xf32, #tpu.memory_space<vmem>>, %arg4: memref<1x64x512xf32, #tpu.memory_space<vmem>>, %arg5: memref<1x1x1024xf32, #tpu.memory_space<vmem>>) attributes {dimension_semantics = [#tpu.dimension_semantics<parallel>], iteration_bounds = array<i64: 2>, scalar_prefetch = 0 : i64, scratch_operands = 0 : i64, tpu.core_type = #tpu.core_type<tc>, window_params = [{transform_indices = @transform_0, window_bounds = array<i64: 1, 10, 10, 128>}, {pipeline_mode = #tpu.pipeline_mode<synchronous>, transform_indices = @transform_1, window_bounds = array<i64: 3, 3, 128, 512>}, {pipeline_mode = #tpu.pipeline_mode<synchronous>, transform_indices = @transform_2, window_bounds = array<i64: 1, 512>}, {transform_indices = @transform_3, window_bounds = array<i64: 1, 64, 512>}, {transform_indices = @transform_4, window_bounds = array<i64: 1, 1, 1024>}]} {
    %c0 = arith.constant 0 : index
    %c0_0 = arith.constant 0 : index
    %c0_1 = arith.constant 0 : index
    %c0_2 = arith.constant 0 : index
    %0 = vector.load %arg1[%c0, %c0_0, %c0_1, %c0_2] : memref<1x10x10x128xf32, #tpu.memory_space<vmem>>, vector<1x10x10x128xf32>
    %1 = vector.shape_cast %0 : vector<1x10x10x128xf32> to vector<10x10x128xf32>
    %cst = arith.constant 0.000000e+00 : f32
    %2 = vector.broadcast %cst : f32 to vector<64x512xf32>
    %3 = vector.extract_strided_slice %1 {offsets = [0, 0, 0], sizes = [8, 8, 128], strides = [1, 1, 1]} : vector<10x10x128xf32> to vector<8x8x128xf32>
    %4 = vector.shape_cast %3 : vector<8x8x128xf32> to vector<64x128xf32>
    %c0_3 = arith.constant 0 : index
    %c0_4 = arith.constant 0 : index
    %c0_5 = arith.constant 0 : index
    %c0_6 = arith.constant 0 : index
    %5 = vector.load %arg2[%c0_3, %c0_4, %c0_5, %c0_6] : memref<3x3x128x512xf32, #tpu.memory_space<vmem>>, vector<1x1x128x512xf32>
    %6 = vector.shape_cast %5 : vector<1x1x128x512xf32> to vector<128x512xf32>
    %cst_7 = arith.constant dense<0.000000e+00> : vector<64x512xf32>
    %7 = tpu.matmul %4, %6, %cst_7 {dimension_numbers = #tpu.dot_dimension_numbers<[1], [0], [0], [1], [0, 0, 1, 1], [], []>} : vector<64x128xf32>, vector<128x512xf32>, vector<64x512xf32> -> vector<64x512xf32>
    %8 = arith.addf %2, %7 : vector<64x512xf32>
    %9 = vector.extract_strided_slice %1 {offsets = [0, 1, 0], sizes = [8, 8, 128], strides = [1, 1, 1]} : vector<10x10x128xf32> to vector<8x8x128xf32>
    %10 = vector.shape_cast %9 : vector<8x8x128xf32> to vector<64x128xf32>
    %c0_8 = arith.constant 0 : index
    %c1 = arith.constant 1 : index
    %c0_9 = arith.constant 0 : index
    %c0_10 = arith.constant 0 : index
    %11 = vector.load %arg2[%c0_8, %c1, %c0_9, %c0_10] : memref<3x3x128x512xf32, #tpu.memory_space<vmem>>, vector<1x1x128x512xf32>
    %12 = vector.shape_cast %11 : vector<1x1x128x512xf32> to vector<128x512xf32>
    %cst_11 = arith.constant dense<0.000000e+00> : vector<64x512xf32>
    %13 = tpu.matmul %10, %12, %cst_11 {dimension_numbers = #tpu.dot_dimension_numbers<[1], [0], [0], [1], [0, 0, 1, 1], [], []>} : vector<64x128xf32>, vector<128x512xf32>, vector<64x512xf32> -> vector<64x512xf32>
    %14 = arith.addf %8, %13 : vector<64x512xf32>
    %15 = vector.extract_strided_slice %1 {offsets = [0, 2, 0], sizes = [8, 8, 128], strides = [1, 1, 1]} : vector<10x10x128xf32> to vector<8x8x128xf32>
    %16 = vector.shape_cast %15 : vector<8x8x128xf32> to vector<64x128xf32>
    %c0_12 = arith.constant 0 : index
    %c2 = arith.constant 2 : index
    %c0_13 = arith.constant 0 : index
    %c0_14 = arith.constant 0 : index
    %17 = vector.load %arg2[%c0_12, %c2, %c0_13, %c0_14] : memref<3x3x128x512xf32, #tpu.memory_space<vmem>>, vector<1x1x128x512xf32>
    %18 = vector.shape_cast %17 : vector<1x1x128x512xf32> to vector<128x512xf32>
    %cst_15 = arith.constant dense<0.000000e+00> : vector<64x512xf32>
    %19 = tpu.matmul %16, %18, %cst_15 {dimension_numbers = #tpu.dot_dimension_numbers<[1], [0], [0], [1], [0, 0, 1, 1], [], []>} : vector<64x128xf32>, vector<128x512xf32>, vector<64x512xf32> -> vector<64x512xf32>
    %20 = arith.addf %14, %19 : vector<64x512xf32>
    %21 = vector.extract_strided_slice %1 {offsets = [1, 0, 0], sizes = [8, 8, 128], strides = [1, 1, 1]} : vector<10x10x128xf32> to vector<8x8x128xf32>
    %22 = vector.shape_cast %21 : vector<8x8x128xf32> to vector<64x128xf32>
    %c1_16 = arith.constant 1 : index
    %c0_17 = arith.constant 0 : index
    %c0_18 = arith.constant 0 : index
    %c0_19 = arith.constant 0 : index
    %23 = vector.load %arg2[%c1_16, %c0_17, %c0_18, %c0_19] : memref<3x3x128x512xf32, #tpu.memory_space<vmem>>, vector<1x1x128x512xf32>
    %24 = vector.shape_cast %23 : vector<1x1x128x512xf32> to vector<128x512xf32>
    %cst_20 = arith.constant dense<0.000000e+00> : vector<64x512xf32>
    %25 = tpu.matmul %22, %24, %cst_20 {dimension_numbers = #tpu.dot_dimension_numbers<[1], [0], [0], [1], [0, 0, 1, 1], [], []>} : vector<64x128xf32>, vector<128x512xf32>, vector<64x512xf32> -> vector<64x512xf32>
    %26 = arith.addf %20, %25 : vector<64x512xf32>
    %27 = vector.extract_strided_slice %1 {offsets = [1, 1, 0], sizes = [8, 8, 128], strides = [1, 1, 1]} : vector<10x10x128xf32> to vector<8x8x128xf32>
    %28 = vector.shape_cast %27 : vector<8x8x128xf32> to vector<64x128xf32>
    %c1_21 = arith.constant 1 : index
    %c1_22 = arith.constant 1 : index
    %c0_23 = arith.constant 0 : index
    %c0_24 = arith.constant 0 : index
    %29 = vector.load %arg2[%c1_21, %c1_22, %c0_23, %c0_24] : memref<3x3x128x512xf32, #tpu.memory_space<vmem>>, vector<1x1x128x512xf32>
    %30 = vector.shape_cast %29 : vector<1x1x128x512xf32> to vector<128x512xf32>
    %cst_25 = arith.constant dense<0.000000e+00> : vector<64x512xf32>
    %31 = tpu.matmul %28, %30, %cst_25 {dimension_numbers = #tpu.dot_dimension_numbers<[1], [0], [0], [1], [0, 0, 1, 1], [], []>} : vector<64x128xf32>, vector<128x512xf32>, vector<64x512xf32> -> vector<64x512xf32>
    %32 = arith.addf %26, %31 : vector<64x512xf32>
    %33 = vector.extract_strided_slice %1 {offsets = [1, 2, 0], sizes = [8, 8, 128], strides = [1, 1, 1]} : vector<10x10x128xf32> to vector<8x8x128xf32>
    %34 = vector.shape_cast %33 : vector<8x8x128xf32> to vector<64x128xf32>
    %c1_26 = arith.constant 1 : index
    %c2_27 = arith.constant 2 : index
    %c0_28 = arith.constant 0 : index
    %c0_29 = arith.constant 0 : index
    %35 = vector.load %arg2[%c1_26, %c2_27, %c0_28, %c0_29] : memref<3x3x128x512xf32, #tpu.memory_space<vmem>>, vector<1x1x128x512xf32>
    %36 = vector.shape_cast %35 : vector<1x1x128x512xf32> to vector<128x512xf32>
    %cst_30 = arith.constant dense<0.000000e+00> : vector<64x512xf32>
    %37 = tpu.matmul %34, %36, %cst_30 {dimension_numbers = #tpu.dot_dimension_numbers<[1], [0], [0], [1], [0, 0, 1, 1], [], []>} : vector<64x128xf32>, vector<128x512xf32>, vector<64x512xf32> -> vector<64x512xf32>
    %38 = arith.addf %32, %37 : vector<64x512xf32>
    %39 = vector.extract_strided_slice %1 {offsets = [2, 0, 0], sizes = [8, 8, 128], strides = [1, 1, 1]} : vector<10x10x128xf32> to vector<8x8x128xf32>
    %40 = vector.shape_cast %39 : vector<8x8x128xf32> to vector<64x128xf32>
    %c2_31 = arith.constant 2 : index
    %c0_32 = arith.constant 0 : index
    %c0_33 = arith.constant 0 : index
    %c0_34 = arith.constant 0 : index
    %41 = vector.load %arg2[%c2_31, %c0_32, %c0_33, %c0_34] : memref<3x3x128x512xf32, #tpu.memory_space<vmem>>, vector<1x1x128x512xf32>
    %42 = vector.shape_cast %41 : vector<1x1x128x512xf32> to vector<128x512xf32>
    %cst_35 = arith.constant dense<0.000000e+00> : vector<64x512xf32>
    %43 = tpu.matmul %40, %42, %cst_35 {dimension_numbers = #tpu.dot_dimension_numbers<[1], [0], [0], [1], [0, 0, 1, 1], [], []>} : vector<64x128xf32>, vector<128x512xf32>, vector<64x512xf32> -> vector<64x512xf32>
    %44 = arith.addf %38, %43 : vector<64x512xf32>
    %45 = vector.extract_strided_slice %1 {offsets = [2, 1, 0], sizes = [8, 8, 128], strides = [1, 1, 1]} : vector<10x10x128xf32> to vector<8x8x128xf32>
    %46 = vector.shape_cast %45 : vector<8x8x128xf32> to vector<64x128xf32>
    %c2_36 = arith.constant 2 : index
    %c1_37 = arith.constant 1 : index
    %c0_38 = arith.constant 0 : index
    %c0_39 = arith.constant 0 : index
    %47 = vector.load %arg2[%c2_36, %c1_37, %c0_38, %c0_39] : memref<3x3x128x512xf32, #tpu.memory_space<vmem>>, vector<1x1x128x512xf32>
    %48 = vector.shape_cast %47 : vector<1x1x128x512xf32> to vector<128x512xf32>
    %cst_40 = arith.constant dense<0.000000e+00> : vector<64x512xf32>
    %49 = tpu.matmul %46, %48, %cst_40 {dimension_numbers = #tpu.dot_dimension_numbers<[1], [0], [0], [1], [0, 0, 1, 1], [], []>} : vector<64x128xf32>, vector<128x512xf32>, vector<64x512xf32> -> vector<64x512xf32>
    %50 = arith.addf %44, %49 : vector<64x512xf32>
    %51 = vector.extract_strided_slice %1 {offsets = [2, 2, 0], sizes = [8, 8, 128], strides = [1, 1, 1]} : vector<10x10x128xf32> to vector<8x8x128xf32>
    %52 = vector.shape_cast %51 : vector<8x8x128xf32> to vector<64x128xf32>
    %c2_41 = arith.constant 2 : index
    %c2_42 = arith.constant 2 : index
    %c0_43 = arith.constant 0 : index
    %c0_44 = arith.constant 0 : index
    %53 = vector.load %arg2[%c2_41, %c2_42, %c0_43, %c0_44] : memref<3x3x128x512xf32, #tpu.memory_space<vmem>>, vector<1x1x128x512xf32>
    %54 = vector.shape_cast %53 : vector<1x1x128x512xf32> to vector<128x512xf32>
    %cst_45 = arith.constant dense<0.000000e+00> : vector<64x512xf32>
    %55 = tpu.matmul %52, %54, %cst_45 {dimension_numbers = #tpu.dot_dimension_numbers<[1], [0], [0], [1], [0, 0, 1, 1], [], []>} : vector<64x128xf32>, vector<128x512xf32>, vector<64x512xf32> -> vector<64x512xf32>
    %56 = arith.addf %50, %55 : vector<64x512xf32>
    %c0_46 = arith.constant 0 : index
    %c0_47 = arith.constant 0 : index
    %57 = vector.load %arg3[%c0_46, %c0_47] : memref<1x512xf32, #tpu.memory_space<vmem>>, vector<1x512xf32>
    %58 = vector.broadcast %57 : vector<1x512xf32> to vector<64x512xf32>
    %59 = arith.addf %56, %58 : vector<64x512xf32>
    %cst_48 = arith.constant dense<0.000000e+00> : vector<512xf32>
    %60 = vector.multi_reduction <add>, %59, %cst_48 [0] : vector<64x512xf32> to vector<512xf32>
    %61 = vector.shape_cast %60 : vector<512xf32> to vector<1x512xf32>
    %62 = arith.mulf %59, %59 : vector<64x512xf32>
    %cst_49 = arith.constant dense<0.000000e+00> : vector<512xf32>
    %63 = vector.multi_reduction <add>, %62, %cst_49 [0] : vector<64x512xf32> to vector<512xf32>
    %64 = vector.shape_cast %63 : vector<512xf32> to vector<1x512xf32>
    %65 = tpu.concatenate %61, %64 in 1 : vector<1x512xf32>, vector<1x512xf32> -> vector<1x1024xf32>
    %66 = vector.shape_cast %65 : vector<1x1024xf32> to vector<1x1x1024xf32>
    %c0_50 = arith.constant 0 : index
    %c0_51 = arith.constant 0 : index
    %c0_52 = arith.constant 0 : index
    %67 = vector.load %arg5[%c0_50, %c0_51, %c0_52] : memref<1x1x1024xf32, #tpu.memory_space<vmem>>, vector<1x1x1024xf32>
    tpu.vector_store %arg5[%c0_50, %c0_51, %c0_52], %66 {strides = array<i32>} : memref<1x1x1024xf32, #tpu.memory_space<vmem>>, vector<1x1x1024xf32>,
    %68 = vector.shape_cast %59 : vector<64x512xf32> to vector<1x64x512xf32>
    %c0_53 = arith.constant 0 : index
    %c0_54 = arith.constant 0 : index
    %c0_55 = arith.constant 0 : index
    %69 = vector.load %arg4[%c0_53, %c0_54, %c0_55] : memref<1x64x512xf32, #tpu.memory_space<vmem>>, vector<1x64x512xf32>
    tpu.vector_store %arg4[%c0_53, %c0_54, %c0_55], %68 {strides = array<i32>} : memref<1x64x512xf32, #tpu.memory_space<vmem>>, vector<1x64x512xf32>,
    return
  }
  func.func @transform_0(%arg0: i32) -> (i32, i32, i32, i32) {
    %c0_i32 = arith.constant 0 : i32
    %c0_i32_0 = arith.constant 0 : i32
    %c0_i32_1 = arith.constant 0 : i32
    %c0_i32_2 = arith.constant 0 : i32
    return %arg0, %c0_i32, %c0_i32_0, %c0_i32_1 : i32, i32, i32, i32
  }
  func.func @transform_1(%arg0: i32) -> (i32, i32, i32, i32) {
    %c0_i32 = arith.constant 0 : i32
    %c0_i32_0 = arith.constant 0 : i32
    %c0_i32_1 = arith.constant 0 : i32
    %c0_i32_2 = arith.constant 0 : i32
    %c0_i32_3 = arith.constant 0 : i32
    return %c0_i32, %c0_i32_0, %c0_i32_1, %c0_i32_2 : i32, i32, i32, i32
  }
  func.func @transform_2(%arg0: i32) -> (i32, i32) {
    %c0_i32 = arith.constant 0 : i32
    %c0_i32_0 = arith.constant 0 : i32
    %c0_i32_1 = arith.constant 0 : i32
    return %c0_i32, %c0_i32_0 : i32, i32
  }
  func.func @transform_3(%arg0: i32) -> (i32, i32, i32) {
    %c0_i32 = arith.constant 0 : i32
    %c0_i32_0 = arith.constant 0 : i32
    %c0_i32_1 = arith.constant 0 : i32
    return %arg0, %c0_i32, %c0_i32_0 : i32, i32, i32
  }
  func.func @transform_4(%arg0: i32) -> (i32, i32, i32) {
    %c0_i32 = arith.constant 0 : i32
    %c0_i32_0 = arith.constant 0 : i32
    %c0_i32_1 = arith.constant 0 : i32
    return %arg0, %c0_i32, %c0_i32_0 : i32, i32, i32
  }
}

</mosaic_0001>

<bundles_post_ra>
// kernel: tile.17
= control target key start
LH: loop header
LB: loop body
LE: loop exit
PB: predicated region body
PF: predicated region fallthrough
CT: control target
= control target key end

     0   :  { %vm3_vm0 = vcmask 523264   ;;  %s46_s8 = smov 64   ;;  %vm9_vm1 = vcmask 1048064   ;;  %s75_s0 = inlined_call_operand.vmem [shape: f32[8,64], index: 0, kind: input, shape index: {}]   ;;  %s76_s1 = inlined_call_operand.vmem [shape: f32[1,512], index: 1, kind: output, shape index: {}]  }
   0x1   :  { %v41_v0 = vld [vmem:[%s75_s0 + $0x1] ss:$2 sm:$0xf]   ;;  %v2_v1 = vld [vmem:[%s75_s0] ss:$2 sm:$0xf]  }
   0x2   :  { %7 = vrot.lane.b32.xlu0 %v41_v0, %s46_s8  ;;  %4 = vst.msk [vmem:[#allocation0] ss:$8 sm:$0xf] %vm3_vm0, %v2_v1  }
  0x74   :  { %v8_v2 = vpop.permute.xlu0 %7  }
  0x75   :  { %10 = vst.msk [vmem:[#allocation0] ss:$8 sm:$0xf] %vm9_vm1, %v8_v2  }
  0x7c   :  { %v15_v3 = vld [vmem:[#allocation0] sm:$0x1]  ;;  %v20_v4 = vld [vmem:[#allocation0 + $0x8] sm:$0x1]  ;;  %v26_v5 = vld [vmem:[#allocation0 + $0x10] sm:$0x1] }
  0x7d   :  { %18 = vst [vmem:[%s76_s1] sm:$0x1] %v15_v3  ;;  %42 = vst [vmem:[%s76_s1 + $0x1] sm:$0x1] %v20_v4  ;;  %v33_v6 = vld [vmem:[#allocation0 + $0x18] sm:$0x1] }
  0x7e   :  { %43 = vst [vmem:[%s76_s1 + $0x2] sm:$0x1] %v26_v5  ;;  %44 = vst [vmem:[%s76_s1 + $0x3] sm:$0x1] %v33_v6 }

// kernel: tile.15
= control target key start
LH: loop header
LB: loop body
LE: loop exit
PB: predicated region body
PF: predicated region fallthrough
CT: control target
= control target key end

     0   :  { %s69_s10 = smov 56   ;;  %s70_s11 = smov 40   ;;  %vm3_vm0 = vcmask 64512   ;;  %vm9_vm1 = vcmask 523712   ;;  %vm15_vm2 = vcmask 458112   ;;  %vm21_vm3 = vcmask 392512   ;;  %s113_s0 = inlined_call_operand.vmem [shape: f32[8,8], index: 0, kind: input, shape index: {}]   ;;  %s114_s1 = inlined_call_operand.vmem [shape: f32[64], index: 1, kind: output, shape index: {}]  }
   0x1   :  { %v55_v0 = vld [vmem:[%s113_s0 + $0x7] sm:$0x1]   ;;  %v57_v1 = vld [vmem:[%s113_s0 + $0x5] sm:$0x1]   ;;  %v56_v2 = vld [vmem:[%s113_s0 + $0x6] sm:$0x1]  }
   0x2   :  { %7 = vrot.lane.b32.xlu0 %v55_v0, %s69_s10  ;;  %19 = vrot.lane.b32.xlu1 %v57_v1, %s70_s11  ;;  %v58_v3 = vld [vmem:[%s113_s0 + $0x4] sm:$0x1]   ;;  %v2_v4 = vld [vmem:[%s113_s0] sm:$0x1]   ;;  %s71_s18 = smov 48   ;;  %s72_s19 = smov 32  }
   0x3   :  { %4 = vst.msk [vmem:[#allocation0] sm:$0x1] %vm3_vm0, %v2_v4   ;;  %v59_v5 = vld [vmem:[%s113_s0 + $0x3] sm:$0x1]   ;;  %v60_v6 = vld [vmem:[%s113_s0 + $0x2] sm:$0x1]  }
   0x4   :  { %s73_s24 = smov 24   ;;  %s74_s25 = smov 16   ;;  %v61_v7 = vld [vmem:[%s113_s0 + $0x1] sm:$0x1]   ;;  %vm27_vm4 = vcmask 326912   ;;  %vm33_vm5 = vcmask 261312  }
   0x5   :  { %s75_s0 = smov 8   ;;  %vm39_vm6 = vcmask 195712   ;;  %vm45_vm7 = vcmask 130112  }
   0x6   :  { %13 = vrot.lane.b32.xlu0 %v56_v2, %s71_s18  ;;  %25 = vrot.lane.b32.xlu1 %v58_v3, %s72_s19 }
   0xa   :  { %31 = vrot.lane.b32.xlu0 %v59_v5, %s73_s24  ;;  %37 = vrot.lane.b32.xlu1 %v60_v6, %s74_s25 }
   0xe   :  { %43 = vrot.lane.b32.xlu0 %v61_v7, %s75_s0 }
  0x74   :  { %v8_v8 = vpop.permute.xlu0 %7   ;;  %v20_v9 = vpop.permute.xlu1 %19  }
  0x75   :  { %10 = vst.msk [vmem:[#allocation0] sm:$0x1] %vm9_vm1, %v8_v8  }
  0x78   :  { %v14_v10 = vpop.permute.xlu0 %13   ;;  %v26_v11 = vpop.permute.xlu1 %25  }
  0x79   :  { %16 = vst.msk [vmem:[#allocation0] sm:$0x1] %vm15_vm2, %v14_v10  }
  0x7a   :  { %22 = vst.msk [vmem:[#allocation0] sm:$0x1] %vm21_vm3, %v20_v9  }
  0x7b   :  { %28 = vst.msk [vmem:[#allocation0] sm:$0x1] %vm27_vm4, %v26_v11  }
  0x7c   :  { %v32_v12 = vpop.permute.xlu0 %31   ;;  %v38_v13 = vpop.permute.xlu1 %37  }
  0x7d   :  { %34 = vst.msk [vmem:[#allocation0] sm:$0x1] %vm33_vm5, %v32_v12  }
  0x7e   :  { %40 = vst.msk [vmem:[#allocation0] sm:$0x1] %vm39_vm6, %v38_v13  }
  0x80   :  { %v44_v14 = vpop.permute.xlu0 %43  }
  0x81   :  { %46 = vst.msk [vmem:[#allocation0] sm:$0x1] %vm45_vm7, %v44_v14  }
  0x88   :  { %v51_v15 = vld [vmem:[#allocation0] sm:$0x1] }
  0x89   :  { %54 = vst [vmem:[%s114_s1] sm:$0x1] %v51_v15 }

// kernel: tile.16
= control target key start
LH: loop header
LB: loop body
LE: loop exit
PB: predicated region body
PF: predicated region fallthrough
CT: control target
= control target key end

     0   :  { %s22_s0 = inlined_call_operand.vmem [shape: f32[64], index: 0, kind: input, shape index: {}]   ;;  %s23_s1 = inlined_call_operand.vmem [shape: f32[8,64], index: 1, kind: output, shape index: {}]  }
   0x1   :  { %v4_v0 = vld [vmem:[%s22_s0] ss:$0 sm:$0xff] }
   0x2   :  { %5 = vst [vmem:[%s23_s1] sm:$0xff] %v4_v0 }

// kernel: tile.12
= control target key start
LH: loop header
LB: loop body
LE: loop exit
PB: predicated region body
PF: predicated region fallthrough
CT: control target
= control target key end

     0   :  { %2 = vsyncpa [#allocation1], 0  ;;  %s42_s6 = smov [#allocation0]   ;;  %s59_s0 = inlined_call_operand.hbm [shape: f32[8], index: 0, kind: input, shape index: {}]   ;;  %s60_s1 = inlined_call_operand.vmem [shape: f32[8,8], index: 1, kind: output, shape index: {}]  }
   0x1   :  { %s9_s7 = sshll.u32 %s42_s6, 4  ;;  %s10_s7 = int_to_ptr.vmem [resolvable:$true] %s9_s7 }
   0x2   :  { %s28_s8 = scalar_lea.vmem %s10_s7, 16  ;;  %s32_s9 = scalar_lea.vmem %s10_s7, 32 }
   0x3   :  { %p29_p0 = scmp.ne.s32.totalorder %s10_s7, %s28_s8  ;;  %p33_p1 = scmp.lt.s32.totalorder %s10_s7, %s10_s7 }
   0x4   :  { %p34_p2 = scmp.lt.s32.totalorder %s32_s9, %s28_s8 }
   0x6   :  { %p35_p3 = por %p34_p2, %p33_p1 }
   0x8   :  { %p36_p4 = pnand %p35_p3, %p29_p0 }
   0xa   :  { %39 = shalt.err (!%p36_p4)
}
   0xb   :  { %12 = dma.hbm_to_vmem [thread:$0]  %s59_s0, 16, %s10_s7, [#allocation1]  }
   0xc   :  { %40 = dma.done.wait [#allocation1], 16  }
   0xd   :  { %41 = vsyncadd [#allocation1], 4294967280  ;;  %v16_v0 = vld [vmem:[#allocation0] ss:$0 sm:$0xff] }
   0xe   :  { %17 = vst [vmem:[%s60_s1] sm:$0xff] %v16_v0 }
   0xf   :  { %18 = vsyncpa [#allocation1], 1 }

// kernel: upsample_3d_block_forward.1
= control target key start
LH: loop header
LB: loop body
LE: loop exit
PB: predicated region body
PF: predicated region fallthrough
CT: control target
= control target key end

     0   :  { %s4124_s15 = smov 0   ;;  %s7190_s0 = inlined_call_operand.vmem [shape: f32[2,10,10,128], index: 0, kind: input, shape index: {}]   ;;  %s7191_s1 = inlined_call_operand.vmem [shape: f32[3,3,128,512], index: 1, kind: input, shape index: {}]   ;;  %s7192_s2 = inlined_call_operand.vmem [shape: f32[1,512], index: 2, kind: input, shape index: {}]   ;;  %s7193_s3 = inlined_call_operand.vmem [shape: f32[2,64,512], index: 3, kind: output, shape index: {0}]   ;;  %s7194_s4 = inlined_call_operand.vmem [shape: f32[2,1,1024], index: 4, kind: output, shape index: {1}]  }
   0x1 LB: > { %s3540_s16 = sadd.s32 4294967295, %s4095_s15   ;;  %p3544_p0 = scmp.ge.s32.totalorder %s4095_s15, 1  ;;  %s4095_s15 = sphi %s4124_s15, %s15_s15  }
   0x2   : > { %p165_p1 = scmp.lt.s32.totalorder %s4095_s15, 3 }
   0x4   : > { %p166_p2 = pnand %p3544_p0, %p165_p1 }
   0x6   : > { %169 = sbr.rel (%p166_p2) target bundleno = 690 (0x2b2), region = 32 }
   0xb   : > { %v3610_v0 = vld [vmem:[%s7191_s1 + $0x3e8] sm:$0xff]  ;;  %v3612_v1 = vld [vmem:[%s7191_s1 + $0x3f8] sm:$0xff]  ;;  %v3609_v2 = vld [vmem:[%s7191_s1 + $0x3e0] sm:$0xff]  ;;  %p4188_p3 = scmp.lt.s32.totalorder %s3540_s16, 1  ;;  %vm859_vm0 = vcmask 1045504   ;;  %vm309_vm1 = vcmask 1046528  }
   0xc   : > { %407 = vmatprep.subr.mxu0 %v3610_v0  ;;  %520 = vmatprep.subr.mxu1 %v3612_v1  ;;  %v3611_v3 = vld [vmem:[%s7191_s1 + $0x3f0] sm:$0xff]  ;;  %v3606_v4 = vld [vmem:[%s7191_s1 + $0x3c8] sm:$0xff]  ;;  %v3608_v5 = vld [vmem:[%s7191_s1 + $0x3d8] sm:$0xff] }
   0xd   : > { %408 = vmatpush1.msra.mxu0 %v3609_v2  ;;  %521 = vmatpush1.msra.mxu1 %v3611_v3  ;;  %v3605_v6 = vld [vmem:[%s7191_s1 + $0x3c0] sm:$0xff]  ;;  %v3607_v7 = vld [vmem:[%s7191_s1 + $0x3d0] sm:$0xff]  ;;  %v3602_v8 = vld [vmem:[%s7191_s1 + $0x3a8] sm:$0xff]  ;;  %s7335_s16 = smov (!%p4188_p3, %s3540_s16), 1 }
   0xe   : > { %409 = vmatprep.subr.mxu0 %v3606_v4  ;;  %522 = vmatprep.subr.mxu1 %v3608_v5  ;;  %v3604_v9 = vld [vmem:[%s7191_s1 + $0x3b8] sm:$0xff]  ;;  %v3601_v10 = vld [vmem:[%s7191_s1 + $0x3a0] sm:$0xff]  ;;  %v3603_v11 = vld [vmem:[%s7191_s1 + $0x3b0] sm:$0xff]  ;;  %s4064_s12 = smul.u32 160, %s7335_s16  ;;  %s4063_s20 = sshll.u32 %s7335_s16, 8 }
   0xf   : > { %410 = vmatpush1.msra.mxu0 %v3605_v6  ;;  %523 = vmatpush1.msra.mxu1 %v3607_v7  ;;  %v3598_v12 = vld [vmem:[%s7191_s1 + $0x388] sm:$0xff]  ;;  %v3600_v13 = vld [vmem:[%s7191_s1 + $0x398] sm:$0xff]  ;;  %v3597_v14 = vld [vmem:[%s7191_s1 + $0x380] sm:$0xff]  ;;  %s7042_s23 = scalar_lea.vmem %s7193_s3, %s4063_s20  ;;  %s3548_s24 = sshll.u32 %s7335_s16, 3 }
  0x10   : > { %411 = vmatprep.subr.mxu0 %v3602_v8  ;;  %524 = vmatprep.subr.mxu1 %v3604_v9  ;;  %v3599_v15 = vld [vmem:[%s7191_s1 + $0x390] sm:$0xff]  ;;  %v3594_v16 = vld [vmem:[%s7191_s1 + $0x368] sm:$0xff]  ;;  %v3596_v17 = vld [vmem:[%s7191_s1 + $0x378] sm:$0xff]  ;;  %s4274_s7 = scalar_lea.vmem %s7190_s0, %s4064_s12  ;;  %s208_s27 = scalar_lea.vmem %s7194_s4, %s3548_s24 }
  0x11   : > { %412 = vmatpush1.msra.mxu0 %v3601_v10  ;;  %525 = vmatpush1.msra.mxu1 %v3603_v11  ;;  %v3593_v18 = vld [vmem:[%s7191_s1 + $0x360] sm:$0xff]  ;;  %v3595_v19 = vld [vmem:[%s7191_s1 + $0x370] sm:$0xff]  ;;  %v3590_v20 = vld [vmem:[%s7191_s1 + $0x348] sm:$0xff]  ;;  %v7195_v10 = vmov 0.0  }
  0x12   : > { %413 = vmatprep.subr.mxu0 %v3598_v12  ;;  %526 = vmatprep.subr.mxu1 %v3600_v13  ;;  %v3592_v21 = vld [vmem:[%s7191_s1 + $0x358] sm:$0xff]  ;;  %v3589_v22 = vld [vmem:[%s7191_s1 + $0x340] sm:$0xff]  ;;  %v3591_v23 = vld [vmem:[%s7191_s1 + $0x350] sm:$0xff] }
  0x13   : > { %414 = vmatpush1.msra.mxu0 %v3597_v14  ;;  %527 = vmatpush1.msra.mxu1 %v3599_v15  ;;  %v3586_v24 = vld [vmem:[%s7191_s1 + $0x328] sm:$0xff]  ;;  %v3588_v25 = vld [vmem:[%s7191_s1 + $0x338] sm:$0xff]  ;;  %v3585_v26 = vld [vmem:[%s7191_s1 + $0x320] sm:$0xff] }
  0x14   : > { %415 = vmatprep.subr.mxu0 %v3594_v16  ;;  %528 = vmatprep.subr.mxu1 %v3596_v17  ;;  %v3587_v27 = vld [vmem:[%s7191_s1 + $0x330] sm:$0xff]  ;;  %v3582_v28 = vld [vmem:[%s7191_s1 + $0x308] sm:$0xff]  ;;  %v3584_v29 = vld [vmem:[%s7191_s1 + $0x318] sm:$0xff] }
  0x15   : > { %416 = vmatpush1.msra.mxu0 %v3593_v18  ;;  %529 = vmatpush1.msra.mxu1 %v3595_v19  ;;  %v3581_v30 = vld [vmem:[%s7191_s1 + $0x300] sm:$0xff]  ;;  %v3583_v31 = vld [vmem:[%s7191_s1 + $0x310] sm:$0xff]  ;;  %v3578_v32 = vld [vmem:[%s7191_s1 + $0x2e8] sm:$0xff] }
  0x16   : > { %417 = vmatprep.subr.mxu0 %v3590_v20  ;;  %530 = vmatprep.subr.mxu1 %v3592_v21  ;;  %v3580_v33 = vld [vmem:[%s7191_s1 + $0x2f8] sm:$0xff]  ;;  %v3577_v34 = vld [vmem:[%s7191_s1 + $0x2e0] sm:$0xff]  ;;  %v3579_v35 = vld [vmem:[%s7191_s1 + $0x2f0] sm:$0xff] }
  0x17   : > { %418 = vmatpush1.msra.mxu0 %v3589_v22  ;;  %531 = vmatpush1.msra.mxu1 %v3591_v23  ;;  %v3574_v36 = vld [vmem:[%s7191_s1 + $0x2c8] sm:$0xff]  ;;  %v3576_v37 = vld [vmem:[%s7191_s1 + $0x2d8] sm:$0xff]  ;;  %v3573_v38 = vld [vmem:[%s7191_s1 + $0x2c0] sm:$0xff] }
  0x18   : > { %419 = vmatprep.subr.mxu0 %v3586_v24  ;;  %532 = vmatprep.subr.mxu1 %v3588_v25  ;;  %v3575_v39 = vld [vmem:[%s7191_s1 + $0x2d0] sm:$0xff]  ;;  %v3570_v40 = vld [vmem:[%s7191_s1 + $0x2a8] sm:$0xff]  ;;  %v3572_v41 = vld [vmem:[%s7191_s1 + $0x2b8] sm:$0xff] }
  0x19   : > { %420 = vmatpush1.msra.mxu0 %v3585_v26  ;;  %533 = vmatpush1.msra.mxu1 %v3587_v27  ;;  %v3569_v42 = vld [vmem:[%s7191_s1 + $0x2a0] sm:$0xff]  ;;  %v3571_v43 = vld [vmem:[%s7191_s1 + $0x2b0] sm:$0xff]  ;;  %v3566_v44 = vld [vmem:[%s7191_s1 + $0x288] sm:$0xff] }
  0x1a   : > { %421 = vmatprep.subr.mxu0 %v3582_v28  ;;  %534 = vmatprep.subr.mxu1 %v3584_v29  ;;  %v3568_v45 = vld [vmem:[%s7191_s1 + $0x298] sm:$0xff]  ;;  %v3565_v46 = vld [vmem:[%s7191_s1 + $0x280] sm:$0xff]  ;;  %v3567_v47 = vld [vmem:[%s7191_s1 + $0x290] sm:$0xff] }
  0x1b   : > { %422 = vmatpush1.msra.mxu0 %v3581_v30  ;;  %535 = vmatpush1.msra.mxu1 %v3583_v31  ;;  %v210_v48 = vld [vmem:[%s4274_s7 + $0x8] sm:$0x3]  ;;  %v3564_v50 = vld [vmem:[%s7191_s1 + $0x278] sm:$0xff]  ;;  %v4302_v51 = vld [vmem:[%s4274_s7] sm:$0xff] }
  0x1c   : > { %423 = vmatprep.subr.mxu0 %v3578_v32  ;;  %536 = vmatprep.subr.mxu1 %v3580_v33  ;;  %v3562_v49 = vld [vmem:[%s7191_s1 + $0x268] sm:$0xff]  ;;  %v861_v52 = vrot.slane %v210_v48, 2  ;;  %v3561_v53 = vld [vmem:[%s7191_s1 + $0x260] sm:$0xff]  ;;  %v3563_v54 = vld [vmem:[%s7191_s1 + $0x270] sm:$0xff]  ;;  %v860_v55 = vrot.slane %v4302_v51, 2  ;;  %v310_v1 = vrot.slane %v4302_v51, 1 }
  0x1d   : > { %424 = vmatpush1.msra.mxu0 %v3577_v34  ;;  %537 = vmatpush1.msra.mxu1 %v3579_v35  ;;  %v3558_v56 = vld [vmem:[%s7191_s1 + $0x248] sm:$0xff]  ;;  %v3560_v57 = vld [vmem:[%s7191_s1 + $0x258] sm:$0xff]  ;;  %v3557_v58 = vld [vmem:[%s7191_s1 + $0x240] sm:$0xff]  ;;  %v311_v2 = vrot.slane %v210_v48, 1 }
  0x1e   : > { %425 = vmatprep.subr.mxu0 %v3574_v36  ;;  %538 = vmatprep.subr.mxu1 %v3576_v37  ;;  %v3559_v59 = vld [vmem:[%s7191_s1 + $0x250] sm:$0xff]  ;;  %v4324_v60 = vsel %vm859_vm0, %v860_v55, %v861_v52  ;;  %v3554_v61 = vld [vmem:[%s7191_s1 + $0x228] sm:$0xff]  ;;  %v3556_v62 = vld [vmem:[%s7191_s1 + $0x238] sm:$0xff] }
  0x1f   : > { %426 = vmatpush1.msra.mxu0 %v3573_v38  ;;  %539 = vmatpush1.msra.mxu1 %v3575_v39  ;;  %v3553_v63 = vld [vmem:[%s7191_s1 + $0x220] sm:$0xff]  ;;  %v3555_v0 = vld [vmem:[%s7191_s1 + $0x230] sm:$0xff]  ;;  %v3550_v3 = vld [vmem:[%s7191_s1 + $0x208] sm:$0xff]  ;;  %v312_v9 = vsel %vm309_vm1, %v310_v1, %v311_v2 }
  0x20   : > { %427 = vmatprep.subr.mxu0 %v3570_v40  ;;  %540 = vmatprep.subr.mxu1 %v3572_v41  ;;  %v3552_v4 = vld [vmem:[%s7191_s1 + $0x218] sm:$0xff]  ;;  %v3549_v5 = vld [vmem:[%s7191_s1 + $0x200] sm:$0xff]  ;;  %v3551_v6 = vld [vmem:[%s7191_s1 + $0x210] sm:$0xff] }
  0x21   : > { %428 = vmatpush1.msra.mxu0 %v3569_v42  ;;  %541 = vmatpush1.msra.mxu1 %v3571_v43  ;;  %v4352_v7 = vld [vmem:[%s4274_s7 + $0x10] sm:$0xff]  ;;  %v4355_v8 = vld [vmem:[%s4274_s7 + $0x18] sm:$0x3]  ;;  %v290_v11 = vld [vmem:[%s7191_s1 + $0x1e8] sm:$0xff] }
  0x22   : > { %429 = vmatprep.subr.mxu0 %v3566_v44  ;;  %542 = vmatprep.subr.mxu1 %v3568_v45  ;;  %v292_v12 = vld [vmem:[%s7191_s1 + $0x1f8] sm:$0xff]  ;;  %v289_v13 = vld [vmem:[%s7191_s1 + $0x1e0] sm:$0xff]  ;;  %v291_v14 = vld [vmem:[%s7191_s1 + $0x1f0] sm:$0xff]  ;;  %v313_v15 = vrot.slane %v4352_v7, 1  ;;  %v314_v16 = vrot.slane %v4355_v8, 1 }
  0x23   : > { %430 = vmatpush1.msra.mxu0 %v3565_v46  ;;  %543 = vmatpush1.msra.mxu1 %v3567_v47  ;;  %v286_v17 = vld [vmem:[%s7191_s1 + $0x1c8] sm:$0xff]  ;;  %v288_v18 = vld [vmem:[%s7191_s1 + $0x1d8] sm:$0xff]  ;;  %v285_v19 = vld [vmem:[%s7191_s1 + $0x1c0] sm:$0xff] }
  0x24   : > { %431 = vmatprep.subr.mxu0 %v3562_v49  ;;  %544 = vmatprep.subr.mxu1 %v3564_v50  ;;  %v287_v20 = vld [vmem:[%s7191_s1 + $0x1d0] sm:$0xff]  ;;  %v4387_v21 = vld [vmem:[%s4274_s7 + $0x20] sm:$0xff]  ;;  %v4390_v22 = vld [vmem:[%s4274_s7 + $0x28] sm:$0x3]  ;;  %v4393_v23 = vsel %vm309_vm1, %v313_v15, %v314_v16 }
  0x25   : > { %432 = vmatpush1.msra.mxu0 %v3561_v53  ;;  %545 = vmatpush1.msra.mxu1 %v3563_v54  ;;  %v282_v24 = vld [vmem:[%s7191_s1 + $0x1a8] sm:$0xff]  ;;  %v284_v25 = vld [vmem:[%s7191_s1 + $0x1b8] sm:$0xff]  ;;  %v281_v26 = vld [vmem:[%s7191_s1 + $0x1a0] sm:$0xff]  ;;  %v316_v28 = vrot.slane %v4387_v21, 1  ;;  %v317_v29 = vrot.slane %v4390_v22, 1 }
  0x26   : > { %433 = vmatprep.subr.mxu0 %v3558_v56  ;;  %546 = vmatprep.subr.mxu1 %v3560_v57  ;;  %v283_v27 = vld [vmem:[%s7191_s1 + $0x1b0] sm:$0xff]  ;;  %v278_v30 = vld [vmem:[%s7191_s1 + $0x188] sm:$0xff]  ;;  %v280_v31 = vld [vmem:[%s7191_s1 + $0x198] sm:$0xff] }
  0x27   : > { %434 = vmatpush1.msra.mxu0 %v3557_v58  ;;  %547 = vmatpush1.msra.mxu1 %v3559_v59  ;;  %v277_v32 = vld [vmem:[%s7191_s1 + $0x180] sm:$0xff]  ;;  %v279_v33 = vld [vmem:[%s7191_s1 + $0x190] sm:$0xff]  ;;  %v4429_v35 = vld [vmem:[%s4274_s7 + $0x38] sm:$0x3]  ;;  %v4432_v36 = vsel %vm309_vm1, %v316_v28, %v317_v29 }
  0x28   : > { %435 = vmatprep.subr.mxu0 %v3554_v61  ;;  %548 = vmatprep.subr.mxu1 %v3556_v62  ;;  %v4426_v34 = vld [vmem:[%s4274_s7 + $0x30] sm:$0xff]  ;;  %v274_v37 = vld [vmem:[%s7191_s1 + $0x168] sm:$0xff]  ;;  %v276_v38 = vld [vmem:[%s7191_s1 + $0x178] sm:$0xff]  ;;  %v320_v42 = vrot.slane %v4429_v35, 1 }
  0x29   : > { %436 = vmatpush1.msra.mxu0 %v3553_v63  ;;  %549 = vmatpush1.msra.mxu1 %v3555_v0  ;;  %v273_v39 = vld [vmem:[%s7191_s1 + $0x160] sm:$0xff]  ;;  %v275_v40 = vld [vmem:[%s7191_s1 + $0x170] sm:$0xff]  ;;  %v319_v41 = vrot.slane %v4426_v34, 1  ;;  %v270_v43 = vld [vmem:[%s7191_s1 + $0x148] sm:$0xff] }
  0x2a   : > { %437 = vmatprep.subr.mxu0 %v3550_v3  ;;  %550 = vmatprep.subr.mxu1 %v3552_v4  ;;  %v272_v44 = vld [vmem:[%s7191_s1 + $0x158] sm:$0xff]  ;;  %v269_v45 = vld [vmem:[%s7191_s1 + $0x140] sm:$0xff]  ;;  %v271_v46 = vld [vmem:[%s7191_s1 + $0x150] sm:$0xff] }
  0x2b   : > { %438 = vmatpush1.msra.mxu0 %v3549_v5  ;;  %471 = vmatprep.mubr.f32.mxu0 %v7195_v10  ;;  %v4465_v47 = vld [vmem:[%s4274_s7 + $0x40] sm:$0xff]  ;;  %v4468_v48 = vld [vmem:[%s4274_s7 + $0x48] sm:$0x3]  ;;  %v4471_v49 = vsel %vm309_vm1, %v319_v41, %v320_v42  ;;  %v268_v52 = vld [vmem:[%s7191_s1 + $0x138] sm:$0xff] }
  0x2c   : > { %551 = vmatpush1.msra.mxu1 %v3551_v6  ;;  %584 = vmatprep.mubr.f32.mxu1 %v7195_v10  ;;  %v266_v50 = vld [vmem:[%s7191_s1 + $0x128] sm:$0xff]  ;;  %v265_v53 = vld [vmem:[%s7191_s1 + $0x120] sm:$0xff]  ;;  %v267_v54 = vld [vmem:[%s7191_s1 + $0x130] sm:$0xff]  ;;  %v322_v55 = vrot.slane %v4465_v47, 1  ;;  %v323_v56 = vrot.slane %v4468_v48, 1 }
  0x2d   : > { %472 = vmatmul.mubr.f32.vlgmr.msra.gmra.mxu0 %v312_v9  ;;  %585 = vmatmul.mubr.f32.vlgmr.msra.gmra.mxu1 %v312_v9  ;;  %v262_v57 = vld [vmem:[%s7191_s1 + $0x108] sm:$0xff]  ;;  %v264_v58 = vld [vmem:[%s7191_s1 + $0x118] sm:$0xff]  ;;  %v261_v59 = vld [vmem:[%s7191_s1 + $0x100] sm:$0xff] }
  0x2e   : > { %633 = vmatprep.subr.mxu0 %v290_v11  ;;  %746 = vmatprep.subr.mxu1 %v292_v12  ;;  %v263_v61 = vld [vmem:[%s7191_s1 + $0x110] sm:$0xff]  ;;  %v4507_v63 = vld [vmem:[%s4274_s7 + $0x58] sm:$0x3]  ;;  %v4510_v0 = vsel %vm309_vm1, %v322_v55, %v323_v56  ;;  %v258_v1 = vld [vmem:[%s7191_s1 + $0xe8] sm:$0xff] }
  0x2f   : > { %634 = vmatpush1.msra.mxu0 %v289_v13  ;;  %747 = vmatpush1.msra.mxu1 %v291_v14  ;;  %v4504_v62 = vld [vmem:[%s4274_s7 + $0x50] sm:$0xff]  ;;  %v260_v2 = vld [vmem:[%s7191_s1 + $0xf8] sm:$0xff]  ;;  %v257_v3 = vld [vmem:[%s7191_s1 + $0xe0] sm:$0xff]  ;;  %v326_v6 = vrot.slane %v4507_v63, 1 }
  0x30   : > { %635 = vmatprep.subr.mxu0 %v286_v17  ;;  %748 = vmatprep.subr.mxu1 %v288_v18  ;;  %v259_v4 = vld [vmem:[%s7191_s1 + $0xf0] sm:$0xff]  ;;  %v325_v5 = vrot.slane %v4504_v62, 1  ;;  %v254_v9 = vld [vmem:[%s7191_s1 + $0xc8] sm:$0xff]  ;;  %v256_v11 = vld [vmem:[%s7191_s1 + $0xd8] sm:$0xff] }
  0x31   : > { %477 = vmatprep.mubr.f32.mxu0 %v7195_v10  ;;  %590 = vmatprep.mubr.f32.mxu1 %v7195_v10  ;;  %v253_v12 = vld [vmem:[%s7191_s1 + $0xc0] sm:$0xff]  ;;  %v255_v13 = vld [vmem:[%s7191_s1 + $0xd0] sm:$0xff]  ;;  %v4546_v15 = vld [vmem:[%s4274_s7 + $0x68] sm:$0x3] }
  0x32   : > { %636 = vmatpush1.msra.mxu0 %v285_v19  ;;  %749 = vmatpush1.msra.mxu1 %v287_v20  ;;  %v4543_v14 = vld [vmem:[%s4274_s7 + $0x60] sm:$0xff]  ;;  %v4549_v16 = vsel %vm309_vm1, %v325_v5, %v326_v6  ;;  %v250_v17 = vld [vmem:[%s7191_s1 + $0xa8] sm:$0xff]  ;;  %v252_v18 = vld [vmem:[%s7191_s1 + $0xb8] sm:$0xff] }
  0x33   : > { %478 = vmatmul.mubr.f32.gmra.mxu0 %v4393_v23  ;;  %591 = vmatmul.mubr.f32.gmra.mxu1 %v4393_v23  ;;  %v249_v19 = vld [vmem:[%s7191_s1 + $0xa0] sm:$0xff]  ;;  %v251_v20 = vld [vmem:[%s7191_s1 + $0xb0] sm:$0xff]  ;;  %v238_v42 = vld [vmem:[%s7191_s1 + $0x48] sm:$0xff] }
  0x34   : > { %637 = vmatprep.subr.mxu0 %v282_v24  ;;  %750 = vmatprep.subr.mxu1 %v284_v25  ;;  %v328_v24 = vrot.slane %v4543_v14, 1  ;;  %v329_v25 = vrot.slane %v4546_v15, 1  ;;  %v245_v28 = vld [vmem:[%s7191_s1 + $0x80] sm:$0xff]  ;;  %v247_v29 = vld [vmem:[%s7191_s1 + $0x90] sm:$0xff]  ;;  %v230_v55 = vld [vmem:[%s7191_s1 + $0x8] sm:$0xff] }
  0x35   : > { %638 = vmatpush1.msra.mxu0 %v281_v26  ;;  %751 = vmatpush1.msra.mxu1 %v283_v27  ;;  %v246_v26 = vld [vmem:[%s7191_s1 + $0x88] sm:$0xff]  ;;  %v248_v27 = vld [vmem:[%s7191_s1 + $0x98] sm:$0xff]  ;;  %v3669_v5 = vld [vmem:[%s7191_s1 + $0x5c0] sm:$0xff] }
  0x36   : > { %639 = vmatprep.subr.mxu0 %v278_v30  ;;  %752 = vmatprep.subr.mxu1 %v280_v31  ;;  %v4582_v30 = vld [vmem:[%s4274_s7 + $0x70] sm:$0xff]  ;;  %v4585_v31 = vld [vmem:[%s4274_s7 + $0x78] sm:$0x3]  ;;  %v3666_v6 = vld [vmem:[%s7191_s1 + $0x5a8] sm:$0xff] }
  0x37   : > { %483 = vmatprep.mubr.f32.mxu0 %v7195_v10  ;;  %596 = vmatprep.mubr.f32.mxu1 %v7195_v10  ;;  %v332_v41 = vrot.slane %v4585_v31, 1  ;;  %v232_v56 = vld [vmem:[%s7191_s1 + $0x18] sm:$0xff] }
  0x38   : > { %640 = vmatpush1.msra.mxu0 %v277_v32  ;;  %753 = vmatpush1.msra.mxu1 %v279_v33  ;;  %v4588_v32 = vsel %vm309_vm1, %v328_v24, %v329_v25  ;;  %v242_v33 = vld [vmem:[%s7191_s1 + $0x68] sm:$0xff]  ;;  %v3660_v24 = vld [vmem:[%s7191_s1 + $0x578] sm:$0xff]  ;;  %v3657_v25 = vld [vmem:[%s7191_s1 + $0x560] sm:$0xff] }
  0x39   : > { %484 = vmatmul.mubr.f32.gmra.mxu0 %v4432_v36  ;;  %597 = vmatmul.mubr.f32.gmra.mxu1 %v4432_v36 }
  0x3a   : > { %641 = vmatprep.subr.mxu0 %v274_v37  ;;  %754 = vmatprep.subr.mxu1 %v276_v38  ;;  %v244_v37 = vld [vmem:[%s7191_s1 + $0x78] sm:$0xff]  ;;  %v241_v38 = vld [vmem:[%s7191_s1 + $0x60] sm:$0xff] }
  0x3b   : > { %642 = vmatpush1.msra.mxu0 %v273_v39  ;;  %755 = vmatpush1.msra.mxu1 %v275_v40  ;;  %v243_v39 = vld [vmem:[%s7191_s1 + $0x70] sm:$0xff]  ;;  %v331_v40 = vrot.slane %v4582_v30, 1 }
  0x3c   : > { %643 = vmatprep.subr.mxu0 %v270_v43  ;;  %756 = vmatprep.subr.mxu1 %v272_v44  ;;  %v240_v43 = vld [vmem:[%s7191_s1 + $0x58] sm:$0xff]  ;;  %v237_v44 = vld [vmem:[%s7191_s1 + $0x40] sm:$0xff] }
  0x3d   : > { %489 = vmatprep.mubr.f32.mxu0 %v7195_v10  ;;  %602 = vmatprep.mubr.f32.mxu1 %v7195_v10 }
  0x3e   : > { %644 = vmatpush1.msra.mxu0 %v269_v45  ;;  %757 = vmatpush1.msra.mxu1 %v271_v46  ;;  %v239_v45 = vld [vmem:[%s7191_s1 + $0x50] sm:$0xff]  ;;  %v4621_v46 = vsel %vm309_vm1, %v331_v40, %v332_v41  ;;  %v3646_v41 = vld [vmem:[%s7191_s1 + $0x508] sm:$0xff] }
  0x3f   : > { %490 = vmatmul.mubr.f32.gmra.mxu0 %v4471_v49  ;;  %603 = vmatmul.mubr.f32.gmra.mxu1 %v4471_v49  ;;  %7217 = vst [vmem:[#allocation2_spill] sm:$0xff] %v4621_v46  ;;  %v3651_v40 = vld [vmem:[%s7191_s1 + $0x530] sm:$0xff] }
  0x40   : > { %645 = vmatprep.subr.mxu0 %v266_v50  ;;  %758 = vmatprep.subr.mxu1 %v268_v52  ;;  %v234_v50 = vld [vmem:[%s7191_s1 + $0x28] sm:$0xff]  ;;  %v236_v52 = vld [vmem:[%s7191_s1 + $0x38] sm:$0xff] }
  0x41   : > { %646 = vmatpush1.msra.mxu0 %v265_v53  ;;  %759 = vmatpush1.msra.mxu1 %v267_v54  ;;  %v233_v53 = vld [vmem:[%s7191_s1 + $0x20] sm:$0xff]  ;;  %v235_v54 = vld [vmem:[%s7191_s1 + $0x30] sm:$0xff] }
  0x42   : > { %647 = vmatprep.subr.mxu0 %v262_v57  ;;  %760 = vmatprep.subr.mxu1 %v264_v58  ;;  %v229_v57 = vld [vmem:[%s7191_s1] sm:$0xff]  ;;  %v231_v58 = vld [vmem:[%s7191_s1 + $0x10] sm:$0xff] }
  0x43   : > { %495 = vmatprep.mubr.f32.mxu0 %v7195_v10  ;;  %608 = vmatprep.mubr.f32.mxu1 %v7195_v10 }
  0x44   : > { %648 = vmatpush1.msra.mxu0 %v261_v59  ;;  %761 = vmatpush1.msra.mxu1 %v263_v61  ;;  %v3674_v59 = vld [vmem:[%s7191_s1 + $0x5e8] sm:$0xff]  ;;  %v3676_v61 = vld [vmem:[%s7191_s1 + $0x5f8] sm:$0xff] }
  0x45   : > { %496 = vmatmul.mubr.f32.gmra.mxu0 %v4510_v0  ;;  %609 = vmatmul.mubr.f32.gmra.mxu1 %v4510_v0 }
  0x46   : > { %649 = vmatprep.subr.mxu0 %v258_v1  ;;  %762 = vmatprep.subr.mxu1 %v260_v2  ;;  %v3673_v1 = vld [vmem:[%s7191_s1 + $0x5e0] sm:$0xff]  ;;  %v3675_v2 = vld [vmem:[%s7191_s1 + $0x5f0] sm:$0xff] }
  0x47   : > { %650 = vmatpush1.msra.mxu0 %v257_v3  ;;  %763 = vmatpush1.msra.mxu1 %v259_v4  ;;  %v3670_v3 = vld [vmem:[%s7191_s1 + $0x5c8] sm:$0xff]  ;;  %v3672_v4 = vld [vmem:[%s7191_s1 + $0x5d8] sm:$0xff] }
  0x48   : > { %651 = vmatprep.subr.mxu0 %v254_v9  ;;  %764 = vmatprep.subr.mxu1 %v256_v11  ;;  %v3668_v9 = vld [vmem:[%s7191_s1 + $0x5b8] sm:$0xff]  ;;  %v3665_v11 = vld [vmem:[%s7191_s1 + $0x5a0] sm:$0xff] }
  0x49   : > { %501 = vmatprep.mubr.f32.mxu0 %v7195_v10  ;;  %614 = vmatprep.mubr.f32.mxu1 %v7195_v10 }
  0x4a   : > { %652 = vmatpush1.msra.mxu0 %v253_v12  ;;  %765 = vmatpush1.msra.mxu1 %v255_v13  ;;  %v3667_v12 = vld [vmem:[%s7191_s1 + $0x5b0] sm:$0xff]  ;;  %v3662_v13 = vld [vmem:[%s7191_s1 + $0x588] sm:$0xff] }
  0x4b   : > { %502 = vmatmul.mubr.f32.gmra.mxu0 %v4549_v16  ;;  %615 = vmatmul.mubr.f32.gmra.mxu1 %v4549_v16 }
  0x4c   : > { %653 = vmatprep.subr.mxu0 %v250_v17  ;;  %766 = vmatprep.subr.mxu1 %v252_v18  ;;  %v3664_v17 = vld [vmem:[%s7191_s1 + $0x598] sm:$0xff]  ;;  %v3661_v18 = vld [vmem:[%s7191_s1 + $0x580] sm:$0xff] }
  0x4d   : > { %654 = vmatpush1.msra.mxu0 %v249_v19  ;;  %767 = vmatpush1.msra.mxu1 %v251_v20  ;;  %v3663_v19 = vld [vmem:[%s7191_s1 + $0x590] sm:$0xff]  ;;  %v3658_v20 = vld [vmem:[%s7191_s1 + $0x568] sm:$0xff] }
  0x4e   : > { %655 = vmatprep.subr.mxu0 %v246_v26  ;;  %768 = vmatprep.subr.mxu1 %v248_v27  ;;  %v3659_v26 = vld [vmem:[%s7191_s1 + $0x570] sm:$0xff]  ;;  %v3654_v27 = vld [vmem:[%s7191_s1 + $0x548] sm:$0xff] }
  0x4f   : > { %507 = vmatprep.mubr.f32.mxu0 %v7195_v10  ;;  %620 = vmatprep.mubr.f32.mxu1 %v7195_v10 }
  0x50   : > { %656 = vmatpush1.msra.mxu0 %v245_v28  ;;  %769 = vmatpush1.msra.mxu1 %v247_v29  ;;  %v3656_v28 = vld [vmem:[%s7191_s1 + $0x558] sm:$0xff]  ;;  %v3653_v29 = vld [vmem:[%s7191_s1 + $0x540] sm:$0xff] }
  0x51   : > { %508 = vmatmul.mubr.f32.gmra.mxu0 %v4588_v32  ;;  %621 = vmatmul.mubr.f32.gmra.mxu1 %v4588_v32 }
  0x52   : > { %657 = vmatprep.subr.mxu0 %v242_v33  ;;  %770 = vmatprep.subr.mxu1 %v244_v37  ;;  %v3655_v33 = vld [vmem:[%s7191_s1 + $0x550] sm:$0xff]  ;;  %v3650_v37 = vld [vmem:[%s7191_s1 + $0x528] sm:$0xff] }
  0x53   : > { %658 = vmatpush1.msra.mxu0 %v241_v38  ;;  %771 = vmatpush1.msra.mxu1 %v243_v39  ;;  %v3652_v38 = vld [vmem:[%s7191_s1 + $0x538] sm:$0xff]  ;;  %v3649_v39 = vld [vmem:[%s7191_s1 + $0x520] sm:$0xff] }
  0x54   : > { %659 = vmatprep.subr.mxu0 %v238_v42  ;;  %772 = vmatprep.subr.mxu1 %v240_v43  ;;  %v3648_v42 = vld [vmem:[%s7191_s1 + $0x518] sm:$0xff]  ;;  %v3645_v43 = vld [vmem:[%s7191_s1 + $0x500] sm:$0xff] }
  0x55   : > { %513 = vmatprep.mubr.f32.mxu0 %v7195_v10  ;;  %626 = vmatprep.mubr.f32.mxu1 %v7195_v10 }
  0x56   : > { %660 = vmatpush1.msra.mxu0 %v237_v44  ;;  %773 = vmatpush1.msra.mxu1 %v239_v45  ;;  %v3647_v44 = vld [vmem:[%s7191_s1 + $0x510] sm:$0xff]  ;;  %v3642_v45 = vld [vmem:[%s7191_s1 + $0x4e8] sm:$0xff] }
  0x57   : > { %514 = vmatmul.mubr.f32.gmra.mxu0 %v4621_v46  ;;  %627 = vmatmul.mubr.f32.gmra.mxu1 %v4621_v46 }
  0x58   : > { %661 = vmatprep.subr.mxu0 %v234_v50  ;;  %774 = vmatprep.subr.mxu1 %v236_v52  ;;  %v3644_v50 = vld [vmem:[%s7191_s1 + $0x4f8] sm:$0xff]  ;;  %v3641_v52 = vld [vmem:[%s7191_s1 + $0x4e0] sm:$0xff] }
  0x59   : > { %662 = vmatpush1.msra.mxu0 %v233_v53  ;;  %775 = vmatpush1.msra.mxu1 %v235_v54  ;;  %v3643_v53 = vld [vmem:[%s7191_s1 + $0x4f0] sm:$0xff]  ;;  %v3638_v54 = vld [vmem:[%s7191_s1 + $0x4c8] sm:$0xff] }
  0x5a   : > { %663 = vmatprep.subr.mxu0 %v230_v55  ;;  %776 = vmatprep.subr.mxu1 %v232_v56  ;;  %v3640_v55 = vld [vmem:[%s7191_s1 + $0x4d8] sm:$0xff]  ;;  %v3637_v56 = vld [vmem:[%s7191_s1 + $0x4c0] sm:$0xff] }
  0x5b   : > { %664 = vmatpush1.msra.mxu0 %v229_v57  ;;  %697 = vmatprep.mubr.f32.mxu0 %v7195_v10  ;;  %v3639_v57 = vld [vmem:[%s7191_s1 + $0x4d0] sm:$0xff] }
  0x5c   : > { %777 = vmatpush1.msra.mxu1 %v231_v58  ;;  %810 = vmatprep.mubr.f32.mxu1 %v7195_v10  ;;  %v3634_v58 = vld [vmem:[%s7191_s1 + $0x4a8] sm:$0xff] }
  0x5d   : > { %698 = vmatmul.mubr.f32.vlgmr.msra.gmra.mxu0 %v4302_v51  ;;  %811 = vmatmul.mubr.f32.vlgmr.msra.gmra.mxu1 %v4302_v51  ;;  %v3671_v51 = vld [vmem:[%s7191_s1 + $0x5d0] sm:$0xff] }
  0x5e   : > { %957 = vmatprep.subr.mxu0 %v3674_v59  ;;  %1070 = vmatprep.subr.mxu1 %v3676_v61  ;;  %v3636_v59 = vld [vmem:[%s7191_s1 + $0x4b8] sm:$0xff]  ;;  %v3633_v61 = vld [vmem:[%s7191_s1 + $0x4a0] sm:$0xff] }
  0x5f   : > { %958 = vmatpush1.msra.mxu0 %v3673_v1  ;;  %1071 = vmatpush1.msra.mxu1 %v3675_v2  ;;  %v3635_v1 = vld [vmem:[%s7191_s1 + $0x4b0] sm:$0xff]  ;;  %v3630_v2 = vld [vmem:[%s7191_s1 + $0x488] sm:$0xff] }
  0x60   : > { %959 = vmatprep.subr.mxu0 %v3670_v3  ;;  %1072 = vmatprep.subr.mxu1 %v3672_v4  ;;  %v3632_v3 = vld [vmem:[%s7191_s1 + $0x498] sm:$0xff]  ;;  %v3629_v4 = vld [vmem:[%s7191_s1 + $0x480] sm:$0xff] }
  0x61   : > { %703 = vmatprep.mubr.f32.mxu0 %v7195_v10  ;;  %816 = vmatprep.mubr.f32.mxu1 %v7195_v10 }
  0x62   : > { %960 = vmatpush1.msra.mxu0 %v3669_v5  ;;  %1073 = vmatpush1.msra.mxu1 %v3671_v51  ;;  %v3631_v5 = vld [vmem:[%s7191_s1 + $0x490] sm:$0xff]  ;;  %v3626_v51 = vld [vmem:[%s7191_s1 + $0x468] sm:$0xff] }
  0x63   : > { %704 = vmatmul.mubr.f32.gmra.mxu0 %v4352_v7  ;;  %817 = vmatmul.mubr.f32.gmra.mxu1 %v4352_v7 }
  0x64   : > { %961 = vmatprep.subr.mxu0 %v3666_v6  ;;  %1074 = vmatprep.subr.mxu1 %v3668_v9  ;;  %v3628_v6 = vld [vmem:[%s7191_s1 + $0x478] sm:$0xff]  ;;  %v3625_v9 = vld [vmem:[%s7191_s1 + $0x460] sm:$0xff] }
  0x65   : > { %962 = vmatpush1.msra.mxu0 %v3665_v11  ;;  %1075 = vmatpush1.msra.mxu1 %v3667_v12  ;;  %v3627_v11 = vld [vmem:[%s7191_s1 + $0x470] sm:$0xff]  ;;  %v3622_v12 = vld [vmem:[%s7191_s1 + $0x448] sm:$0xff] }
  0x66   : > { %963 = vmatprep.subr.mxu0 %v3662_v13  ;;  %1076 = vmatprep.subr.mxu1 %v3664_v17  ;;  %v3624_v13 = vld [vmem:[%s7191_s1 + $0x458] sm:$0xff]  ;;  %v3621_v17 = vld [vmem:[%s7191_s1 + $0x440] sm:$0xff] }
  0x67   : > { %709 = vmatprep.mubr.f32.mxu0 %v7195_v10  ;;  %822 = vmatprep.mubr.f32.mxu1 %v7195_v10 }
  0x68   : > { %964 = vmatpush1.msra.mxu0 %v3661_v18  ;;  %1077 = vmatpush1.msra.mxu1 %v3663_v19  ;;  %v3623_v18 = vld [vmem:[%s7191_s1 + $0x450] sm:$0xff]  ;;  %v3618_v19 = vld [vmem:[%s7191_s1 + $0x428] sm:$0xff] }
  0x69   : > { %710 = vmatmul.mubr.f32.gmra.mxu0 %v4387_v21  ;;  %823 = vmatmul.mubr.f32.gmra.mxu1 %v4387_v21 }
  0x6a   : > { %965 = vmatprep.subr.mxu0 %v3658_v20  ;;  %1078 = vmatprep.subr.mxu1 %v3660_v24  ;;  %v3620_v20 = vld [vmem:[%s7191_s1 + $0x438] sm:$0xff]  ;;  %v3617_v24 = vld [vmem:[%s7191_s1 + $0x420] sm:$0xff] }
  0x6b   : > { %966 = vmatpush1.msra.mxu0 %v3657_v25  ;;  %1079 = vmatpush1.msra.mxu1 %v3659_v26  ;;  %v3619_v25 = vld [vmem:[%s7191_s1 + $0x430] sm:$0xff]  ;;  %v3614_v26 = vld [vmem:[%s7191_s1 + $0x408] sm:$0xff] }
  0x6c   : > { %967 = vmatprep.subr.mxu0 %v3654_v27  ;;  %1080 = vmatprep.subr.mxu1 %v3656_v28  ;;  %v3616_v27 = vld [vmem:[%s7191_s1 + $0x418] sm:$0xff]  ;;  %v3613_v28 = vld [vmem:[%s7191_s1 + $0x400] sm:$0xff] }
  0x6d   : > { %715 = vmatprep.mubr.f32.mxu0 %v7195_v10  ;;  %828 = vmatprep.mubr.f32.mxu1 %v7195_v10 }
  0x6e   : > { %968 = vmatpush1.msra.mxu0 %v3653_v29  ;;  %1081 = vmatpush1.msra.mxu1 %v3655_v33  ;;  %v3615_v29 = vld [vmem:[%s7191_s1 + $0x410] sm:$0xff]  ;;  %v3738_v33 = vld [vmem:[%s7191_s1 + $0x7e8] sm:$0xff] }
  0x6f   : > { %716 = vmatmul.mubr.f32.gmra.mxu0 %v4426_v34  ;;  %829 = vmatmul.mubr.f32.gmra.mxu1 %v4426_v34 }
  0x70   : > { %969 = vmatprep.subr.mxu0 %v3650_v37  ;;  %1082 = vmatprep.subr.mxu1 %v3652_v38  ;;  %v3740_v37 = vld [vmem:[%s7191_s1 + $0x7f8] sm:$0xff]  ;;  %v3737_v38 = vld [vmem:[%s7191_s1 + $0x7e0] sm:$0xff] }
  0x71   : > { %970 = vmatpush1.msra.mxu0 %v3649_v39  ;;  %1083 = vmatpush1.msra.mxu1 %v3651_v40  ;;  %v3739_v39 = vld [vmem:[%s7191_s1 + $0x7f0] sm:$0xff]  ;;  %v863_v40 = vrot.slane %v4352_v7, 2  ;;  %v3733_v7 = vld [vmem:[%s7191_s1 + $0x7c0] sm:$0xff] }
  0x72   : > { %971 = vmatprep.subr.mxu0 %v3646_v41  ;;  %1084 = vmatprep.subr.mxu1 %v3648_v42  ;;  %v864_v41 = vrot.slane %v4355_v8, 2  ;;  %v3734_v42 = vld [vmem:[%s7191_s1 + $0x7c8] sm:$0xff] }
  0x73   : > { %721 = vmatprep.mubr.f32.mxu0 %v7195_v10  ;;  %834 = vmatprep.mubr.f32.mxu1 %v7195_v10 }
  0x74   : > { %972 = vmatpush1.msra.mxu0 %v3645_v43  ;;  %1085 = vmatpush1.msra.mxu1 %v3647_v44  ;;  %v3736_v43 = vld [vmem:[%s7191_s1 + $0x7d8] sm:$0xff]  ;;  %v4906_v8 = vsel %vm859_vm0, %v863_v40, %v864_v41  ;;  %v3730_v44 = vld [vmem:[%s7191_s1 + $0x7a8] sm:$0xff]  ;;  %v3697_v41 = vld [vmem:[%s7191_s1 + $0x6a0] sm:$0xff] }
  0x75   : > { %722 = vmatmul.mubr.f32.gmra.mxu0 %v4465_v47  ;;  %835 = vmatmul.mubr.f32.gmra.mxu1 %v4465_v47  ;;  %v3700_v40 = vld [vmem:[%s7191_s1 + $0x6b8] sm:$0xff] }
  0x76   : > { %973 = vmatprep.subr.mxu0 %v3642_v45  ;;  %1086 = vmatprep.subr.mxu1 %v3644_v50  ;;  %v3732_v45 = vld [vmem:[%s7191_s1 + $0x7b8] sm:$0xff]  ;;  %v3729_v50 = vld [vmem:[%s7191_s1 + $0x7a0] sm:$0xff] }
  0x77   : > { %974 = vmatpush1.msra.mxu0 %v3641_v52  ;;  %1087 = vmatpush1.msra.mxu1 %v3643_v53  ;;  %v3731_v52 = vld [vmem:[%s7191_s1 + $0x7b0] sm:$0xff]  ;;  %v866_v53 = vrot.slane %v4387_v21, 2  ;;  %v3725_v21 = vld [vmem:[%s7191_s1 + $0x780] sm:$0xff] }
  0x78   : > { %975 = vmatprep.subr.mxu0 %v3638_v54  ;;  %1088 = vmatprep.subr.mxu1 %v3640_v55  ;;  %v867_v54 = vrot.slane %v4390_v22, 2  ;;  %v3726_v55 = vld [vmem:[%s7191_s1 + $0x788] sm:$0xff]  ;;  %v3727_v22 = vld [vmem:[%s7191_s1 + $0x790] sm:$0xff] }
  0x79   : > { %727 = vmatprep.mubr.f32.mxu0 %v7195_v10  ;;  %840 = vmatprep.mubr.f32.mxu1 %v7195_v10 }
  0x7a   : > { %976 = vmatpush1.msra.mxu0 %v3637_v56  ;;  %1089 = vmatpush1.msra.mxu1 %v3639_v57  ;;  %v3728_v56 = vld [vmem:[%s7191_s1 + $0x798] sm:$0xff]  ;;  %v4939_v57 = vsel %vm859_vm0, %v866_v53, %v867_v54  ;;  %v3689_v53 = vld [vmem:[%s7191_s1 + $0x660] sm:$0xff]  ;;  %v3691_v54 = vld [vmem:[%s7191_s1 + $0x670] sm:$0xff] }
  0x7b   : > { %728 = vmatmul.mubr.f32.gmra.mxu0 %v4504_v62  ;;  %841 = vmatmul.mubr.f32.gmra.mxu1 %v4504_v62  ;;  %7218 = vst [vmem:[#allocation3_spill] sm:$0xff] %v4939_v57 }
  0x7c   : > { %977 = vmatprep.subr.mxu0 %v3634_v58  ;;  %1090 = vmatprep.subr.mxu1 %v3636_v59  ;;  %v3722_v58 = vld [vmem:[%s7191_s1 + $0x768] sm:$0xff]  ;;  %v3724_v59 = vld [vmem:[%s7191_s1 + $0x778] sm:$0xff] }
  0x7d   : > { %978 = vmatpush1.msra.mxu0 %v3633_v61  ;;  %1091 = vmatpush1.msra.mxu1 %v3635_v1  ;;  %v3721_v61 = vld [vmem:[%s7191_s1 + $0x760] sm:$0xff]  ;;  %v3723_v1 = vld [vmem:[%s7191_s1 + $0x770] sm:$0xff] }
  0x7e   : > { %979 = vmatprep.subr.mxu0 %v3630_v2  ;;  %1092 = vmatprep.subr.mxu1 %v3632_v3  ;;  %v869_v2 = vrot.slane %v4426_v34, 2  ;;  %v870_v3 = vrot.slane %v4429_v35, 2  ;;  %v3717_v34 = vld [vmem:[%s7191_s1 + $0x740] sm:$0xff]  ;;  %v3719_v35 = vld [vmem:[%s7191_s1 + $0x750] sm:$0xff] }
  0x7f   : > { %733 = vmatprep.mubr.f32.mxu0 %v7195_v10  ;;  %846 = vmatprep.mubr.f32.mxu1 %v7195_v10 }
  0x80   : > { %980 = vmatpush1.msra.mxu0 %v3629_v4  ;;  %1093 = vmatpush1.msra.mxu1 %v3631_v5  ;;  %v3718_v4 = vld [vmem:[%s7191_s1 + $0x748] sm:$0xff]  ;;  %v3720_v5 = vld [vmem:[%s7191_s1 + $0x758] sm:$0xff] }
  0x81   : > { %734 = vmatmul.mubr.f32.gmra.mxu0 %v4543_v14  ;;  %847 = vmatmul.mubr.f32.gmra.mxu1 %v4543_v14 }
  0x82   : > { %981 = vmatprep.subr.mxu0 %v3626_v51  ;;  %1094 = vmatprep.subr.mxu1 %v3628_v6  ;;  %v4972_v51 = vsel %vm859_vm0, %v869_v2, %v870_v3  ;;  %v3714_v6 = vld [vmem:[%s7191_s1 + $0x728] sm:$0xff]  ;;  %v3683_v2 = vld [vmem:[%s7191_s1 + $0x630] sm:$0xff] }
  0x83   : > { %982 = vmatpush1.msra.mxu0 %v3625_v9  ;;  %1095 = vmatpush1.msra.mxu1 %v3627_v11  ;;  %7219 = vst [vmem:[#allocation4_spill] sm:$0xff] %v4972_v51  ;;  %v3716_v9 = vld [vmem:[%s7191_s1 + $0x738] sm:$0xff]  ;;  %v3713_v11 = vld [vmem:[%s7191_s1 + $0x720] sm:$0xff]  ;;  %v3678_v3 = vld [vmem:[%s7191_s1 + $0x608] sm:$0xff] }
  0x84   : > { %983 = vmatprep.subr.mxu0 %v3622_v12  ;;  %1096 = vmatprep.subr.mxu1 %v3624_v13  ;;  %v3715_v12 = vld [vmem:[%s7191_s1 + $0x730] sm:$0xff]  ;;  %v872_v13 = vrot.slane %v4465_v47, 2  ;;  %v3709_v47 = vld [vmem:[%s7191_s1 + $0x700] sm:$0xff] }
  0x85   : > { %739 = vmatprep.mubr.f32.mxu0 %v7195_v10  ;;  %852 = vmatprep.mubr.f32.mxu1 %v7195_v10 }
  0x86   : > { %984 = vmatpush1.msra.mxu0 %v3621_v17  ;;  %1097 = vmatpush1.msra.mxu1 %v3623_v18  ;;  %v873_v17 = vrot.slane %v4468_v48, 2  ;;  %v3710_v18 = vld [vmem:[%s7191_s1 + $0x708] sm:$0xff]  ;;  %v3711_v48 = vld [vmem:[%s7191_s1 + $0x710] sm:$0xff] }
  0x87   : > { %740 = vmatmul.mubr.f32.gmra.mxu0 %v4582_v30  ;;  %853 = vmatmul.mubr.f32.gmra.mxu1 %v4582_v30 }
  0x88   : > { %985 = vmatprep.subr.mxu0 %v3618_v19  ;;  %1098 = vmatprep.subr.mxu1 %v3620_v20  ;;  %v3712_v19 = vld [vmem:[%s7191_s1 + $0x718] sm:$0xff]  ;;  %v5005_v20 = vsel %vm859_vm0, %v872_v13, %v873_v17  ;;  %v3798_v13 = vld [vmem:[%s7191_s1 + $0x9c8] sm:$0xff] }
  0x89   : > { %986 = vmatpush1.msra.mxu0 %v3617_v24  ;;  %1099 = vmatpush1.msra.mxu1 %v3619_v25  ;;  %7220 = vst [vmem:[#allocation5_spill] sm:$0xff] %v5005_v20  ;;  %v3706_v24 = vld [vmem:[%s7191_s1 + $0x6e8] sm:$0xff]  ;;  %v3708_v25 = vld [vmem:[%s7191_s1 + $0x6f8] sm:$0xff] }
  0x8a   : > { %987 = vmatprep.subr.mxu0 %v3614_v26  ;;  %1100 = vmatprep.subr.mxu1 %v3616_v27  ;;  %v3705_v26 = vld [vmem:[%s7191_s1 + $0x6e0] sm:$0xff]  ;;  %v3707_v27 = vld [vmem:[%s7191_s1 + $0x6f0] sm:$0xff]  ;;  %v3800_v17 = vld [vmem:[%s7191_s1 + $0x9d8] sm:$0xff] }
  0x8b   : > { %988 = vmatpush1.msra.mxu0 %v3613_v28  ;;  %1021 = vmatprep.mubr.f32.mxu0 %v7195_v10  ;;  %v875_v28 = vrot.slane %v4504_v62, 2  ;;  %v3701_v62 = vld [vmem:[%s7191_s1 + $0x6c0] sm:$0xff] }
  0x8c   : > { %1101 = vmatpush1.msra.mxu1 %v3615_v29  ;;  %1134 = vmatprep.mubr.f32.mxu1 %v7195_v10  ;;  %v876_v29 = vrot.slane %v4507_v63, 2  ;;  %v3703_v63 = vld [vmem:[%s7191_s1 + $0x6d0] sm:$0xff] }
  0x8d   : > { %1022 = vmatmul.mubr.f32.vlgmr.msra.gmra.mxu0 %v4324_v60  ;;  %1135 = vmatmul.mubr.f32.vlgmr.msra.gmra.mxu1 %v4324_v60  ;;  %v3735_v60 = vld [vmem:[%s7191_s1 + $0x7d0] sm:$0xff] }
  0x8e   : > { %1280 = vmatprep.subr.mxu0 %v3738_v33  ;;  %1393 = vmatprep.subr.mxu1 %v3740_v37  ;;  %v3702_v33 = vld [vmem:[%s7191_s1 + $0x6c8] sm:$0xff]  ;;  %v3704_v37 = vld [vmem:[%s7191_s1 + $0x6d8] sm:$0xff] }
  0x8f   : > { %1281 = vmatpush1.msra.mxu0 %v3737_v38  ;;  %1394 = vmatpush1.msra.mxu1 %v3739_v39  ;;  %v5038_v38 = vsel %vm859_vm0, %v875_v28, %v876_v29  ;;  %v3698_v39 = vld [vmem:[%s7191_s1 + $0x6a8] sm:$0xff]  ;;  %v3792_v28 = vld [vmem:[%s7191_s1 + $0x998] sm:$0xff]  ;;  %v3789_v29 = vld [vmem:[%s7191_s1 + $0x980] sm:$0xff] }
  0x90   : > { %1282 = vmatprep.subr.mxu0 %v3734_v42  ;;  %1395 = vmatprep.subr.mxu1 %v3736_v43  ;;  %7221 = vst [vmem:[#allocation6_spill] sm:$0xff] %v5038_v38  ;;  %v3699_v42 = vld [vmem:[%s7191_s1 + $0x6b0] sm:$0xff]  ;;  %v878_v43 = vrot.slane %v4543_v14, 2  ;;  %v3693_v14 = vld [vmem:[%s7191_s1 + $0x680] sm:$0xff] }
  0x91   : > { %1027 = vmatprep.mubr.f32.mxu0 %v7195_v10  ;;  %1140 = vmatprep.mubr.f32.mxu1 %v7195_v10 }
  0x92   : > { %1283 = vmatpush1.msra.mxu0 %v3733_v7  ;;  %1396 = vmatpush1.msra.mxu1 %v3735_v60  ;;  %v879_v7 = vrot.slane %v4546_v15, 2  ;;  %v3694_v60 = vld [vmem:[%s7191_s1 + $0x688] sm:$0xff]  ;;  %v3695_v15 = vld [vmem:[%s7191_s1 + $0x690] sm:$0xff] }
  0x93   : > { %1028 = vmatmul.mubr.f32.gmra.mxu0 %v4906_v8  ;;  %1141 = vmatmul.mubr.f32.gmra.mxu1 %v4906_v8 }
  0x94   : > { %1284 = vmatprep.subr.mxu0 %v3730_v44  ;;  %1397 = vmatprep.subr.mxu1 %v3732_v45  ;;  %v3696_v44 = vld [vmem:[%s7191_s1 + $0x698] sm:$0xff]  ;;  %v5071_v45 = vsel %vm859_vm0, %v878_v43, %v879_v7  ;;  %v3781_v43 = vld [vmem:[%s7191_s1 + $0x940] sm:$0xff]  ;;  %v3783_v7 = vld [vmem:[%s7191_s1 + $0x950] sm:$0xff] }
  0x95   : > { %1285 = vmatpush1.msra.mxu0 %v3729_v50  ;;  %1398 = vmatpush1.msra.mxu1 %v3731_v52  ;;  %7222 = vst [vmem:[#allocation7_spill] sm:$0xff] %v5071_v45  ;;  %v3690_v50 = vld [vmem:[%s7191_s1 + $0x668] sm:$0xff]  ;;  %v3692_v52 = vld [vmem:[%s7191_s1 + $0x678] sm:$0xff] }
  0x96   : > { %1286 = vmatprep.subr.mxu0 %v3726_v55  ;;  %1399 = vmatprep.subr.mxu1 %v3728_v56  ;;  %v881_v55 = vrot.slane %v4582_v30, 2  ;;  %v882_v56 = vrot.slane %v4585_v31, 2  ;;  %v3685_v30 = vld [vmem:[%s7191_s1 + $0x640] sm:$0xff]  ;;  %v3687_v31 = vld [vmem:[%s7191_s1 + $0x650] sm:$0xff] }
  0x97   : > { %1033 = vmatprep.mubr.f32.mxu0 %v7195_v10  ;;  %1146 = vmatprep.mubr.f32.mxu1 %v7195_v10 }
  0x98   : > { %1287 = vmatpush1.msra.mxu0 %v3725_v21  ;;  %1400 = vmatpush1.msra.mxu1 %v3727_v22  ;;  %v3686_v21 = vld [vmem:[%s7191_s1 + $0x648] sm:$0xff]  ;;  %v3688_v22 = vld [vmem:[%s7191_s1 + $0x658] sm:$0xff] }
  0x99   : > { %1034 = vmatmul.mubr.f32.gmra.mxu0 %v4939_v57  ;;  %1147 = vmatmul.mubr.f32.gmra.mxu1 %v4939_v57 }
  0x9a   : > { %1288 = vmatprep.subr.mxu0 %v3722_v58  ;;  %1401 = vmatprep.subr.mxu1 %v3724_v59  ;;  %v5104_v58 = vsel %vm859_vm0, %v881_v55, %v882_v56  ;;  %v3682_v59 = vld [vmem:[%s7191_s1 + $0x628] sm:$0xff]  ;;  %v3775_v55 = vld [vmem:[%s7191_s1 + $0x910] sm:$0xff] }
  0x9b   : > { %1289 = vmatpush1.msra.mxu0 %v3721_v61  ;;  %1402 = vmatpush1.msra.mxu1 %v3723_v1  ;;  %7223 = vst [vmem:[#allocation8_spill] sm:$0xff] %v5104_v58  ;;  %v3684_v61 = vld [vmem:[%s7191_s1 + $0x638] sm:$0xff]  ;;  %v3681_v1 = vld [vmem:[%s7191_s1 + $0x620] sm:$0xff]  ;;  %v3770_v56 = vld [vmem:[%s7191_s1 + $0x8e8] sm:$0xff] }
  0x9c   : > { %1290 = vmatprep.subr.mxu0 %v3718_v4  ;;  %1403 = vmatprep.subr.mxu1 %v3720_v5  ;;  %v3680_v4 = vld [vmem:[%s7191_s1 + $0x618] sm:$0xff]  ;;  %v3677_v5 = vld [vmem:[%s7191_s1 + $0x600] sm:$0xff] }
  0x9d   : > { %1039 = vmatprep.mubr.f32.mxu0 %v7195_v10  ;;  %1152 = vmatprep.mubr.f32.mxu1 %v7195_v10 }
  0x9e   : > { %1291 = vmatpush1.msra.mxu0 %v3717_v34  ;;  %1404 = vmatpush1.msra.mxu1 %v3719_v35  ;;  %v3679_v34 = vld [vmem:[%s7191_s1 + $0x610] sm:$0xff]  ;;  %v3802_v35 = vld [vmem:[%s7191_s1 + $0x9e8] sm:$0xff] }
  0x9f   : > { %1040 = vmatmul.mubr.f32.gmra.mxu0 %v4972_v51  ;;  %1153 = vmatmul.mubr.f32.gmra.mxu1 %v4972_v51 }
  0xa0   : > { %1292 = vmatprep.subr.mxu0 %v3714_v6  ;;  %1405 = vmatprep.subr.mxu1 %v3716_v9  ;;  %v3804_v6 = vld [vmem:[%s7191_s1 + $0x9f8] sm:$0xff]  ;;  %v3801_v9 = vld [vmem:[%s7191_s1 + $0x9e0] sm:$0xff] }
  0xa1   : > { %1293 = vmatpush1.msra.mxu0 %v3713_v11  ;;  %1406 = vmatpush1.msra.mxu1 %v3715_v12  ;;  %v3803_v11 = vld [vmem:[%s7191_s1 + $0x9f0] sm:$0xff] }
  0xa2   : > { %1294 = vmatprep.subr.mxu0 %v3710_v18  ;;  %1407 = vmatprep.subr.mxu1 %v3712_v19  ;;  %v4075_v12 = vld [vmem:[%s4274_s7 + $0x10] sm:$0xff]  ;;  %v3797_v18 = vld [vmem:[%s7191_s1 + $0x9c0] sm:$0xff] }
  0xa3   : > { %1045 = vmatprep.mubr.f32.mxu0 %v7195_v10  ;;  %1158 = vmatprep.mubr.f32.mxu1 %v7195_v10  ;;  %v3799_v19 = vld [vmem:[%s7191_s1 + $0x9d0] sm:$0xff] }
  0xa4   : > { %1295 = vmatpush1.msra.mxu0 %v3709_v47  ;;  %1408 = vmatpush1.msra.mxu1 %v3711_v48  ;;  %v3794_v47 = vld [vmem:[%s7191_s1 + $0x9a8] sm:$0xff]  ;;  %v3796_v48 = vld [vmem:[%s7191_s1 + $0x9b8] sm:$0xff] }
  0xa5   : > { %1046 = vmatmul.mubr.f32.gmra.mxu0 %v5005_v20  ;;  %1159 = vmatmul.mubr.f32.gmra.mxu1 %v5005_v20 }
  0xa6   : > { %1296 = vmatprep.subr.mxu0 %v3706_v24  ;;  %1409 = vmatprep.subr.mxu1 %v3708_v25  ;;  %v3793_v24 = vld [vmem:[%s7191_s1 + $0x9a0] sm:$0xff]  ;;  %v3795_v25 = vld [vmem:[%s7191_s1 + $0x9b0] sm:$0xff] }
  0xa7   : > { %1297 = vmatpush1.msra.mxu0 %v3705_v26  ;;  %1410 = vmatpush1.msra.mxu1 %v3707_v27  ;;  %v4076_v26 = vld [vmem:[%s4274_s7 + $0x20] sm:$0xff]  ;;  %v3790_v27 = vld [vmem:[%s7191_s1 + $0x988] sm:$0xff] }
  0xa8   : > { %1298 = vmatprep.subr.mxu0 %v3702_v33  ;;  %1411 = vmatprep.subr.mxu1 %v3704_v37  ;;  %v3791_v33 = vld [vmem:[%s7191_s1 + $0x990] sm:$0xff]  ;;  %v3786_v37 = vld [vmem:[%s7191_s1 + $0x968] sm:$0xff] }
  0xa9   : > { %1051 = vmatprep.mubr.f32.mxu0 %v7195_v10  ;;  %1164 = vmatprep.mubr.f32.mxu1 %v7195_v10 }
  0xaa   : > { %1299 = vmatpush1.msra.mxu0 %v3701_v62  ;;  %1412 = vmatpush1.msra.mxu1 %v3703_v63  ;;  %v3788_v62 = vld [vmem:[%s7191_s1 + $0x978] sm:$0xff]  ;;  %v3785_v63 = vld [vmem:[%s7191_s1 + $0x960] sm:$0xff] }
  0xab   : > { %1052 = vmatmul.mubr.f32.gmra.mxu0 %v5038_v38  ;;  %1165 = vmatmul.mubr.f32.gmra.mxu1 %v5038_v38 }
  0xac   : > { %1300 = vmatprep.subr.mxu0 %v3698_v39  ;;  %1413 = vmatprep.subr.mxu1 %v3700_v40  ;;  %v3787_v39 = vld [vmem:[%s7191_s1 + $0x970] sm:$0xff] }
  0xad   : > { %1301 = vmatpush1.msra.mxu0 %v3697_v41  ;;  %1414 = vmatpush1.msra.mxu1 %v3699_v42  ;;  %v4077_v40 = vld [vmem:[%s4274_s7 + $0x30] sm:$0xff]  ;;  %v3782_v41 = vld [vmem:[%s7191_s1 + $0x948] sm:$0xff]  ;;  %v3784_v42 = vld [vmem:[%s7191_s1 + $0x958] sm:$0xff] }
  0xae   : > { %1302 = vmatprep.subr.mxu0 %v3694_v60  ;;  %1415 = vmatprep.subr.mxu1 %v3696_v44  ;;  %v3778_v60 = vld [vmem:[%s7191_s1 + $0x928] sm:$0xff]  ;;  %v3780_v44 = vld [vmem:[%s7191_s1 + $0x938] sm:$0xff] }
  0xaf   : > { %1057 = vmatprep.mubr.f32.mxu0 %v7195_v10  ;;  %1170 = vmatprep.mubr.f32.mxu1 %v7195_v10 }
  0xb0   : > { %1303 = vmatpush1.msra.mxu0 %v3693_v14  ;;  %1416 = vmatpush1.msra.mxu1 %v3695_v15  ;;  %v3777_v14 = vld [vmem:[%s7191_s1 + $0x920] sm:$0xff]  ;;  %v3779_v15 = vld [vmem:[%s7191_s1 + $0x930] sm:$0xff] }
  0xb1   : > { %1058 = vmatmul.mubr.f32.gmra.mxu0 %v5071_v45  ;;  %1171 = vmatmul.mubr.f32.gmra.mxu1 %v5071_v45 }
  0xb2   : > { %1304 = vmatprep.subr.mxu0 %v3690_v50  ;;  %1417 = vmatprep.subr.mxu1 %v3692_v52  ;;  %v4078_v50 = vld [vmem:[%s4274_s7 + $0x40] sm:$0xff]  ;;  %v3774_v52 = vld [vmem:[%s7191_s1 + $0x908] sm:$0xff] }
  0xb3   : > { %1305 = vmatpush1.msra.mxu0 %v3689_v53  ;;  %1418 = vmatpush1.msra.mxu1 %v3691_v54  ;;  %v3776_v53 = vld [vmem:[%s7191_s1 + $0x918] sm:$0xff]  ;;  %v3773_v54 = vld [vmem:[%s7191_s1 + $0x900] sm:$0xff] }
  0xb4   : > { %1306 = vmatprep.subr.mxu0 %v3686_v21  ;;  %1419 = vmatprep.subr.mxu1 %v3688_v22  ;;  %v3772_v21 = vld [vmem:[%s7191_s1 + $0x8f8] sm:$0xff]  ;;  %v3769_v22 = vld [vmem:[%s7191_s1 + $0x8e0] sm:$0xff] }
  0xb5   : > { %1063 = vmatprep.mubr.f32.mxu0 %v7195_v10  ;;  %1176 = vmatprep.mubr.f32.mxu1 %v7195_v10 }
  0xb6   : > { %1307 = vmatpush1.msra.mxu0 %v3685_v30  ;;  %1420 = vmatpush1.msra.mxu1 %v3687_v31  ;;  %v3771_v30 = vld [vmem:[%s7191_s1 + $0x8f0] sm:$0xff] }
  0xb7   : > { %1064 = vmatmul.mubr.f32.gmra.mxu0 %v5104_v58  ;;  %1177 = vmatmul.mubr.f32.gmra.mxu1 %v5104_v58  ;;  %v4079_v31 = vld [vmem:[%s4274_s7 + $0x50] sm:$0xff] }
  0xb8   : > { %1308 = vmatprep.subr.mxu0 %v3682_v59  ;;  %1421 = vmatprep.subr.mxu1 %v3684_v61  ;;  %v3766_v59 = vld [vmem:[%s7191_s1 + $0x8c8] sm:$0xff]  ;;  %v3768_v61 = vld [vmem:[%s7191_s1 + $0x8d8] sm:$0xff] }
  0xb9   : > { %1309 = vmatpush1.msra.mxu0 %v3681_v1  ;;  %1422 = vmatpush1.msra.mxu1 %v3683_v2  ;;  %v3765_v1 = vld [vmem:[%s7191_s1 + $0x8c0] sm:$0xff]  ;;  %v3767_v2 = vld [vmem:[%s7191_s1 + $0x8d0] sm:$0xff] }
  0xba   : > { %1310 = vmatprep.subr.mxu0 %v3678_v3  ;;  %1423 = vmatprep.subr.mxu1 %v3680_v4  ;;  %v3762_v3 = vld [vmem:[%s7191_s1 + $0x8a8] sm:$0xff]  ;;  %v3764_v4 = vld [vmem:[%s7191_s1 + $0x8b8] sm:$0xff] }
  0xbb   : > { %1311 = vmatpush1.msra.mxu0 %v3677_v5  ;;  %1344 = vmatprep.mubr.f32.mxu0 %v7195_v10  ;;  %v3761_v5 = vld [vmem:[%s7191_s1 + $0x8a0] sm:$0xff] }
  0xbc   : > { %1424 = vmatpush1.msra.mxu1 %v3679_v34  ;;  %1457 = vmatprep.mubr.f32.mxu1 %v7195_v10  ;;  %v3763_v34 = vld [vmem:[%s7191_s1 + $0x8b0] sm:$0xff] }
  0xbd   : > { %1345 = vmatmul.mubr.f32.vlgmr.msra.gmra.mxu0 %v4075_v12  ;;  %1458 = vmatmul.mubr.f32.vlgmr.msra.gmra.mxu1 %v4075_v12  ;;  %v3759_v12 = vld [vmem:[%s7191_s1 + $0x890] sm:$0xff] }
  0xbe   : > { %1609 = vmatprep.subr.mxu0 %v3802_v35  ;;  %1722 = vmatprep.subr.mxu1 %v3804_v6  ;;  %v4080_v35 = vld [vmem:[%s4274_s7 + $0x60] sm:$0xff]  ;;  %v3758_v6 = vld [vmem:[%s7191_s1 + $0x888] sm:$0xff] }
  0xbf   : > { %1610 = vmatpush1.msra.mxu0 %v3801_v9  ;;  %1723 = vmatpush1.msra.mxu1 %v3803_v11  ;;  %v3760_v9 = vld [vmem:[%s7191_s1 + $0x898] sm:$0xff]  ;;  %v3757_v11 = vld [vmem:[%s7191_s1 + $0x880] sm:$0xff] }
  0xc0   : > { %1611 = vmatprep.subr.mxu0 %v3798_v13  ;;  %1724 = vmatprep.subr.mxu1 %v3800_v17  ;;  %v3754_v13 = vld [vmem:[%s7191_s1 + $0x868] sm:$0xff]  ;;  %v3756_v17 = vld [vmem:[%s7191_s1 + $0x878] sm:$0xff] }
  0xc1   : > { %1350 = vmatprep.mubr.f32.mxu0 %v7195_v10  ;;  %1463 = vmatprep.mubr.f32.mxu1 %v7195_v10 }
  0xc2   : > { %1612 = vmatpush1.msra.mxu0 %v3797_v18  ;;  %1725 = vmatpush1.msra.mxu1 %v3799_v19  ;;  %v3753_v18 = vld [vmem:[%s7191_s1 + $0x860] sm:$0xff]  ;;  %v3755_v19 = vld [vmem:[%s7191_s1 + $0x870] sm:$0xff] }
  0xc3   : > { %1351 = vmatmul.mubr.f32.gmra.mxu0 %v4076_v26  ;;  %1464 = vmatmul.mubr.f32.gmra.mxu1 %v4076_v26  ;;  %v3751_v26 = vld [vmem:[%s7191_s1 + $0x850] sm:$0xff] }
  0xc4   : > { %1613 = vmatprep.subr.mxu0 %v3794_v47  ;;  %1726 = vmatprep.subr.mxu1 %v3796_v48  ;;  %v4081_v47 = vld [vmem:[%s4274_s7 + $0x70] sm:$0xff]  ;;  %v3750_v48 = vld [vmem:[%s7191_s1 + $0x848] sm:$0xff] }
  0xc5   : > { %1614 = vmatpush1.msra.mxu0 %v3793_v24  ;;  %1727 = vmatpush1.msra.mxu1 %v3795_v25  ;;  %v3752_v24 = vld [vmem:[%s7191_s1 + $0x858] sm:$0xff]  ;;  %v3749_v25 = vld [vmem:[%s7191_s1 + $0x840] sm:$0xff] }
  0xc6   : > { %1615 = vmatprep.subr.mxu0 %v3790_v27  ;;  %1728 = vmatprep.subr.mxu1 %v3792_v28  ;;  %v5324_v27 = vld [vmem:[%s4274_s7 + $0x80] sm:$0xff]  ;;  %v3746_v28 = vld [vmem:[%s7191_s1 + $0x828] sm:$0xff] }
  0xc7   : > { %1356 = vmatprep.mubr.f32.mxu0 %v7195_v10  ;;  %1469 = vmatprep.mubr.f32.mxu1 %v7195_v10 }
  0xc8   : > { %1616 = vmatpush1.msra.mxu0 %v3789_v29  ;;  %1729 = vmatpush1.msra.mxu1 %v3791_v33  ;;  %v3748_v29 = vld [vmem:[%s7191_s1 + $0x838] sm:$0xff]  ;;  %v3745_v33 = vld [vmem:[%s7191_s1 + $0x820] sm:$0xff] }
  0xc9   : > { %1357 = vmatmul.mubr.f32.gmra.mxu0 %v4077_v40  ;;  %1470 = vmatmul.mubr.f32.gmra.mxu1 %v4077_v40  ;;  %v3743_v40 = vld [vmem:[%s7191_s1 + $0x810] sm:$0xff] }
  0xca   : > { %1617 = vmatprep.subr.mxu0 %v3786_v37  ;;  %1730 = vmatprep.subr.mxu1 %v3788_v62  ;;  %v3747_v37 = vld [vmem:[%s7191_s1 + $0x830] sm:$0xff]  ;;  %v3742_v62 = vld [vmem:[%s7191_s1 + $0x808] sm:$0xff] }
  0xcb   : > { %1618 = vmatpush1.msra.mxu0 %v3785_v63  ;;  %1731 = vmatpush1.msra.mxu1 %v3787_v39  ;;  %v3744_v63 = vld [vmem:[%s7191_s1 + $0x818] sm:$0xff]  ;;  %v3741_v39 = vld [vmem:[%s7191_s1 + $0x800] sm:$0xff] }
  0xcc   : > { %1619 = vmatprep.subr.mxu0 %v3782_v41  ;;  %1732 = vmatprep.subr.mxu1 %v3784_v42  ;;  %v3866_v41 = vld [vmem:[%s7191_s1 + $0xbe8] sm:$0xff]  ;;  %v3868_v42 = vld [vmem:[%s7191_s1 + $0xbf8] sm:$0xff] }
  0xcd   : > { %1362 = vmatprep.mubr.f32.mxu0 %v7195_v10  ;;  %1475 = vmatprep.mubr.f32.mxu1 %v7195_v10 }
  0xce   : > { %1620 = vmatpush1.msra.mxu0 %v3781_v43  ;;  %1733 = vmatpush1.msra.mxu1 %v3783_v7  ;;  %v3865_v43 = vld [vmem:[%s7191_s1 + $0xbe0] sm:$0xff]  ;;  %v3867_v7 = vld [vmem:[%s7191_s1 + $0xbf0] sm:$0xff] }
  0xcf   : > { %1363 = vmatmul.mubr.f32.gmra.mxu0 %v4078_v50  ;;  %1476 = vmatmul.mubr.f32.gmra.mxu1 %v4078_v50  ;;  %v3863_v50 = vld [vmem:[%s7191_s1 + $0xbd0] sm:$0xff] }
  0xd0   : > { %1621 = vmatprep.subr.mxu0 %v3778_v60  ;;  %1734 = vmatprep.subr.mxu1 %v3780_v44  ;;  %v3862_v60 = vld [vmem:[%s7191_s1 + $0xbc8] sm:$0xff]  ;;  %v3864_v44 = vld [vmem:[%s7191_s1 + $0xbd8] sm:$0xff] }
  0xd1   : > { %1622 = vmatpush1.msra.mxu0 %v3777_v14  ;;  %1735 = vmatpush1.msra.mxu1 %v3779_v15 }
  0xd2   : > { %1623 = vmatprep.subr.mxu0 %v3774_v52  ;;  %1736 = vmatprep.subr.mxu1 %v3776_v53 }
  0xd3   : > { %1368 = vmatprep.mubr.f32.mxu0 %v7195_v10  ;;  %1481 = vmatprep.mubr.f32.mxu1 %v7195_v10 }
  0xd4   : > { %1624 = vmatpush1.msra.mxu0 %v3773_v54  ;;  %1737 = vmatpush1.msra.mxu1 %v3775_v55  ;;  %v3858_v54 = vld [vmem:[%s7191_s1 + $0xba8] sm:$0xff]  ;;  %v3860_v55 = vld [vmem:[%s7191_s1 + $0xbb8] sm:$0xff] }
  0xd5   : > { %1369 = vmatmul.mubr.f32.gmra.mxu0 %v4079_v31  ;;  %1482 = vmatmul.mubr.f32.gmra.mxu1 %v4079_v31 }
  0xd6   : > { %1625 = vmatprep.subr.mxu0 %v3770_v56  ;;  %1738 = vmatprep.subr.mxu1 %v3772_v21  ;;  %v3857_v56 = vld [vmem:[%s7191_s1 + $0xba0] sm:$0xff]  ;;  %v3859_v21 = vld [vmem:[%s7191_s1 + $0xbb0] sm:$0xff] }
  0xd7   : > { %1626 = vmatpush1.msra.mxu0 %v3769_v22  ;;  %1739 = vmatpush1.msra.mxu1 %v3771_v30  ;;  %v3854_v22 = vld [vmem:[%s7191_s1 + $0xb88] sm:$0xff]  ;;  %v3856_v30 = vld [vmem:[%s7191_s1 + $0xb98] sm:$0xff] }
  0xd8   : > { %1627 = vmatprep.subr.mxu0 %v3766_v59  ;;  %1740 = vmatprep.subr.mxu1 %v3768_v61  ;;  %v3853_v61 = vld [vmem:[%s7191_s1 + $0xb80] sm:$0xff] }
  0xd9   : > { %1374 = vmatprep.mubr.f32.mxu0 %v7195_v10  ;;  %1487 = vmatprep.mubr.f32.mxu1 %v7195_v10 }
  0xda   : > { %1628 = vmatpush1.msra.mxu0 %v3765_v1  ;;  %1741 = vmatpush1.msra.mxu1 %v3767_v2  ;;  %v3855_v1 = vld [vmem:[%s7191_s1 + $0xb90] sm:$0xff] }
  0xdb   : > { %1375 = vmatmul.mubr.f32.gmra.mxu0 %v4080_v35  ;;  %1488 = vmatmul.mubr.f32.gmra.mxu1 %v4080_v35  ;;  %v3851_v35 = vld [vmem:[%s7191_s1 + $0xb70] sm:$0xff] }
  0xdc   : > { %1629 = vmatprep.subr.mxu0 %v3762_v3  ;;  %1742 = vmatprep.subr.mxu1 %v3764_v4  ;;  %v3850_v4 = vld [vmem:[%s7191_s1 + $0xb68] sm:$0xff] }
  0xdd   : > { %1630 = vmatpush1.msra.mxu0 %v3761_v5  ;;  %1743 = vmatpush1.msra.mxu1 %v3763_v34  ;;  %v3852_v5 = vld [vmem:[%s7191_s1 + $0xb78] sm:$0xff]  ;;  %v3849_v34 = vld [vmem:[%s7191_s1 + $0xb60] sm:$0xff] }
  0xde   : > { %1631 = vmatprep.subr.mxu0 %v3758_v6  ;;  %1744 = vmatprep.subr.mxu1 %v3760_v9  ;;  %v3846_v6 = vld [vmem:[%s7191_s1 + $0xb48] sm:$0xff]  ;;  %v3848_v9 = vld [vmem:[%s7191_s1 + $0xb58] sm:$0xff] }
  0xdf   : > { %1380 = vmatprep.mubr.f32.mxu0 %v7195_v10  ;;  %1493 = vmatprep.mubr.f32.mxu1 %v7195_v10 }
  0xe0   : > { %1632 = vmatpush1.msra.mxu0 %v3757_v11  ;;  %1745 = vmatpush1.msra.mxu1 %v3759_v12 }
  0xe1   : > { %1381 = vmatmul.mubr.f32.gmra.mxu0 %v4081_v47  ;;  %1494 = vmatmul.mubr.f32.gmra.mxu1 %v4081_v47  ;;  %v3842_v47 = vld [vmem:[%s7191_s1 + $0xb28] sm:$0xff] }
  0xe2   : > { %1633 = vmatprep.subr.mxu0 %v3754_v13  ;;  %1746 = vmatprep.subr.mxu1 %v3756_v17  ;;  %v3845_v13 = vld [vmem:[%s7191_s1 + $0xb40] sm:$0xff]  ;;  %v3847_v17 = vld [vmem:[%s7191_s1 + $0xb50] sm:$0xff] }
  0xe3   : > { %1634 = vmatpush1.msra.mxu0 %v3753_v18  ;;  %1747 = vmatpush1.msra.mxu1 %v3755_v19 }
  0xe4   : > { %1635 = vmatprep.subr.mxu0 %v3750_v48  ;;  %1748 = vmatprep.subr.mxu1 %v3752_v24  ;;  %v3844_v48 = vld [vmem:[%s7191_s1 + $0xb38] sm:$0xff]  ;;  %v3841_v24 = vld [vmem:[%s7191_s1 + $0xb20] sm:$0xff] }
  0xe5   : > { %1386 = vmatprep.mubr.f32.mxu0 %v7195_v10  ;;  %1499 = vmatprep.mubr.f32.mxu1 %v7195_v10 }
  0xe6   : > { %1636 = vmatpush1.msra.mxu0 %v3749_v25  ;;  %1749 = vmatpush1.msra.mxu1 %v3751_v26  ;;  %v3843_v25 = vld [vmem:[%s7191_s1 + $0xb30] sm:$0xff]  ;;  %v3838_v26 = vld [vmem:[%s7191_s1 + $0xb08] sm:$0xff] }
  0xe7   : > { %1387 = vmatmul.mubr.f32.gmra.mxu0 %v5324_v27  ;;  %1500 = vmatmul.mubr.f32.gmra.mxu1 %v5324_v27 }
  0xe8   : > { %1637 = vmatprep.subr.mxu0 %v3746_v28  ;;  %1750 = vmatprep.subr.mxu1 %v3748_v29  ;;  %v3840_v28 = vld [vmem:[%s7191_s1 + $0xb18] sm:$0xff] }
  0xe9   : > { %1638 = vmatpush1.msra.mxu0 %v3745_v33  ;;  %1751 = vmatpush1.msra.mxu1 %v3747_v37  ;;  %v3837_v37 = vld [vmem:[%s7191_s1 + $0xb00] sm:$0xff] }
  0xea   : > { %1639 = vmatprep.subr.mxu0 %v3742_v62  ;;  %1752 = vmatprep.subr.mxu1 %v3744_v63  ;;  %v3839_v62 = vld [vmem:[%s7191_s1 + $0xb10] sm:$0xff] }
  0xeb   : > { %1640 = vmatpush1.msra.mxu0 %v3741_v39  ;;  %1673 = vmatprep.mubr.f32.mxu0 %v7195_v10 }
  0xec   : > { %1753 = vmatpush1.msra.mxu1 %v3743_v40  ;;  %1786 = vmatprep.mubr.f32.mxu1 %v7195_v10  ;;  %v3834_v40 = vld [vmem:[%s7191_s1 + $0xae8] sm:$0xff] }
  0xed   : > { %1674 = vmatmul.mubr.f32.vlgmr.msra.gmra.mxu0 %v4393_v23  ;;  %1787 = vmatmul.mubr.f32.vlgmr.msra.gmra.mxu1 %v4393_v23  ;;  %v5376_v14 = vpop.f32.mrf.mxu0  ;;  %v5378_v15 = vpop.f32.mrf.mxu1  ;;  %v3861_v23 = vld [vmem:[%s7191_s1 + $0xbc0] sm:$0xff] }
  0xee   : > { %1936 = vmatprep.subr.mxu0 %v3866_v41  ;;  %2049 = vmatprep.subr.mxu1 %v3868_v42  ;;  %v3836_v41 = vld [vmem:[%s7191_s1 + $0xaf8] sm:$0xff]  ;;  %v3833_v42 = vld [vmem:[%s7191_s1 + $0xae0] sm:$0xff] }
  0xef   : > { %1937 = vmatpush1.msra.mxu0 %v3865_v43  ;;  %2050 = vmatpush1.msra.mxu1 %v3867_v7  ;;  %v5386_v52 = vpop.f32.mrf.mxu0  ;;  %v5388_v53 = vpop.f32.mrf.mxu1  ;;  %v3835_v43 = vld [vmem:[%s7191_s1 + $0xaf0] sm:$0xff]  ;;  %v3830_v7 = vld [vmem:[%s7191_s1 + $0xac8] sm:$0xff] }
  0xf0   : > { %1938 = vmatprep.subr.mxu0 %v3862_v60  ;;  %2051 = vmatprep.subr.mxu1 %v3864_v44  ;;  %v3832_v60 = vld [vmem:[%s7191_s1 + $0xad8] sm:$0xff] }
  0xf1   : > { %1679 = vmatprep.mubr.f32.mxu0 %v7195_v10  ;;  %1792 = vmatprep.mubr.f32.mxu1 %v7195_v10 }
  0xf2   : > { %1939 = vmatpush1.msra.mxu0 %v3861_v23  ;;  %2052 = vmatpush1.msra.mxu1 %v3863_v50  ;;  %v3829_v50 = vld [vmem:[%s7191_s1 + $0xac0] sm:$0xff] }
  0xf3   : > { %1680 = vmatmul.mubr.f32.gmra.mxu0 %v4432_v36  ;;  %1793 = vmatmul.mubr.f32.gmra.mxu1 %v4432_v36  ;;  %v5412_v31 = vpop.f32.mrf.mxu0  ;;  %v5414_v59 = vpop.f32.mrf.mxu1 }
  0xf4   : > { %1940 = vmatprep.subr.mxu0 %v3858_v54  ;;  %2053 = vmatprep.subr.mxu1 %v3860_v55  ;;  %v3831_v54 = vld [vmem:[%s7191_s1 + $0xad0] sm:$0xff] }
  0xf5   : > { %1941 = vmatpush1.msra.mxu0 %v3857_v56  ;;  %2054 = vmatpush1.msra.mxu1 %v3859_v21  ;;  %v5422_v2 = vpop.f32.mrf.mxu0  ;;  %v5424_v3 = vpop.f32.mrf.mxu1  ;;  %v3826_v21 = vld [vmem:[%s7191_s1 + $0xaa8] sm:$0xff] }
  0xf6   : > { %1942 = vmatprep.subr.mxu0 %v3854_v22  ;;  %2055 = vmatprep.subr.mxu1 %v3856_v30  ;;  %v3828_v22 = vld [vmem:[%s7191_s1 + $0xab8] sm:$0xff]  ;;  %v3825_v30 = vld [vmem:[%s7191_s1 + $0xaa0] sm:$0xff] }
  0xf7   : > { %1685 = vmatprep.mubr.f32.mxu0 %v7195_v10  ;;  %1798 = vmatprep.mubr.f32.mxu1 %v7195_v10 }
  0xf8   : > { %1943 = vmatpush1.msra.mxu0 %v3853_v61  ;;  %2056 = vmatpush1.msra.mxu1 %v3855_v1  ;;  %v3827_v61 = vld [vmem:[%s7191_s1 + $0xab0] sm:$0xff]  ;;  %v3822_v1 = vld [vmem:[%s7191_s1 + $0xa88] sm:$0xff] }
  0xf9   : > { %1686 = vmatmul.mubr.f32.gmra.mxu0 %v4471_v49  ;;  %1799 = vmatmul.mubr.f32.gmra.mxu1 %v4471_v49  ;;  %v5448_v11 = vpop.f32.mrf.mxu0  ;;  %v5450_v12 = vpop.f32.mrf.mxu1 }
  0xfa   : > { %1944 = vmatprep.subr.mxu0 %v3850_v4  ;;  %2057 = vmatprep.subr.mxu1 %v3852_v5  ;;  %v3824_v4 = vld [vmem:[%s7191_s1 + $0xa98] sm:$0xff] }
  0xfb   : > { %1945 = vmatpush1.msra.mxu0 %v3849_v34  ;;  %2058 = vmatpush1.msra.mxu1 %v3851_v35  ;;  %v5458_v18 = vpop.f32.mrf.mxu0  ;;  %v5460_v19 = vpop.f32.mrf.mxu1  ;;  %v3821_v35 = vld [vmem:[%s7191_s1 + $0xa80] sm:$0xff] }
  0xfc   : > { %1946 = vmatprep.subr.mxu0 %v3846_v6  ;;  %2059 = vmatprep.subr.mxu1 %v3848_v9  ;;  %v3823_v6 = vld [vmem:[%s7191_s1 + $0xa90] sm:$0xff]  ;;  %v5567_v9 = vld [vmem:[%s4274_s7 + $0x88] sm:$0x3] }
  0xfd   : > { %1691 = vmatprep.mubr.f32.mxu0 %v7195_v10  ;;  %1804 = vmatprep.mubr.f32.mxu1 %v7195_v10 }
  0xfe   : > { %1947 = vmatpush1.msra.mxu0 %v3845_v13  ;;  %2060 = vmatpush1.msra.mxu1 %v3847_v17 }
  0xff   : > { %1692 = vmatmul.mubr.f32.gmra.mxu0 %v4510_v0  ;;  %1805 = vmatmul.mubr.f32.gmra.mxu1 %v4510_v0  ;;  %v5484_v29 = vpop.f32.mrf.mxu0  ;;  %v5486_v33 = vpop.f32.mrf.mxu1 }
 0x100   : > { %1948 = vmatprep.subr.mxu0 %v3842_v47  ;;  %2061 = vmatprep.subr.mxu1 %v3844_v48  ;;  %v3818_v47 = vld [vmem:[%s7191_s1 + $0xa68] sm:$0xff]  ;;  %v3820_v48 = vld [vmem:[%s7191_s1 + $0xa78] sm:$0xff] }
 0x101   : > { %1949 = vmatpush1.msra.mxu0 %v3841_v24  ;;  %2062 = vmatpush1.msra.mxu1 %v3843_v25  ;;  %v5494_v63 = vpop.f32.mrf.mxu0  ;;  %v5496_v39 = vpop.f32.mrf.mxu1  ;;  %v3817_v24 = vld [vmem:[%s7191_s1 + $0xa60] sm:$0xff]  ;;  %v3819_v25 = vld [vmem:[%s7191_s1 + $0xa70] sm:$0xff] }
 0x102   : > { %1950 = vmatprep.subr.mxu0 %v3838_v26  ;;  %2063 = vmatprep.subr.mxu1 %v3840_v28  ;;  %v1540_v26 = vrot.slane %v5324_v27, 1  ;;  %v1541_v28 = vrot.slane %v5567_v9, 1 }
 0x103   : > { %1697 = vmatprep.mubr.f32.mxu0 %v7195_v10  ;;  %1810 = vmatprep.mubr.f32.mxu1 %v7195_v10 }
 0x104   : > { %1951 = vmatpush1.msra.mxu0 %v3837_v37  ;;  %2064 = vmatpush1.msra.mxu1 %v3839_v62  ;;  %v3814_v37 = vld [vmem:[%s7191_s1 + $0xa48] sm:$0xff]  ;;  %v3816_v62 = vld [vmem:[%s7191_s1 + $0xa58] sm:$0xff] }
 0x105   : > { %1698 = vmatmul.mubr.f32.gmra.mxu0 %v4549_v16  ;;  %1811 = vmatmul.mubr.f32.gmra.mxu1 %v4549_v16  ;;  %v5520_v44 = vpop.f32.mrf.mxu0  ;;  %v5522_v23 = vpop.f32.mrf.mxu1 }
 0x106   : > { %1952 = vmatprep.subr.mxu0 %v3834_v40  ;;  %2065 = vmatprep.subr.mxu1 %v3836_v41 }
 0x107   : > { %1953 = vmatpush1.msra.mxu0 %v3833_v42  ;;  %2066 = vmatpush1.msra.mxu1 %v3835_v43  ;;  %v5530_v55 = vpop.f32.mrf.mxu0  ;;  %v5532_v56 = vpop.f32.mrf.mxu1  ;;  %v3813_v42 = vld [vmem:[%s7191_s1 + $0xa40] sm:$0xff]  ;;  %v3815_v43 = vld [vmem:[%s7191_s1 + $0xa50] sm:$0xff] }
 0x108   : > { %1954 = vmatprep.subr.mxu0 %v3830_v7  ;;  %2067 = vmatprep.subr.mxu1 %v3832_v60 }
 0x109   : > { %1703 = vmatprep.mubr.f32.mxu0 %v7195_v10  ;;  %1816 = vmatprep.mubr.f32.mxu1 %v7195_v10 }
 0x10a   : > { %1955 = vmatpush1.msra.mxu0 %v3829_v50  ;;  %2068 = vmatpush1.msra.mxu1 %v3831_v54  ;;  %v5612_v50 = vsel %vm309_vm1, %v1540_v26, %v1541_v28  ;;  %v3810_v54 = vld [vmem:[%s7191_s1 + $0xa28] sm:$0xff]  ;;  %v3932_v26 = vld [vmem:[%s7191_s1 + $0xdf8] sm:$0xff]  ;;  %v3929_v28 = vld [vmem:[%s7191_s1 + $0xde0] sm:$0xff] }
 0x10b   : > { %1704 = vmatmul.mubr.f32.gmra.mxu0 %v4588_v32  ;;  %1817 = vmatmul.mubr.f32.gmra.mxu1 %v4588_v32  ;;  %v5556_v5 = vpop.f32.mrf.mxu0  ;;  %v5558_v34 = vpop.f32.mrf.mxu1  ;;  %7228 = vst [vmem:[#allocation13_spill] sm:$0xff] %v5612_v50 }
 0x10c   : > { %1956 = vmatprep.subr.mxu0 %v3826_v21  ;;  %2069 = vmatprep.subr.mxu1 %v3828_v22  ;;  %v3812_v21 = vld [vmem:[%s7191_s1 + $0xa38] sm:$0xff]  ;;  %v3809_v22 = vld [vmem:[%s7191_s1 + $0xa20] sm:$0xff] }
 0x10d   : > { %1957 = vmatpush1.msra.mxu0 %v3825_v30  ;;  %2070 = vmatpush1.msra.mxu1 %v3827_v61  ;;  %v5569_v13 = vpop.f32.mrf.mxu0  ;;  %v5571_v17 = vpop.f32.mrf.mxu1  ;;  %v3811_v30 = vld [vmem:[%s7191_s1 + $0xa30] sm:$0xff]  ;;  %v3806_v61 = vld [vmem:[%s7191_s1 + $0xa08] sm:$0xff] }
 0x10e   : > { %7224 = vst [vmem:[#allocation9_spill] sm:$0xff] %v5569_v13  ;;  %7225 = vst [vmem:[#allocation10_spill] sm:$0xff] %v5571_v17  ;;  %1958 = vmatprep.subr.mxu0 %v3822_v1  ;;  %2071 = vmatprep.subr.mxu1 %v3824_v4  ;;  %v3808_v1 = vld [vmem:[%s7191_s1 + $0xa18] sm:$0xff]  ;;  %v3959_v17 = vld [vmem:[%s7191_s1 + $0xed0] sm:$0xff] }
 0x10f   : > { %1709 = vmatprep.mubr.f32.mxu0 %v7195_v10  ;;  %1822 = vmatprep.mubr.f32.mxu1 %v7195_v10  ;;  %v3951_v13 = vld [vmem:[%s7191_s1 + $0xe90] sm:$0xff] }
 0x110   : > { %1959 = vmatpush1.msra.mxu0 %v3821_v35  ;;  %2072 = vmatpush1.msra.mxu1 %v3823_v6  ;;  %v3805_v6 = vld [vmem:[%s7191_s1 + $0xa00] sm:$0xff] }
 0x111   : > { %1710 = vmatmul.mubr.f32.gmra.mxu0 %v4621_v46  ;;  %1823 = vmatmul.mubr.f32.gmra.mxu1 %v4621_v46  ;;  %v5597_v40 = vpop.f32.mrf.mxu0  ;;  %v5599_v41 = vpop.f32.mrf.mxu1  ;;  %v3967_v46 = vld [vmem:[%s7191_s1 + $0xf10] sm:$0xff] }
 0x112   : > { %1960 = vmatprep.subr.mxu0 %v3818_v47  ;;  %2073 = vmatprep.subr.mxu1 %v3820_v48  ;;  %v3807_v47 = vld [vmem:[%s7191_s1 + $0xa10] sm:$0xff] }
 0x113   : > { %1961 = vmatpush1.msra.mxu0 %v3817_v24  ;;  %2074 = vmatpush1.msra.mxu1 %v3819_v25  ;;  %v5607_v7 = vpop.f32.mrf.mxu0  ;;  %v5609_v60 = vpop.f32.mrf.mxu1  ;;  %v3930_v25 = vld [vmem:[%s7191_s1 + $0xde8] sm:$0xff] }
 0x114   : > { %7226 = vst [vmem:[#allocation11_spill] sm:$0xff] %v5607_v7  ;;  %7227 = vst [vmem:[#allocation12_spill] sm:$0xff] %v5609_v60  ;;  %1962 = vmatprep.subr.mxu0 %v3814_v37  ;;  %2075 = vmatprep.subr.mxu1 %v3816_v62  ;;  %v3931_v37 = vld [vmem:[%s7191_s1 + $0xdf0] sm:$0xff]  ;;  %v3926_v62 = vld [vmem:[%s7191_s1 + $0xdc8] sm:$0xff] }
 0x115   : > { %1715 = vmatprep.mubr.f32.mxu0 %v7195_v10  ;;  %1828 = vmatprep.mubr.f32.mxu1 %v7195_v10 }
 0x116   : > { %1963 = vmatpush1.msra.mxu0 %v3813_v42  ;;  %2076 = vmatpush1.msra.mxu1 %v3815_v43  ;;  %v3928_v42 = vld [vmem:[%s7191_s1 + $0xdd8] sm:$0xff] }
 0x117   : > { %1716 = vmatmul.mubr.f32.gmra.mxu0 %v5612_v50  ;;  %1829 = vmatmul.mubr.f32.gmra.mxu1 %v5612_v50  ;;  %v5636_v4 = vpop.f32.mrf.mxu0  ;;  %v5638_v35 = vpop.f32.mrf.mxu1 }
 0x118   : > { %1964 = vmatprep.subr.mxu0 %v3810_v54  ;;  %2077 = vmatprep.subr.mxu1 %v3812_v21 }
 0x119   : > { %1965 = vmatpush1.msra.mxu0 %v3809_v22  ;;  %2078 = vmatpush1.msra.mxu1 %v3811_v30  ;;  %v5646_v48 = vpop.f32.mrf.mxu0  ;;  %v5648_v24 = vpop.f32.mrf.mxu1  ;;  %v3927_v30 = vld [vmem:[%s7191_s1 + $0xdd0] sm:$0xff] }
 0x11a   : > { %7229 = vst [vmem:[#allocation14_spill] sm:$0xff] %v5646_v48  ;;  %7230 = vst [vmem:[#allocation15_spill] sm:$0xff] %v5648_v24  ;;  %1966 = vmatprep.subr.mxu0 %v3806_v61  ;;  %2079 = vmatprep.subr.mxu1 %v3808_v1 }
 0x11b   : > { %1967 = vmatpush1.msra.mxu0 %v3805_v6  ;;  %2000 = vmatprep.mubr.f32.mxu0 %v7195_v10  ;;  %v3921_v6 = vld [vmem:[%s7191_s1 + $0xda0] sm:$0xff] }
 0x11c   : > { %2080 = vmatpush1.msra.mxu1 %v3807_v47  ;;  %2113 = vmatprep.mubr.f32.mxu1 %v7195_v10  ;;  %v3923_v47 = vld [vmem:[%s7191_s1 + $0xdb0] sm:$0xff] }
 0x11d   : > { %2001 = vmatmul.mubr.f32.vlgmr.msra.gmra.mxu0 %v4906_v8  ;;  %2114 = vmatmul.mubr.f32.vlgmr.msra.gmra.mxu1 %v4906_v8  ;;  %v699_v43 = vpop.f32.mrf.mxu0  ;;  %v812_v54 = vpop.f32.mrf.mxu1  ;;  %v3925_v8 = vld [vmem:[%s7191_s1 + $0xdc0] sm:$0xff] }
 0x11e   : > { %2259 = vmatprep.subr.mxu0 %v3930_v25  ;;  %2372 = vmatprep.subr.mxu1 %v3932_v26  ;;  %v5673_v21 = vadd.f32 %v699_v43, %v5376_v14  ;;  %v5676_v22 = vadd.f32 %v812_v54, %v5378_v15  ;;  %v3922_v14 = vld [vmem:[%s7191_s1 + $0xda8] sm:$0xff]  ;;  %v3924_v15 = vld [vmem:[%s7191_s1 + $0xdb8] sm:$0xff]  ;;  %v3917_v43 = vld [vmem:[%s7191_s1 + $0xd80] sm:$0xff] }
 0x11f   : > { %2260 = vmatpush1.msra.mxu0 %v3929_v28  ;;  %2373 = vmatpush1.msra.mxu1 %v3931_v37  ;;  %v5684_v61 = vpop.f32.mrf.mxu0  ;;  %v5686_v1 = vpop.f32.mrf.mxu1  ;;  %v3918_v25 = vld [vmem:[%s7191_s1 + $0xd88] sm:$0xff]  ;;  %v3920_v26 = vld [vmem:[%s7191_s1 + $0xd98] sm:$0xff]  ;;  %v3919_v54 = vld [vmem:[%s7191_s1 + $0xd90] sm:$0xff] }
 0x120   : > { %2261 = vmatprep.subr.mxu0 %v3926_v62  ;;  %2374 = vmatprep.subr.mxu1 %v3928_v42 }
 0x121   : > { %2006 = vmatprep.mubr.f32.mxu0 %v7195_v10  ;;  %2119 = vmatprep.mubr.f32.mxu1 %v7195_v10 }
 0x122   : > { %2262 = vmatpush1.msra.mxu0 %v3925_v8  ;;  %2375 = vmatpush1.msra.mxu1 %v3927_v30 }
 0x123   : > { %2007 = vmatmul.mubr.f32.gmra.mxu0 %v4939_v57  ;;  %2120 = vmatmul.mubr.f32.gmra.mxu1 %v4939_v57  ;;  %v705_v28 = vpop.f32.mrf.mxu0  ;;  %v818_v37 = vpop.f32.mrf.mxu1 }
 0x124   : > { %2263 = vmatprep.subr.mxu0 %v3922_v14  ;;  %2376 = vmatprep.subr.mxu1 %v3924_v15  ;;  %v5711_v62 = vadd.f32 %v705_v28, %v5412_v31  ;;  %v5714_v42 = vadd.f32 %v818_v37, %v5414_v59  ;;  %v3914_v31 = vld [vmem:[%s7191_s1 + $0xd68] sm:$0xff]  ;;  %v3916_v59 = vld [vmem:[%s7191_s1 + $0xd78] sm:$0xff]  ;;  %v3913_v14 = vld [vmem:[%s7191_s1 + $0xd60] sm:$0xff] }
 0x125   : > { %2264 = vmatpush1.msra.mxu0 %v3921_v6  ;;  %2377 = vmatpush1.msra.mxu1 %v3923_v47  ;;  %v5722_v8 = vpop.f32.mrf.mxu0  ;;  %v5724_v30 = vpop.f32.mrf.mxu1  ;;  %v3915_v15 = vld [vmem:[%s7191_s1 + $0xd70] sm:$0xff]  ;;  %v3910_v6 = vld [vmem:[%s7191_s1 + $0xd48] sm:$0xff]  ;;  %v3912_v47 = vld [vmem:[%s7191_s1 + $0xd58] sm:$0xff] }
 0x126   : > { %2265 = vmatprep.subr.mxu0 %v3918_v25  ;;  %2378 = vmatprep.subr.mxu1 %v3920_v26 }
 0x127   : > { %2012 = vmatprep.mubr.f32.mxu0 %v7195_v10  ;;  %2125 = vmatprep.mubr.f32.mxu1 %v7195_v10 }
 0x128   : > { %2266 = vmatpush1.msra.mxu0 %v3917_v43  ;;  %2379 = vmatpush1.msra.mxu1 %v3919_v54  ;;  %v3909_v43 = vld [vmem:[%s7191_s1 + $0xd40] sm:$0xff]  ;;  %v3911_v54 = vld [vmem:[%s7191_s1 + $0xd50] sm:$0xff] }
 0x129   : > { %2013 = vmatmul.mubr.f32.gmra.mxu0 %v4972_v51  ;;  %2126 = vmatmul.mubr.f32.gmra.mxu1 %v4972_v51  ;;  %v711_v25 = vpop.f32.mrf.mxu0  ;;  %v824_v26 = vpop.f32.mrf.mxu1  ;;  %v3903_v51 = vld [vmem:[%s7191_s1 + $0xd10] sm:$0xff] }
 0x12a   : > { %2267 = vmatprep.subr.mxu0 %v3914_v31  ;;  %2380 = vmatprep.subr.mxu1 %v3916_v59  ;;  %v5749_v28 = vadd.f32 %v711_v25, %v5448_v11  ;;  %v5752_v37 = vadd.f32 %v824_v26, %v5450_v12  ;;  %v7231_v11 = vmov 0.0   ;;  %v3906_v12 = vld [vmem:[%s7191_s1 + $0xd28] sm:$0xff]  ;;  %v3908_v59 = vld [vmem:[%s7191_s1 + $0xd38] sm:$0xff] }
 0x12b   : > { %2268 = vmatpush1.msra.mxu0 %v3913_v14  ;;  %2381 = vmatpush1.msra.mxu1 %v3915_v15  ;;  %v5760_v10 = vpop.f32.mrf.mxu0  ;;  %v5762_v31 = vpop.f32.mrf.mxu1  ;;  %v3905_v14 = vld [vmem:[%s7191_s1 + $0xd20] sm:$0xff]  ;;  %v3907_v15 = vld [vmem:[%s7191_s1 + $0xd30] sm:$0xff] }
 0x12c   : > { %2269 = vmatprep.subr.mxu0 %v3910_v6  ;;  %2382 = vmatprep.subr.mxu1 %v3912_v47  ;;  %v3902_v6 = vld [vmem:[%s7191_s1 + $0xd08] sm:$0xff]  ;;  %v3904_v47 = vld [vmem:[%s7191_s1 + $0xd18] sm:$0xff] }
 0x12d   : > { %2018 = vmatprep.mubr.f32.mxu0 %v7231_v11  ;;  %2131 = vmatprep.mubr.f32.mxu1 %v7231_v11 }
 0x12e   : > { %2270 = vmatpush1.msra.mxu0 %v3909_v43  ;;  %2383 = vmatpush1.msra.mxu1 %v3911_v54 }
 0x12f   : > { %2019 = vmatmul.mubr.f32.gmra.mxu0 %v5005_v20  ;;  %2132 = vmatmul.mubr.f32.gmra.mxu1 %v5005_v20  ;;  %v717_v25 = vpop.f32.mrf.mxu0  ;;  %v830_v26 = vpop.f32.mrf.mxu1  ;;  %v3901_v20 = vld [vmem:[%s7191_s1 + $0xd00] sm:$0xff] }
 0x130   : > { %2271 = vmatprep.subr.mxu0 %v3906_v12  ;;  %2384 = vmatprep.subr.mxu1 %v3908_v59  ;;  %v5787_v43 = vadd.f32 %v717_v25, %v5484_v29  ;;  %v5790_v54 = vadd.f32 %v830_v26, %v5486_v33  ;;  %v3898_v29 = vld [vmem:[%s7191_s1 + $0xce8] sm:$0xff]  ;;  %v3900_v33 = vld [vmem:[%s7191_s1 + $0xcf8] sm:$0xff]  ;;  %v3897_v59 = vld [vmem:[%s7191_s1 + $0xce0] sm:$0xff] }
 0x131   : > { %2272 = vmatpush1.msra.mxu0 %v3905_v14  ;;  %2385 = vmatpush1.msra.mxu1 %v3907_v15  ;;  %v5798_v57 = vpop.f32.mrf.mxu0  ;;  %v5800_v12 = vpop.f32.mrf.mxu1  ;;  %v3899_v14 = vld [vmem:[%s7191_s1 + $0xcf0] sm:$0xff]  ;;  %v3894_v15 = vld [vmem:[%s7191_s1 + $0xcc8] sm:$0xff]  ;;  %v3893_v26 = vld [vmem:[%s7191_s1 + $0xcc0] sm:$0xff] }
 0x132   : > { %2273 = vmatprep.subr.mxu0 %v3902_v6  ;;  %2386 = vmatprep.subr.mxu1 %v3904_v47 }
 0x133   : > { %2024 = vmatprep.mubr.f32.mxu0 %v7231_v11  ;;  %2137 = vmatprep.mubr.f32.mxu1 %v7231_v11 }
 0x134   : > { %2274 = vmatpush1.msra.mxu0 %v3901_v20  ;;  %2387 = vmatpush1.msra.mxu1 %v3903_v51  ;;  %v3896_v51 = vld [vmem:[%s7191_s1 + $0xcd8] sm:$0xff] }
 0x135   : > { %2025 = vmatmul.mubr.f32.gmra.mxu0 %v5038_v38  ;;  %2138 = vmatmul.mubr.f32.gmra.mxu1 %v5038_v38  ;;  %v723_v20 = vpop.f32.mrf.mxu0  ;;  %v836_v6 = vpop.f32.mrf.mxu1  ;;  %v3895_v38 = vld [vmem:[%s7191_s1 + $0xcd0] sm:$0xff] }
 0x136   : > { %2275 = vmatprep.subr.mxu0 %v3898_v29  ;;  %2388 = vmatprep.subr.mxu1 %v3900_v33  ;;  %v5825_v47 = vadd.f32 %v723_v20, %v5520_v44  ;;  %v5828_v25 = vadd.f32 %v836_v6, %v5522_v23  ;;  %v3890_v44 = vld [vmem:[%s7191_s1 + $0xca8] sm:$0xff]  ;;  %v3892_v23 = vld [vmem:[%s7191_s1 + $0xcb8] sm:$0xff]  ;;  %v3889_v33 = vld [vmem:[%s7191_s1 + $0xca0] sm:$0xff] }
 0x137   : > { %2276 = vmatpush1.msra.mxu0 %v3897_v59  ;;  %2389 = vmatpush1.msra.mxu1 %v3899_v14  ;;  %v5836_v24 = vpop.f32.mrf.mxu0  ;;  %v5838_v29 = vpop.f32.mrf.mxu1  ;;  %v3891_v59 = vld [vmem:[%s7191_s1 + $0xcb0] sm:$0xff]  ;;  %v3886_v14 = vld [vmem:[%s7191_s1 + $0xc88] sm:$0xff] }
 0x138   : > { %2277 = vmatprep.subr.mxu0 %v3894_v15  ;;  %2390 = vmatprep.subr.mxu1 %v3896_v51 }
 0x139   : > { %2030 = vmatprep.mubr.f32.mxu0 %v7231_v11  ;;  %2143 = vmatprep.mubr.f32.mxu1 %v7231_v11 }
 0x13a   : > { %2278 = vmatpush1.msra.mxu0 %v3893_v26  ;;  %2391 = vmatpush1.msra.mxu1 %v3895_v38  ;;  %v3888_v38 = vld [vmem:[%s7191_s1 + $0xc98] sm:$0xff]  ;;  %v3885_v26 = vld [vmem:[%s7191_s1 + $0xc80] sm:$0xff] }
 0x13b   : > { %2031 = vmatmul.mubr.f32.gmra.mxu0 %v5071_v45  ;;  %2144 = vmatmul.mubr.f32.gmra.mxu1 %v5071_v45  ;;  %v729_v15 = vpop.f32.mrf.mxu0  ;;  %v842_v51 = vpop.f32.mrf.mxu1  ;;  %v3887_v45 = vld [vmem:[%s7191_s1 + $0xc90] sm:$0xff] }
 0x13c   : > { %2279 = vmatprep.subr.mxu0 %v3890_v44  ;;  %2392 = vmatprep.subr.mxu1 %v3892_v23  ;;  %v5863_v20 = vadd.f32 %v729_v15, %v5556_v5  ;;  %v5866_v6 = vadd.f32 %v842_v51, %v5558_v34  ;;  %v3882_v5 = vld [vmem:[%s7191_s1 + $0xc68] sm:$0xff]  ;;  %v3884_v34 = vld [vmem:[%s7191_s1 + $0xc78] sm:$0xff]  ;;  %v3881_v23 = vld [vmem:[%s7191_s1 + $0xc60] sm:$0xff] }
 0x13d   : > { %2280 = vmatpush1.msra.mxu0 %v3889_v33  ;;  %2393 = vmatpush1.msra.mxu1 %v3891_v59  ;;  %v5874_v48 = vpop.f32.mrf.mxu0  ;;  %v5876_v44 = vpop.f32.mrf.mxu1  ;;  %v3883_v33 = vld [vmem:[%s7191_s1 + $0xc70] sm:$0xff]  ;;  %v1867_v59 = vrot.slane %v5324_v27, 2 }
 0x13e   : > { %7232 = vst [vmem:[#allocation16_spill] sm:$0xff] %v5874_v48  ;;  %7233 = vst [vmem:[#allocation17_spill] sm:$0xff] %v5876_v44  ;;  %2281 = vmatprep.subr.mxu0 %v3886_v14  ;;  %2394 = vmatprep.subr.mxu1 %v3888_v38  ;;  %v1868_v14 = vrot.slane %v5567_v9, 2  ;;  %v3880_v38 = vld [vmem:[%s7191_s1 + $0xc58] sm:$0xff] }
 0x13f   : > { %2036 = vmatprep.mubr.f32.mxu0 %v7231_v11  ;;  %2149 = vmatprep.mubr.f32.mxu1 %v7231_v11 }
 0x140   : > { %2282 = vmatpush1.msra.mxu0 %v3885_v26  ;;  %2395 = vmatpush1.msra.mxu1 %v3887_v45  ;;  %v3878_v45 = vld [vmem:[%s7191_s1 + $0xc48] sm:$0xff]  ;;  %v3877_v26 = vld [vmem:[%s7191_s1 + $0xc40] sm:$0xff] }
 0x141   : > { %2037 = vmatmul.mubr.f32.gmra.mxu0 %v5104_v58  ;;  %2150 = vmatmul.mubr.f32.gmra.mxu1 %v5104_v58  ;;  %v735_v15 = vpop.f32.mrf.mxu0  ;;  %v848_v51 = vpop.f32.mrf.mxu1  ;;  %v3879_v58 = vld [vmem:[%s7191_s1 + $0xc50] sm:$0xff] }
 0x142   : > { %2283 = vmatprep.subr.mxu0 %v3882_v5  ;;  %2396 = vmatprep.subr.mxu1 %v3884_v34  ;;  %v5903_v27 = vadd.f32 %v735_v15, %v5597_v40  ;;  %v5906_v9 = vadd.f32 %v848_v51, %v5599_v41  ;;  %v5919_v40 = vsel %vm859_vm0, %v1867_v59, %v1868_v14  ;;  %v3874_v41 = vld [vmem:[%s7191_s1 + $0xc28] sm:$0xff]  ;;  %v3876_v34 = vld [vmem:[%s7191_s1 + $0xc38] sm:$0xff] }
 0x143   : > { %2284 = vmatpush1.msra.mxu0 %v3881_v23  ;;  %2397 = vmatpush1.msra.mxu1 %v3883_v33  ;;  %v5914_v50 = vpop.f32.mrf.mxu0  ;;  %v5916_v5 = vpop.f32.mrf.mxu1  ;;  %7236 = vst [vmem:[#allocation20_spill] sm:$0xff] %v5919_v40  ;;  %v3873_v23 = vld [vmem:[%s7191_s1 + $0xc20] sm:$0xff]  ;;  %v3875_v33 = vld [vmem:[%s7191_s1 + $0xc30] sm:$0xff]  ;;  %v3870_v59 = vld [vmem:[%s7191_s1 + $0xc08] sm:$0xff] }
 0x144   : > { %7234 = vst [vmem:[#allocation18_spill] sm:$0xff] %v5914_v50  ;;  %7235 = vst [vmem:[#allocation19_spill] sm:$0xff] %v5916_v5  ;;  %2285 = vmatprep.subr.mxu0 %v3878_v45  ;;  %2398 = vmatprep.subr.mxu1 %v3880_v38  ;;  %v3869_v38 = vld [vmem:[%s7191_s1 + $0xc00] sm:$0xff]  ;;  %v3983_v5 = vld [vmem:[%s7191_s1 + $0xf90] sm:$0xff] }
 0x145   : > { %2042 = vmatprep.mubr.f32.mxu0 %v7231_v11  ;;  %2155 = vmatprep.mubr.f32.mxu1 %v7231_v11  ;;  %v3975_v50 = vld [vmem:[%s7191_s1 + $0xf50] sm:$0xff] }
 0x146   : > { %2286 = vmatpush1.msra.mxu0 %v3877_v26  ;;  %2399 = vmatpush1.msra.mxu1 %v3879_v58  ;;  %v3872_v58 = vld [vmem:[%s7191_s1 + $0xc18] sm:$0xff]  ;;  %v3871_v26 = vld [vmem:[%s7191_s1 + $0xc10] sm:$0xff] }
 0x147   : > { %2043 = vmatmul.mubr.f32.gmra.mxu0 %v5919_v40  ;;  %2156 = vmatmul.mubr.f32.gmra.mxu1 %v5919_v40  ;;  %v741_v14 = vpop.f32.mrf.mxu0  ;;  %v854_v45 = vpop.f32.mrf.mxu1 }
 0x148   : > { %2287 = vmatprep.subr.mxu0 %v3874_v41  ;;  %2400 = vmatprep.subr.mxu1 %v3876_v34  ;;  %v5947_v15 = vadd.f32 %v741_v14, %v5636_v4  ;;  %v5950_v51 = vadd.f32 %v854_v45, %v5638_v35  ;;  %v3994_v4 = vld [vmem:[%s7191_s1 + $0xfe8] sm:$0xff]  ;;  %v3996_v35 = vld [vmem:[%s7191_s1 + $0xff8] sm:$0xff]  ;;  %v3993_v34 = vld [vmem:[%s7191_s1 + $0xfe0] sm:$0xff] }
 0x149   : > { %2288 = vmatpush1.msra.mxu0 %v3873_v23  ;;  %2401 = vmatpush1.msra.mxu1 %v3875_v33  ;;  %v5955_v40 = vpop.f32.mrf.mxu0  ;;  %v5957_v41 = vpop.f32.mrf.mxu1  ;;  %v3995_v23 = vld [vmem:[%s7191_s1 + $0xff0] sm:$0xff]  ;;  %v4082_v33 = vld [vmem:[%s4274_s7 + $0x20] sm:$0xff] }
 0x14a   : > { %7237 = vst [vmem:[#allocation21_spill] sm:$0xff] %v5955_v40  ;;  %7238 = vst [vmem:[#allocation22_spill] sm:$0xff] %v5957_v41  ;;  %2289 = vmatprep.subr.mxu0 %v3870_v59  ;;  %2402 = vmatprep.subr.mxu1 %v3872_v58  ;;  %v3990_v59 = vld [vmem:[%s7191_s1 + $0xfc8] sm:$0xff]  ;;  %v3992_v58 = vld [vmem:[%s7191_s1 + $0xfd8] sm:$0xff] }
 0x14b   : > { %2290 = vmatpush1.msra.mxu0 %v3869_v38  ;;  %2323 = vmatprep.mubr.f32.mxu0 %v7231_v11  ;;  %v3991_v41 = vld [vmem:[%s7191_s1 + $0xfd0] sm:$0xff] }
 0x14c   : > { %2403 = vmatpush1.msra.mxu1 %v3871_v26  ;;  %2436 = vmatprep.mubr.f32.mxu1 %v7231_v11 }
 0x14d   : > { %2324 = vmatmul.mubr.f32.vlgmr.msra.gmra.mxu0 %v4082_v33  ;;  %2437 = vmatmul.mubr.f32.vlgmr.msra.gmra.mxu1 %v4082_v33  ;;  %v1023_v14 = vpop.f32.mrf.mxu0  ;;  %v1136_v45 = vpop.f32.mrf.mxu1  ;;  %v3989_v33 = vld [vmem:[%s7191_s1 + $0xfc0] sm:$0xff] }
 0x14e   : > { %2588 = vmatprep.subr.mxu0 %v3994_v4  ;;  %2701 = vmatprep.subr.mxu1 %v3996_v35  ;;  %v5981_v38 = vadd.f32 %v1023_v14, %v5673_v21  ;;  %v5984_v26 = vadd.f32 %v1136_v45, %v5676_v22  ;;  %v3986_v21 = vld [vmem:[%s7191_s1 + $0xfa8] sm:$0xff]  ;;  %v3988_v22 = vld [vmem:[%s7191_s1 + $0xfb8] sm:$0xff]  ;;  %v3985_v35 = vld [vmem:[%s7191_s1 + $0xfa0] sm:$0xff] }
 0x14f   : > { %2589 = vmatpush1.msra.mxu0 %v3993_v34  ;;  %2702 = vmatpush1.msra.mxu1 %v3995_v23  ;;  %v5992_v40 = vpop.f32.mrf.mxu0  ;;  %v5994_v4 = vpop.f32.mrf.mxu1  ;;  %v3987_v34 = vld [vmem:[%s7191_s1 + $0xfb0] sm:$0xff] }
 0x150   : > { %2590 = vmatprep.subr.mxu0 %v3990_v59  ;;  %2703 = vmatprep.subr.mxu1 %v3992_v58  ;;  %v4083_v23 = vld [vmem:[%s4274_s7 + $0x30] sm:$0xff]  ;;  %v3982_v59 = vld [vmem:[%s7191_s1 + $0xf88] sm:$0xff]  ;;  %v3984_v58 = vld [vmem:[%s7191_s1 + $0xf98] sm:$0xff] }
 0x151   : > { %2329 = vmatprep.mubr.f32.mxu0 %v7231_v11  ;;  %2442 = vmatprep.mubr.f32.mxu1 %v7231_v11 }
 0x152   : > { %2591 = vmatpush1.msra.mxu0 %v3989_v33  ;;  %2704 = vmatpush1.msra.mxu1 %v3991_v41 }
 0x153   : > { %2330 = vmatmul.mubr.f32.gmra.mxu0 %v4083_v23  ;;  %2443 = vmatmul.mubr.f32.gmra.mxu1 %v4083_v23  ;;  %v1029_v41 = vpop.f32.mrf.mxu0  ;;  %v1142_v14 = vpop.f32.mrf.mxu1  ;;  %v3981_v23 = vld [vmem:[%s7191_s1 + $0xf80] sm:$0xff] }
 0x154   : > { %2592 = vmatprep.subr.mxu0 %v3986_v21  ;;  %2705 = vmatprep.subr.mxu1 %v3988_v22  ;;  %v6018_v45 = vadd.f32 %v1029_v41, %v5711_v62  ;;  %v6021_v33 = vadd.f32 %v1142_v14, %v5714_v42  ;;  %v3978_v62 = vld [vmem:[%s7191_s1 + $0xf68] sm:$0xff]  ;;  %v3980_v42 = vld [vmem:[%s7191_s1 + $0xf78] sm:$0xff]  ;;  %v3977_v22 = vld [vmem:[%s7191_s1 + $0xf60] sm:$0xff] }
 0x155   : > { %2593 = vmatpush1.msra.mxu0 %v3985_v35  ;;  %2706 = vmatpush1.msra.mxu1 %v3987_v34  ;;  %v6029_v60 = vpop.f32.mrf.mxu0  ;;  %v6031_v21 = vpop.f32.mrf.mxu1  ;;  %v3979_v35 = vld [vmem:[%s7191_s1 + $0xf70] sm:$0xff]  ;;  %v4084_v34 = vld [vmem:[%s4274_s7 + $0x40] sm:$0xff] }
 0x156   : > { %2594 = vmatprep.subr.mxu0 %v3982_v59  ;;  %2707 = vmatprep.subr.mxu1 %v3984_v58  ;;  %v3974_v59 = vld [vmem:[%s7191_s1 + $0xf48] sm:$0xff]  ;;  %v3976_v58 = vld [vmem:[%s7191_s1 + $0xf58] sm:$0xff] }
 0x157   : > { %2335 = vmatprep.mubr.f32.mxu0 %v7231_v11  ;;  %2448 = vmatprep.mubr.f32.mxu1 %v7231_v11 }
 0x158   : > { %2595 = vmatpush1.msra.mxu0 %v3981_v23  ;;  %2708 = vmatpush1.msra.mxu1 %v3983_v5 }
 0x159   : > { %2336 = vmatmul.mubr.f32.gmra.mxu0 %v4084_v34  ;;  %2449 = vmatmul.mubr.f32.gmra.mxu1 %v4084_v34  ;;  %v1035_v5 = vpop.f32.mrf.mxu0  ;;  %v1148_v41 = vpop.f32.mrf.mxu1  ;;  %v3973_v34 = vld [vmem:[%s7191_s1 + $0xf40] sm:$0xff] }
 0x15a   : > { %2596 = vmatprep.subr.mxu0 %v3978_v62  ;;  %2709 = vmatprep.subr.mxu1 %v3980_v42  ;;  %v6055_v14 = vadd.f32 %v1035_v5, %v5749_v28  ;;  %v6058_v23 = vadd.f32 %v1148_v41, %v5752_v37  ;;  %v3970_v28 = vld [vmem:[%s7191_s1 + $0xf28] sm:$0xff]  ;;  %v3972_v37 = vld [vmem:[%s7191_s1 + $0xf38] sm:$0xff]  ;;  %v3969_v42 = vld [vmem:[%s7191_s1 + $0xf20] sm:$0xff] }
 0x15b   : > { %2597 = vmatpush1.msra.mxu0 %v3977_v22  ;;  %2710 = vmatpush1.msra.mxu1 %v3979_v35  ;;  %v6066_v7 = vpop.f32.mrf.mxu0  ;;  %v6068_v62 = vpop.f32.mrf.mxu1  ;;  %v3971_v22 = vld [vmem:[%s7191_s1 + $0xf30] sm:$0xff] }
 0x15c   : > { %2598 = vmatprep.subr.mxu0 %v3974_v59  ;;  %2711 = vmatprep.subr.mxu1 %v3976_v58  ;;  %v4085_v35 = vld [vmem:[%s4274_s7 + $0x50] sm:$0xff]  ;;  %v3966_v59 = vld [vmem:[%s7191_s1 + $0xf08] sm:$0xff]  ;;  %v3968_v58 = vld [vmem:[%s7191_s1 + $0xf18] sm:$0xff] }
 0x15d   : > { %2341 = vmatprep.mubr.f32.mxu0 %v7231_v11  ;;  %2454 = vmatprep.mubr.f32.mxu1 %v7231_v11 }
 0x15e   : > { %2599 = vmatpush1.msra.mxu0 %v3973_v34  ;;  %2712 = vmatpush1.msra.mxu1 %v3975_v50 }
 0x15f   : > { %2342 = vmatmul.mubr.f32.gmra.mxu0 %v4085_v35  ;;  %2455 = vmatmul.mubr.f32.gmra.mxu1 %v4085_v35  ;;  %v1041_v50 = vpop.f32.mrf.mxu0  ;;  %v1154_v5 = vpop.f32.mrf.mxu1  ;;  %v3965_v35 = vld [vmem:[%s7191_s1 + $0xf00] sm:$0xff] }
 0x160   : > { %2600 = vmatprep.subr.mxu0 %v3970_v28  ;;  %2713 = vmatprep.subr.mxu1 %v3972_v37  ;;  %v6092_v41 = vadd.f32 %v1041_v50, %v5787_v43  ;;  %v6095_v34 = vadd.f32 %v1154_v5, %v5790_v54  ;;  %v3962_v43 = vld [vmem:[%s7191_s1 + $0xee8] sm:$0xff]  ;;  %v3964_v54 = vld [vmem:[%s7191_s1 + $0xef8] sm:$0xff]  ;;  %v3961_v37 = vld [vmem:[%s7191_s1 + $0xee0] sm:$0xff] }
 0x161   : > { %2601 = vmatpush1.msra.mxu0 %v3969_v42  ;;  %2714 = vmatpush1.msra.mxu1 %v3971_v22  ;;  %v6103_v44 = vpop.f32.mrf.mxu0  ;;  %v6105_v28 = vpop.f32.mrf.mxu1  ;;  %v3963_v42 = vld [vmem:[%s7191_s1 + $0xef0] sm:$0xff]  ;;  %v4086_v22 = vld [vmem:[%s4274_s7 + $0x60] sm:$0xff] }
 0x162   : > { %2602 = vmatprep.subr.mxu0 %v3966_v59  ;;  %2715 = vmatprep.subr.mxu1 %v3968_v58  ;;  %v3958_v59 = vld [vmem:[%s7191_s1 + $0xec8] sm:$0xff]  ;;  %v3960_v58 = vld [vmem:[%s7191_s1 + $0xed8] sm:$0xff] }
 0x163   : > { %2347 = vmatprep.mubr.f32.mxu0 %v7231_v11  ;;  %2460 = vmatprep.mubr.f32.mxu1 %v7231_v11 }
 0x164   : > { %2603 = vmatpush1.msra.mxu0 %v3965_v35  ;;  %2716 = vmatpush1.msra.mxu1 %v3967_v46 }
 0x165   : > { %2348 = vmatmul.mubr.f32.gmra.mxu0 %v4086_v22  ;;  %2461 = vmatmul.mubr.f32.gmra.mxu1 %v4086_v22  ;;  %v1047_v46 = vpop.f32.mrf.mxu0  ;;  %v1160_v50 = vpop.f32.mrf.mxu1  ;;  %v3957_v22 = vld [vmem:[%s7191_s1 + $0xec0] sm:$0xff] }
 0x166   : > { %2604 = vmatprep.subr.mxu0 %v3962_v43  ;;  %2717 = vmatprep.subr.mxu1 %v3964_v54  ;;  %v6129_v5 = vadd.f32 %v1047_v46, %v5825_v47  ;;  %v6132_v35 = vadd.f32 %v1160_v50, %v5828_v25  ;;  %v3954_v47 = vld [vmem:[%s7191_s1 + $0xea8] sm:$0xff]  ;;  %v3956_v25 = vld [vmem:[%s7191_s1 + $0xeb8] sm:$0xff]  ;;  %v3953_v54 = vld [vmem:[%s7191_s1 + $0xea0] sm:$0xff] }
 0x167   : > { %2605 = vmatpush1.msra.mxu0 %v3961_v37  ;;  %2718 = vmatpush1.msra.mxu1 %v3963_v42  ;;  %v6140_v48 = vpop.f32.mrf.mxu0  ;;  %v6142_v43 = vpop.f32.mrf.mxu1  ;;  %v3955_v37 = vld [vmem:[%s7191_s1 + $0xeb0] sm:$0xff] }
 0x168   : > { %7239 = vst [vmem:[#allocation23_spill] sm:$0xff] %v6132_v35  ;;  %2606 = vmatprep.subr.mxu0 %v3958_v59  ;;  %2719 = vmatprep.subr.mxu1 %v3960_v58  ;;  %v4087_v42 = vld [vmem:[%s4274_s7 + $0x70] sm:$0xff]  ;;  %v3950_v59 = vld [vmem:[%s7191_s1 + $0xe88] sm:$0xff]  ;;  %v3952_v58 = vld [vmem:[%s7191_s1 + $0xe98] sm:$0xff] }
 0x169   : > { %2353 = vmatprep.mubr.f32.mxu0 %v7231_v11  ;;  %2466 = vmatprep.mubr.f32.mxu1 %v7231_v11 }
 0x16a   : > { %2607 = vmatpush1.msra.mxu0 %v3957_v22  ;;  %2720 = vmatpush1.msra.mxu1 %v3959_v17 }
 0x16b   : > { %2354 = vmatmul.mubr.f32.gmra.mxu0 %v4087_v42  ;;  %2467 = vmatmul.mubr.f32.gmra.mxu1 %v4087_v42  ;;  %v1053_v17 = vpop.f32.mrf.mxu0  ;;  %v1166_v46 = vpop.f32.mrf.mxu1  ;;  %v3949_v42 = vld [vmem:[%s7191_s1 + $0xe80] sm:$0xff] }
 0x16c   : > { %2608 = vmatprep.subr.mxu0 %v3954_v47  ;;  %2721 = vmatprep.subr.mxu1 %v3956_v25  ;;  %v6166_v50 = vadd.f32 %v1053_v17, %v5863_v20  ;;  %v6169_v22 = vadd.f32 %v1166_v46, %v5866_v6  ;;  %v3946_v20 = vld [vmem:[%s7191_s1 + $0xe68] sm:$0xff]  ;;  %v3948_v6 = vld [vmem:[%s7191_s1 + $0xe78] sm:$0xff]  ;;  %v3945_v25 = vld [vmem:[%s7191_s1 + $0xe60] sm:$0xff] }
 0x16d   : > { %2609 = vmatpush1.msra.mxu0 %v3953_v54  ;;  %2722 = vmatpush1.msra.mxu1 %v3955_v37  ;;  %v6177_v35 = vpop.f32.mrf.mxu0  ;;  %v6179_v47 = vpop.f32.mrf.mxu1  ;;  %v3947_v54 = vld [vmem:[%s7191_s1 + $0xe70] sm:$0xff]  ;;  %v4088_v37 = vld [vmem:[%s4274_s7 + $0x80] sm:$0xff] }
 0x16e   : > { %7240 = vst [vmem:[#allocation24_spill] sm:$0xff] %v6166_v50  ;;  %7241 = vst [vmem:[#allocation25_spill] sm:$0xff] %v6169_v22  ;;  %2610 = vmatprep.subr.mxu0 %v3950_v59  ;;  %2723 = vmatprep.subr.mxu1 %v3952_v58  ;;  %v3942_v59 = vld [vmem:[%s7191_s1 + $0xe48] sm:$0xff]  ;;  %v3943_v22 = vld [vmem:[%s7191_s1 + $0xe50] sm:$0xff] }
 0x16f   : > { %2359 = vmatprep.mubr.f32.mxu0 %v7231_v11  ;;  %2472 = vmatprep.mubr.f32.mxu1 %v7231_v11 }
 0x170   : > { %2611 = vmatpush1.msra.mxu0 %v3949_v42  ;;  %2724 = vmatpush1.msra.mxu1 %v3951_v13  ;;  %v3944_v13 = vld [vmem:[%s7191_s1 + $0xe58] sm:$0xff] }
 0x171   : > { %2360 = vmatmul.mubr.f32.gmra.mxu0 %v4088_v37  ;;  %2473 = vmatmul.mubr.f32.gmra.mxu1 %v4088_v37  ;;  %v1059_v58 = vpop.f32.mrf.mxu0  ;;  %v1172_v17 = vpop.f32.mrf.mxu1  ;;  %v3941_v37 = vld [vmem:[%s7191_s1 + $0xe40] sm:$0xff] }
 0x172   : > { %2612 = vmatprep.subr.mxu0 %v3946_v20  ;;  %2725 = vmatprep.subr.mxu1 %v3948_v6  ;;  %v6203_v46 = vadd.f32 %v1059_v58, %v5903_v27  ;;  %v6206_v42 = vadd.f32 %v1172_v17, %v5906_v9  ;;  %v6219_v27 = vld [vmem:[%s4274_s7 + $0x90] sm:$0xff]  ;;  %v3938_v9 = vld [vmem:[%s7191_s1 + $0xe28] sm:$0xff]  ;;  %v3940_v6 = vld [vmem:[%s7191_s1 + $0xe38] sm:$0xff] }
 0x173   : > { %2613 = vmatpush1.msra.mxu0 %v3945_v25  ;;  %2726 = vmatpush1.msra.mxu1 %v3947_v54  ;;  %v6214_v50 = vpop.f32.mrf.mxu0  ;;  %v6216_v20 = vpop.f32.mrf.mxu1  ;;  %v3937_v25 = vld [vmem:[%s7191_s1 + $0xe20] sm:$0xff]  ;;  %v3939_v54 = vld [vmem:[%s7191_s1 + $0xe30] sm:$0xff] }
 0x174   : > { %7242 = vst [vmem:[#allocation26_spill] sm:$0xff] %v6203_v46  ;;  %7243 = vst [vmem:[#allocation27_spill] sm:$0xff] %v6206_v42  ;;  %2614 = vmatprep.subr.mxu0 %v3942_v59  ;;  %2727 = vmatprep.subr.mxu1 %v3944_v13  ;;  %v3934_v59 = vld [vmem:[%s7191_s1 + $0xe08] sm:$0xff]  ;;  %v3933_v17 = vld [vmem:[%s7191_s1 + $0xe00] sm:$0xff] }
 0x175   : > { %7244 = vst [vmem:[#allocation28_spill] sm:$0xff] %v6216_v20  ;;  %2365 = vmatprep.mubr.f32.mxu0 %v7231_v11  ;;  %2478 = vmatprep.mubr.f32.mxu1 %v7231_v11  ;;  %v3935_v46 = vld [vmem:[%s7191_s1 + $0xe10] sm:$0xff] }
 0x176   : > { %2615 = vmatpush1.msra.mxu0 %v3941_v37  ;;  %2728 = vmatpush1.msra.mxu1 %v3943_v22  ;;  %v3936_v22 = vld [vmem:[%s7191_s1 + $0xe18] sm:$0xff] }
 0x177   : > { %2366 = vmatmul.mubr.f32.gmra.mxu0 %v6219_v27  ;;  %2479 = vmatmul.mubr.f32.gmra.mxu1 %v6219_v27  ;;  %v1065_v13 = vpop.f32.mrf.mxu0  ;;  %v1178_v58 = vpop.f32.mrf.mxu1 }
 0x178   : > { %2616 = vmatprep.subr.mxu0 %v3938_v9  ;;  %2729 = vmatprep.subr.mxu1 %v3940_v6  ;;  %v6247_v37 = vadd.f32 %v1065_v13, %v5947_v15  ;;  %v6250_v42 = vadd.f32 %v1178_v58, %v5950_v51  ;;  %v4058_v15 = vld [vmem:[%s7191_s1 + $0x11e8] sm:$0xff]  ;;  %v4060_v51 = vld [vmem:[%s7191_s1 + $0x11f8] sm:$0xff]  ;;  %v702_v6 = vadd.f32 %v5684_v61, %v5386_v52  ;;  %v4053_v58 = vld [vmem:[%s7191_s1 + $0x11c0] sm:$0xff] }
 0x179   : > { %2617 = vmatpush1.msra.mxu0 %v3937_v25  ;;  %2730 = vmatpush1.msra.mxu1 %v3939_v54  ;;  %v6255_v20 = vpop.f32.mrf.mxu0  ;;  %v6257_v9 = vpop.f32.mrf.mxu1  ;;  %v4057_v25 = vld [vmem:[%s7191_s1 + $0x11e0] sm:$0xff]  ;;  %v4059_v54 = vld [vmem:[%s7191_s1 + $0x11f0] sm:$0xff]  ;;  %v4054_v52 = vld [vmem:[%s7191_s1 + $0x11c8] sm:$0xff] }
 0x17a   : > { %2618 = vmatprep.subr.mxu0 %v3934_v59  ;;  %2731 = vmatprep.subr.mxu1 %v3936_v22  ;;  %v815_v59 = vadd.f32 %v5686_v1, %v5388_v53  ;;  %v4056_v61 = vld [vmem:[%s7191_s1 + $0x11d8] sm:$0xff] }
 0x17b   : > { %2619 = vmatpush1.msra.mxu0 %v3933_v17  ;;  %2652 = vmatprep.mubr.f32.mxu0 %v7231_v11 }
 0x17c   : > { %2732 = vmatpush1.msra.mxu1 %v3935_v46  ;;  %2765 = vmatprep.mubr.f32.mxu1 %v7231_v11  ;;  %v1184_v46 = vadd.f32 %v5992_v40, %v702_v6  ;;  %v1186_v53 = vadd.f32 %v5994_v4, %v815_v59  ;;  %v4055_v40 = vld [vmem:[%s7191_s1 + $0x11d0] sm:$0xff]  ;;  %v708_v6 = vadd.f32 %v5722_v8, %v5422_v2  ;;  %v4046_v2 = vld [vmem:[%s7191_s1 + $0x1188] sm:$0xff]  ;;  %v4048_v8 = vld [vmem:[%s7191_s1 + $0x1198] sm:$0xff] }
 0x17d   : > { %2653 = vmatmul.mubr.f32.vlgmr.msra.gmra.mxu0 %v4432_v36  ;;  %2766 = vmatmul.mubr.f32.vlgmr.msra.gmra.mxu1 %v4432_v36  ;;  %v1346_v22 = vpop.f32.mrf.mxu0  ;;  %v1459_v13 = vpop.f32.mrf.mxu1  ;;  %v821_v59 = vadd.f32 %v5724_v30, %v5424_v3 }
 0x17e   : > { %2915 = vmatprep.subr.mxu0 %v4058_v15  ;;  %3028 = vmatprep.subr.mxu1 %v4060_v51  ;;  %v6288_v1 = vadd.f32 %v1346_v22, %v5981_v38  ;;  %v6291_v36 = vadd.f32 %v1459_v13, %v5984_v26  ;;  %v4050_v26 = vld [vmem:[%s7191_s1 + $0x11a8] sm:$0xff]  ;;  %v4052_v51 = vld [vmem:[%s7191_s1 + $0x11b8] sm:$0xff]  ;;  %v4045_v22 = vld [vmem:[%s7191_s1 + $0x1180] sm:$0xff] }
 0x17f   : > { %2916 = vmatpush1.msra.mxu0 %v4057_v25  ;;  %3029 = vmatpush1.msra.mxu1 %v4059_v54  ;;  %v1348_v17 = vpop.f32.mrf.mxu0  ;;  %v1461_v15 = vpop.f32.mrf.mxu1  ;;  %v4049_v25 = vld [vmem:[%s7191_s1 + $0x11a0] sm:$0xff]  ;;  %v4051_v54 = vld [vmem:[%s7191_s1 + $0x11b0] sm:$0xff]  ;;  %v1190_v3 = vadd.f32 %v6031_v21, %v821_v59 }
 0x180   : > { %2917 = vmatprep.subr.mxu0 %v4054_v52  ;;  %3030 = vmatprep.subr.mxu1 %v4056_v61  ;;  %v6299_v4 = vadd.f32 %v1348_v17, %v1184_v46  ;;  %v6301_v38 = vadd.f32 %v1461_v15, %v1186_v53  ;;  %v1188_v52 = vadd.f32 %v6029_v60, %v708_v6  ;;  %v4047_v60 = vld [vmem:[%s7191_s1 + $0x1190] sm:$0xff]  ;;  %v4041_v17 = vld [vmem:[%s7191_s1 + $0x1160] sm:$0xff] }
 0x181   : > { %2658 = vmatprep.mubr.f32.mxu0 %v7231_v11  ;;  %2771 = vmatprep.mubr.f32.mxu1 %v7231_v11  ;;  %v4043_v15 = vld [vmem:[%s7191_s1 + $0x1170] sm:$0xff] }
 0x182   : > { %2918 = vmatpush1.msra.mxu0 %v4053_v58  ;;  %3031 = vmatpush1.msra.mxu1 %v4055_v40  ;;  %v4044_v58 = vld [vmem:[%s7191_s1 + $0x1178] sm:$0xff]  ;;  %v714_v40 = vadd.f32 %v5760_v10, %v5458_v18  ;;  %v4038_v10 = vld [vmem:[%s7191_s1 + $0x1148] sm:$0xff] }
 0x183   : > { %2659 = vmatmul.mubr.f32.gmra.mxu0 %v4471_v49  ;;  %2772 = vmatmul.mubr.f32.gmra.mxu1 %v4471_v49  ;;  %v1352_v61 = vpop.f32.mrf.mxu0  ;;  %v1465_v46 = vpop.f32.mrf.mxu1  ;;  %v4040_v18 = vld [vmem:[%s7191_s1 + $0x1158] sm:$0xff] }
 0x184   : > { %2919 = vmatprep.subr.mxu0 %v4050_v26  ;;  %3032 = vmatprep.subr.mxu1 %v4052_v51  ;;  %v6332_v30 = vadd.f32 %v1352_v61, %v6018_v45  ;;  %v6335_v49 = vadd.f32 %v1465_v46, %v6021_v33  ;;  %v4042_v33 = vld [vmem:[%s7191_s1 + $0x1168] sm:$0xff]  ;;  %v827_v26 = vadd.f32 %v5762_v31, %v5460_v19  ;;  %v4033_v61 = vld [vmem:[%s7191_s1 + $0x1120] sm:$0xff]  ;;  %v4035_v46 = vld [vmem:[%s7191_s1 + $0x1130] sm:$0xff] }
 0x185   : > { %2920 = vmatpush1.msra.mxu0 %v4049_v25  ;;  %3033 = vmatpush1.msra.mxu1 %v4051_v54  ;;  %v1354_v13 = vpop.f32.mrf.mxu0  ;;  %v1467_v53 = vpop.f32.mrf.mxu1  ;;  %v1192_v51 = vadd.f32 %v6066_v7, %v714_v40  ;;  %v4037_v54 = vld [vmem:[%s7191_s1 + $0x1140] sm:$0xff]  ;;  %v4039_v7 = vld [vmem:[%s7191_s1 + $0x1150] sm:$0xff]  ;;  %v4028_v40 = vld [vmem:[%s7191_s1 + $0x10f8] sm:$0xff] }
 0x186   : > { %2921 = vmatprep.subr.mxu0 %v4046_v2  ;;  %3034 = vmatprep.subr.mxu1 %v4048_v8  ;;  %v6343_v21 = vadd.f32 %v1354_v13, %v1188_v52  ;;  %v6345_v45 = vadd.f32 %v1467_v53, %v1190_v3  ;;  %v1194_v19 = vadd.f32 %v6068_v62, %v827_v26  ;;  %v4036_v8 = vld [vmem:[%s7191_s1 + $0x1138] sm:$0xff]  ;;  %v4029_v53 = vld [vmem:[%s7191_s1 + $0x1100] sm:$0xff]  ;;  %v4027_v26 = vld [vmem:[%s7191_s1 + $0x10f0] sm:$0xff] }
 0x187   : > { %2664 = vmatprep.mubr.f32.mxu0 %v7231_v11  ;;  %2777 = vmatprep.mubr.f32.mxu1 %v7231_v11  ;;  %v720_v52 = vadd.f32 %v5798_v57, %v5494_v63  ;;  %v833_v3 = vadd.f32 %v5800_v12, %v5496_v39  ;;  %v4030_v57 = vld [vmem:[%s7191_s1 + $0x1108] sm:$0xff]  ;;  %v4032_v63 = vld [vmem:[%s7191_s1 + $0x1118] sm:$0xff] }
 0x188   : > { %2922 = vmatpush1.msra.mxu0 %v4045_v22  ;;  %3035 = vmatpush1.msra.mxu1 %v4047_v60 }
 0x189   : > { %2665 = vmatmul.mubr.f32.gmra.mxu0 %v4510_v0  ;;  %2778 = vmatmul.mubr.f32.gmra.mxu1 %v4510_v0  ;;  %v1358_v6 = vpop.f32.mrf.mxu0  ;;  %v1471_v25 = vpop.f32.mrf.mxu1  ;;  %v1196_v22 = vadd.f32 %v6103_v44, %v720_v52  ;;  %v1198_v39 = vadd.f32 %v6105_v28, %v833_v3  ;;  %v4031_v44 = vld [vmem:[%s7191_s1 + $0x1110] sm:$0xff]  ;;  %v7248_v3 = vld [vmem:[#allocation10_spill] sm:$0xff] }
 0x18a   : > { %2923 = vmatprep.subr.mxu0 %v4042_v33  ;;  %3036 = vmatprep.subr.mxu1 %v4044_v58  ;;  %v6376_v31 = vadd.f32 %v1358_v6, %v6055_v14  ;;  %v6379_v0 = vadd.f32 %v1471_v25, %v6058_v23  ;;  %v4034_v23 = vld [vmem:[%s7191_s1 + $0x1128] sm:$0xff] }
 0x18b   : > { %2924 = vmatpush1.msra.mxu0 %v4041_v17  ;;  %3037 = vmatpush1.msra.mxu1 %v4043_v15  ;;  %v1360_v59 = vpop.f32.mrf.mxu0  ;;  %v1473_v2 = vpop.f32.mrf.mxu1  ;;  %v726_v17 = vadd.f32 %v5836_v24, %v5530_v55  ;;  %v4025_v15 = vld [vmem:[%s7191_s1 + $0x10e0] sm:$0xff]  ;;  %v4022_v55 = vld [vmem:[%s7191_s1 + $0x10c8] sm:$0xff]  ;;  %v4024_v24 = vld [vmem:[%s7191_s1 + $0x10d8] sm:$0xff] }
 0x18c   : > { %2925 = vmatprep.subr.mxu0 %v4038_v10  ;;  %3038 = vmatprep.subr.mxu1 %v4040_v18  ;;  %v6387_v62 = vadd.f32 %v1360_v59, %v1192_v51  ;;  %v6389_v14 = vadd.f32 %v1473_v2, %v1194_v19  ;;  %v839_v10 = vadd.f32 %v5838_v29, %v5532_v56  ;;  %v4021_v19 = vld [vmem:[%s7191_s1 + $0x10c0] sm:$0xff]  ;;  %v4018_v59 = vld [vmem:[%s7191_s1 + $0x10a8] sm:$0xff]  ;;  %v4020_v2 = vld [vmem:[%s7191_s1 + $0x10b8] sm:$0xff] }
 0x18d   : > { %2670 = vmatprep.mubr.f32.mxu0 %v7231_v11  ;;  %2783 = vmatprep.mubr.f32.mxu1 %v7231_v11  ;;  %v1200_v18 = vadd.f32 %v6140_v48, %v726_v17  ;;  %v4023_v48 = vld [vmem:[%s7191_s1 + $0x10d0] sm:$0xff] }
 0x18e   : > { %2926 = vmatpush1.msra.mxu0 %v4037_v54  ;;  %3039 = vmatpush1.msra.mxu1 %v4039_v7  ;;  %v1202_v56 = vadd.f32 %v6142_v43, %v839_v10 }
 0x18f   : > { %2671 = vmatmul.mubr.f32.gmra.mxu0 %v4549_v16  ;;  %2784 = vmatmul.mubr.f32.gmra.mxu1 %v4549_v16  ;;  %v1364_v60 = vpop.f32.mrf.mxu0  ;;  %v1477_v13 = vpop.f32.mrf.mxu1 }
 0x190   : > { %2927 = vmatprep.subr.mxu0 %v4034_v23  ;;  %3040 = vmatprep.subr.mxu1 %v4036_v8  ;;  %v6420_v12 = vadd.f32 %v1364_v60, %v6092_v41  ;;  %v6423_v16 = vadd.f32 %v1477_v13, %v6095_v34  ;;  %v4026_v34 = vld [vmem:[%s7191_s1 + $0x10e8] sm:$0xff]  ;;  %v7246_v23 = vld [vmem:[#allocation9_spill] sm:$0xff]  ;;  %v7247_v8 = vld [vmem:[#allocation16_spill] sm:$0xff] }
 0x191   : > { %2928 = vmatpush1.msra.mxu0 %v4033_v61  ;;  %3041 = vmatpush1.msra.mxu1 %v4035_v46  ;;  %v1366_v33 = vpop.f32.mrf.mxu0  ;;  %v1479_v58 = vpop.f32.mrf.mxu1  ;;  %v732_v52 = vadd.f32 %v7247_v8, %v7246_v23  ;;  %v4017_v61 = vld [vmem:[%s7191_s1 + $0x10a0] sm:$0xff]  ;;  %v4019_v46 = vld [vmem:[%s7191_s1 + $0x10b0] sm:$0xff]  ;;  %v4014_v60 = vld [vmem:[%s7191_s1 + $0x1088] sm:$0xff] }
 0x192   : > { %2929 = vmatprep.subr.mxu0 %v4030_v57  ;;  %3042 = vmatprep.subr.mxu1 %v4032_v63  ;;  %v6431_v28 = vadd.f32 %v1366_v33, %v1196_v22  ;;  %v6433_v41 = vadd.f32 %v1479_v58, %v1198_v39  ;;  %v7249_v57 = vld [vmem:[#allocation17_spill] sm:$0xff]  ;;  %v7250_v22 = vld [vmem:[#allocation2_spill] sm:$0xff]  ;;  %v7251_v58 = vld [vmem:[#allocation24_spill] sm:$0xff] }
 0x193   : > { %2676 = vmatprep.mubr.f32.mxu0 %v7231_v11  ;;  %2789 = vmatprep.mubr.f32.mxu1 %v7231_v11  ;;  %v845_v63 = vadd.f32 %v7249_v57, %v7248_v3  ;;  %v4016_v13 = vld [vmem:[%s7191_s1 + $0x1098] sm:$0xff]  ;;  %v1204_v39 = vadd.f32 %v6177_v35, %v732_v52  ;;  %v4015_v35 = vld [vmem:[%s7191_s1 + $0x1090] sm:$0xff]  ;;  %v4006_v52 = vld [vmem:[%s7191_s1 + $0x1048] sm:$0xff] }
 0x194   : > { %2930 = vmatpush1.msra.mxu0 %v4029_v53  ;;  %3043 = vmatpush1.msra.mxu1 %v4031_v44  ;;  %v7257_v8 = vld [vmem:[#allocation13_spill] sm:$0xff] }
 0x195   : > { %2677 = vmatmul.mubr.f32.gmra.mxu0 %v4588_v32  ;;  %2790 = vmatmul.mubr.f32.gmra.mxu1 %v4588_v32  ;;  %v1370_v51 = vpop.f32.mrf.mxu0  ;;  %v1483_v6 = vpop.f32.mrf.mxu1  ;;  %v7245_v32 = vld [vmem:[#allocation23_spill] sm:$0xff]  ;;  %v1206_v33 = vadd.f32 %v6179_v47, %v845_v63  ;;  %v7258_v63 = vld [vmem:[#allocation28_spill] sm:$0xff] }
 0x196   : > { %2931 = vmatprep.subr.mxu0 %v4026_v34  ;;  %3044 = vmatprep.subr.mxu1 %v4028_v40  ;;  %v6464_v29 = vadd.f32 %v1370_v51, %v6129_v5  ;;  %v6467_v25 = vadd.f32 %v1483_v6, %v7245_v32  ;;  %v7252_v40 = vld [vmem:[#allocation25_spill] sm:$0xff]  ;;  %v7253_v6 = vld [vmem:[#allocation11_spill] sm:$0xff] }
 0x197   : > { %2932 = vmatpush1.msra.mxu0 %v4025_v15  ;;  %3045 = vmatpush1.msra.mxu1 %v4027_v26  ;;  %v1372_v54 = vpop.f32.mrf.mxu0  ;;  %v1485_v7 = vpop.f32.mrf.mxu1  ;;  %v4013_v15 = vld [vmem:[%s7191_s1 + $0x1080] sm:$0xff]  ;;  %v6520_v26 = vld [vmem:[%s4274_s7 + $0x98] sm:$0x3] }
 0x198   : > { %2933 = vmatprep.subr.mxu0 %v4022_v55  ;;  %3046 = vmatprep.subr.mxu1 %v4024_v24  ;;  %v6475_v43 = vadd.f32 %v1372_v54, %v1200_v18  ;;  %v6477_v5 = vadd.f32 %v1485_v7, %v1202_v56  ;;  %v4010_v18 = vld [vmem:[%s7191_s1 + $0x1068] sm:$0xff]  ;;  %v4012_v51 = vld [vmem:[%s7191_s1 + $0x1078] sm:$0xff]  ;;  %v7254_v56 = vld [vmem:[#allocation18_spill] sm:$0xff]  ;;  %v2520_v23 = vrot.slane %v6520_v26, 1 }
 0x199   : > { %2682 = vmatprep.mubr.f32.mxu0 %v7231_v11  ;;  %2795 = vmatprep.mubr.f32.mxu1 %v7231_v11  ;;  %v738_v32 = vadd.f32 %v7254_v56, %v7253_v6  ;;  %v4011_v54 = vld [vmem:[%s7191_s1 + $0x1070] sm:$0xff]  ;;  %v4001_v56 = vld [vmem:[%s7191_s1 + $0x1020] sm:$0xff] }
 0x19a   : > { %2934 = vmatpush1.msra.mxu0 %v4021_v19  ;;  %3047 = vmatpush1.msra.mxu1 %v4023_v48  ;;  %v2519_v19 = vrot.slane %v6219_v27, 1  ;;  %v4009_v48 = vld [vmem:[%s7191_s1 + $0x1060] sm:$0xff]  ;;  %v7255_v7 = vld [vmem:[#allocation12_spill] sm:$0xff] }
 0x19b   : > { %2683 = vmatmul.mubr.f32.gmra.mxu0 %v7250_v22  ;;  %2796 = vmatmul.mubr.f32.gmra.mxu1 %v7250_v22  ;;  %v1376_v53 = vpop.f32.mrf.mxu0  ;;  %v1489_v44 = vpop.f32.mrf.mxu1 }
 0x19c   : > { %2935 = vmatprep.subr.mxu0 %v4018_v59  ;;  %3048 = vmatprep.subr.mxu1 %v4020_v2  ;;  %v6508_v34 = vadd.f32 %v1376_v53, %v7251_v58  ;;  %v6511_v17 = vadd.f32 %v1489_v44, %v7252_v40  ;;  %v7256_v59 = vld [vmem:[#allocation19_spill] sm:$0xff]  ;;  %v4005_v44 = vld [vmem:[%s7191_s1 + $0x1040] sm:$0xff]  ;;  %v2521_v40 = vsel %vm309_vm1, %v2519_v19, %v2520_v23 }
 0x19d   : > { %2936 = vmatpush1.msra.mxu0 %v4017_v61  ;;  %3049 = vmatpush1.msra.mxu1 %v4019_v46  ;;  %v1378_v10 = vpop.f32.mrf.mxu0  ;;  %v1491_v47 = vpop.f32.mrf.mxu1  ;;  %v851_v2 = vadd.f32 %v7256_v59, %v7255_v7  ;;  %v4008_v61 = vld [vmem:[%s7191_s1 + $0x1058] sm:$0xff]  ;;  %v1208_v46 = vadd.f32 %v6214_v50, %v738_v32  ;;  %v4007_v50 = vld [vmem:[%s7191_s1 + $0x1050] sm:$0xff]  ;;  %v7263_v19 = vld [vmem:[#allocation15_spill] sm:$0xff] }
 0x19e   : > { %2937 = vmatprep.subr.mxu0 %v4014_v60  ;;  %3050 = vmatprep.subr.mxu1 %v4016_v13  ;;  %v6522_v55 = vadd.f32 %v1378_v10, %v1204_v39  ;;  %v6524_v24 = vadd.f32 %v1491_v47, %v1206_v33  ;;  %v7259_v60 = vld [vmem:[#allocation26_spill] sm:$0xff]  ;;  %v7260_v39 = vld [vmem:[#allocation27_spill] sm:$0xff]  ;;  %v4004_v47 = vld [vmem:[%s7191_s1 + $0x1038] sm:$0xff] }
 0x19f   : > { %2688 = vmatprep.mubr.f32.mxu0 %v7231_v11  ;;  %2801 = vmatprep.mubr.f32.mxu1 %v7231_v11  ;;  %v1210_v22 = vadd.f32 %v7258_v63, %v851_v2  ;;  %v4002_v10 = vld [vmem:[%s7191_s1 + $0x1028] sm:$0xff]  ;;  %v4003_v32 = vld [vmem:[%s7191_s1 + $0x1030] sm:$0xff]  ;;  %v4000_v59 = vld [vmem:[%s7191_s1 + $0x1018] sm:$0xff] }
 0x1a0   : > { %2938 = vmatpush1.msra.mxu0 %v4013_v15  ;;  %3051 = vmatpush1.msra.mxu1 %v4015_v35  ;;  %v3998_v7 = vld [vmem:[%s7191_s1 + $0x1008] sm:$0xff] }
 0x1a1   : > { %2689 = vmatmul.mubr.f32.gmra.mxu0 %v7257_v8  ;;  %2802 = vmatmul.mubr.f32.gmra.mxu1 %v7257_v8  ;;  %v1382_v3 = vpop.f32.mrf.mxu0  ;;  %v1495_v57 = vpop.f32.mrf.mxu1 }
 0x1a2   : > { %2939 = vmatprep.subr.mxu0 %v4010_v18  ;;  %3052 = vmatprep.subr.mxu1 %v4012_v51  ;;  %v6557_v13 = vadd.f32 %v1382_v3, %v7259_v60  ;;  %v6560_v53 = vadd.f32 %v1495_v57, %v7260_v39  ;;  %v7261_v18 = vld [vmem:[#allocation14_spill] sm:$0xff]  ;;  %v7262_v51 = vld [vmem:[#allocation21_spill] sm:$0xff] }
 0x1a3   : > { %2940 = vmatpush1.msra.mxu0 %v4009_v48  ;;  %3053 = vmatpush1.msra.mxu1 %v4011_v54  ;;  %v1384_v33 = vpop.f32.mrf.mxu0  ;;  %v1497_v58 = vpop.f32.mrf.mxu1  ;;  %v744_v6 = vadd.f32 %v7262_v51, %v7261_v18  ;;  %v7264_v48 = vld [vmem:[#allocation22_spill] sm:$0xff] }
 0x1a4   : > { %2941 = vmatprep.subr.mxu0 %v4006_v52  ;;  %3054 = vmatprep.subr.mxu1 %v4008_v61  ;;  %v6569_v15 = vadd.f32 %v1384_v33, %v1208_v46  ;;  %v6571_v35 = vadd.f32 %v1497_v58, %v1210_v22  ;;  %v857_v54 = vadd.f32 %v7264_v48, %v7263_v19  ;;  %v3997_v52 = vld [vmem:[%s7191_s1 + $0x1000] sm:$0xff] }
 0x1a5   : > { %2694 = vmatprep.mubr.f32.mxu0 %v7231_v11  ;;  %2807 = vmatprep.mubr.f32.mxu1 %v7231_v11  ;;  %v1212_v2 = vadd.f32 %v6255_v20, %v744_v6  ;;  %v3999_v20 = vld [vmem:[%s7191_s1 + $0x1010] sm:$0xff] }
 0x1a6   : > { %2942 = vmatpush1.msra.mxu0 %v4005_v44  ;;  %3055 = vmatpush1.msra.mxu1 %v4007_v50  ;;  %v1214_v61 = vadd.f32 %v6257_v9, %v857_v54 }
 0x1a7   : > { %2695 = vmatmul.mubr.f32.gmra.mxu0 %v2521_v40  ;;  %2808 = vmatmul.mubr.f32.gmra.mxu1 %v2521_v40  ;;  %v1388_v23 = vpop.f32.mrf.mxu0  ;;  %v1501_v8 = vpop.f32.mrf.mxu1 }
 0x1a8   : > { %2943 = vmatprep.subr.mxu0 %v4002_v10  ;;  %3056 = vmatprep.subr.mxu1 %v4004_v47  ;;  %v6603_v46 = vadd.f32 %v1388_v23, %v6247_v37  ;;  %v6606_v3 = vadd.f32 %v1501_v8, %v6250_v42  ;;  %v7265_v42 = vld [vmem:[#allocation3_spill] sm:$0xff]  ;;  %v7266_v10 = vld [vmem:[#allocation4_spill] sm:$0xff] }
 0x1a9   : > { %2944 = vmatpush1.msra.mxu0 %v4001_v56  ;;  %3057 = vmatpush1.msra.mxu1 %v4003_v32  ;;  %v1390_v57 = vpop.f32.mrf.mxu0  ;;  %v1503_v63 = vpop.f32.mrf.mxu1 }
 0x1aa   : > { %2945 = vmatprep.subr.mxu0 %v3998_v7  ;;  %3058 = vmatprep.subr.mxu1 %v4000_v59  ;;  %v6611_v22 = vadd.f32 %v1390_v57, %v1212_v2  ;;  %v6613_v60 = vadd.f32 %v1503_v63, %v1214_v61  ;;  %v7269_v59 = vld [vmem:[#allocation7_spill] sm:$0xff]  ;;  %v2847_v61 = vrot.slane %v6520_v26, 2 }
 0x1ab   : > { %2946 = vmatpush1.msra.mxu0 %v3997_v52  ;;  %2979 = vmatprep.mubr.f32.mxu0 %v7231_v11  ;;  %v2846_v52 = vrot.slane %v6219_v27, 2 }
 0x1ac   : > { %3059 = vmatpush1.msra.mxu1 %v3999_v20  ;;  %3092 = vmatprep.mubr.f32.mxu1 %v7231_v11  ;;  %v7271_v20 = vld [vmem:[#allocation20_spill] sm:$0xff] }
 0x1ad   : > { %2980 = vmatmul.mubr.f32.vlgmr.msra.gmra.mxu0 %v7265_v42  ;;  %3093 = vmatmul.mubr.f32.vlgmr.msra.gmra.mxu1 %v7265_v42  ;;  %v1675_v37 = vpop.f32.mrf.mxu0  ;;  %v1788_v9 = vpop.f32.mrf.mxu1  ;;  %v2848_v27 = vsel %vm859_vm0, %v2846_v52, %v2847_v61 }
 0x1ae   : > { %2985 = vmatprep.mubr.f32.mxu0 %v7231_v11  ;;  %3098 = vmatprep.mubr.f32.mxu1 %v7231_v11  ;;  %v6622_v39 = vadd.f32 %v1675_v37, %v6288_v1  ;;  %v6625_v44 = vadd.f32 %v1788_v9, %v6291_v36 }
 0x1af   : > { %v1677_v50 = vpop.f32.mrf.mxu0  ;;  %v1790_v33 = vpop.f32.mrf.mxu1 }
 0x1b0   : > { %v6628_v58 = vadd.f32 %v1677_v50, %v6299_v4  ;;  %v6631_v40 = vadd.f32 %v1790_v33, %v6301_v38  ;;  %v7267_v4 = vld [vmem:[#allocation5_spill] sm:$0xff] }
 0x1b1   : > { %2986 = vmatmul.mubr.f32.gmra.mxu0 %v7266_v10  ;;  %3099 = vmatmul.mubr.f32.gmra.mxu1 %v7266_v10 }
 0x1b2   : > { %2991 = vmatprep.mubr.f32.mxu0 %v7231_v11  ;;  %3104 = vmatprep.mubr.f32.mxu1 %v7231_v11 }
 0x1b3   : > { %v1681_v1 = vpop.f32.mrf.mxu0  ;;  %v1794_v47 = vpop.f32.mrf.mxu1 }
 0x1b4   : > { %v6638_v36 = vadd.f32 %v1681_v1, %v6332_v30  ;;  %v6641_v18 = vadd.f32 %v1794_v47, %v6335_v49  ;;  %v7268_v30 = vld [vmem:[#allocation6_spill] sm:$0xff] }
 0x1b5   : > { %2992 = vmatmul.mubr.f32.gmra.mxu0 %v7267_v4  ;;  %3105 = vmatmul.mubr.f32.gmra.mxu1 %v7267_v4  ;;  %v1683_v38 = vpop.f32.mrf.mxu0  ;;  %v1796_v51 = vpop.f32.mrf.mxu1 }
 0x1b6   : > { %2997 = vmatprep.mubr.f32.mxu0 %v7231_v11  ;;  %3110 = vmatprep.mubr.f32.mxu1 %v7231_v11  ;;  %v6648_v6 = vadd.f32 %v1683_v38, %v6343_v21  ;;  %v6651_v56 = vadd.f32 %v1796_v51, %v6345_v45 }
 0x1b9   : > { %2998 = vmatmul.mubr.f32.gmra.mxu0 %v7268_v30  ;;  %3111 = vmatmul.mubr.f32.gmra.mxu1 %v7268_v30  ;;  %v1687_v49 = vpop.f32.mrf.mxu0  ;;  %v1800_v32 = vpop.f32.mrf.mxu1 }
 0x1ba   : > { %3003 = vmatprep.mubr.f32.mxu0 %v7231_v11  ;;  %3116 = vmatprep.mubr.f32.mxu1 %v7231_v11  ;;  %v6658_v19 = vadd.f32 %v1687_v49, %v6376_v31  ;;  %v6661_v48 = vadd.f32 %v1800_v32, %v6379_v0 }
 0x1bb   : > { %v1689_v21 = vpop.f32.mrf.mxu0  ;;  %v1802_v54 = vpop.f32.mrf.mxu1 }
 0x1bc   : > { %v6664_v45 = vadd.f32 %v1689_v21, %v6387_v62  ;;  %v6667_v7 = vadd.f32 %v1802_v54, %v6389_v14  ;;  %v7270_v62 = vld [vmem:[#allocation8_spill] sm:$0xff] }
 0x1bd   : > { %3004 = vmatmul.mubr.f32.gmra.mxu0 %v7269_v59  ;;  %3117 = vmatmul.mubr.f32.gmra.mxu1 %v7269_v59 }
 0x1be   : > { %3009 = vmatprep.mubr.f32.mxu0 %v7231_v11  ;;  %3122 = vmatprep.mubr.f32.mxu1 %v7231_v11 }
 0x1bf   : > { %v1693_v31 = vpop.f32.mrf.mxu0  ;;  %v1806_v2 = vpop.f32.mrf.mxu1 }
 0x1c0   : > { %v6674_v0 = vadd.f32 %v1693_v31, %v6420_v12  ;;  %v6677_v23 = vadd.f32 %v1806_v2, %v6423_v16 }
 0x1c1   : > { %3010 = vmatmul.mubr.f32.gmra.mxu0 %v7270_v62  ;;  %3123 = vmatmul.mubr.f32.gmra.mxu1 %v7270_v62  ;;  %v1695_v14 = vpop.f32.mrf.mxu0  ;;  %v1808_v8 = vpop.f32.mrf.mxu1 }
 0x1c2   : > { %3015 = vmatprep.mubr.f32.mxu0 %v7231_v11  ;;  %3128 = vmatprep.mubr.f32.mxu1 %v7231_v11  ;;  %v6686_v12 = vadd.f32 %v1695_v14, %v6431_v28  ;;  %v6689_v16 = vadd.f32 %v1808_v8, %v6433_v41 }
 0x1c5   : > { %3016 = vmatmul.mubr.f32.gmra.mxu0 %v7271_v20  ;;  %3129 = vmatmul.mubr.f32.gmra.mxu1 %v7271_v20  ;;  %v1699_v57 = vpop.f32.mrf.mxu0  ;;  %v1812_v63 = vpop.f32.mrf.mxu1 }
 0x1c6   : > { %3021 = vmatprep.mubr.f32.mxu0 %v7231_v11  ;;  %3134 = vmatprep.mubr.f32.mxu1 %v7231_v11  ;;  %v6697_v26 = vadd.f32 %v1699_v57, %v6464_v29  ;;  %v6700_v28 = vadd.f32 %v1812_v63, %v6467_v25 }
 0x1c7   : > { %v1701_v41 = vpop.f32.mrf.mxu0  ;;  %v1814_v42 = vpop.f32.mrf.mxu1 }
 0x1c8   : > { %v6703_v37 = vadd.f32 %v1701_v41, %v6475_v43  ;;  %v6706_v9 = vadd.f32 %v1814_v42, %v6477_v5 }
 0x1c9   : > { %3022 = vmatmul.mubr.f32.gmra.mxu0 %v2848_v27  ;;  %3135 = vmatmul.mubr.f32.gmra.mxu1 %v2848_v27 }
 0x1cb   : > { %v1705_v50 = vpop.f32.mrf.mxu0  ;;  %v1818_v11 = vpop.f32.mrf.mxu1 }
 0x1cc   : > { %v6709_v33 = vadd.f32 %v1705_v50, %v6508_v34  ;;  %v6712_v29 = vadd.f32 %v1818_v11, %v6511_v17 }
 0x1cd   : > { %v1707_v25 = vpop.f32.mrf.mxu0  ;;  %v1820_v10 = vpop.f32.mrf.mxu1 }
 0x1ce   : > { %v6715_v1 = vadd.f32 %v1707_v25, %v6522_v55  ;;  %v6718_v43 = vadd.f32 %v1820_v10, %v6524_v24 }
 0x1d1   : > { %v1711_v5 = vpop.f32.mrf.mxu0  ;;  %v1824_v47 = vpop.f32.mrf.mxu1 }
 0x1d2   : > { %v6721_v4 = vadd.f32 %v1711_v5, %v6557_v13  ;;  %v6724_v38 = vadd.f32 %v1824_v47, %v6560_v53 }
 0x1d3   : > { %v1713_v34 = vpop.f32.mrf.mxu0  ;;  %v1826_v51 = vpop.f32.mrf.mxu1 }
 0x1d4   : > { %v6727_v17 = vadd.f32 %v1713_v34, %v6569_v15  ;;  %v6730_v30 = vadd.f32 %v1826_v51, %v6571_v35 }
 0x1d7   : > { %v1717_v55 = vpop.f32.mrf.mxu0  ;;  %v1830_v49 = vpop.f32.mrf.mxu1 }
 0x1d8   : > { %v6733_v24 = vadd.f32 %v1717_v55, %v6603_v46  ;;  %v6736_v32 = vadd.f32 %v1830_v49, %v6606_v3 }
 0x1d9   : > { %v1719_v13 = vpop.f32.mrf.mxu0  ;;  %v1832_v21 = vpop.f32.mrf.mxu1 }
 0x1da   : > { %v6739_v53 = vadd.f32 %v1719_v13, %v6611_v22  ;;  %v6742_v54 = vadd.f32 %v1832_v21, %v6613_v60 }
 0x1dd   : > { %v2002_v15 = vpop.f32.mrf.mxu0  ;;  %v2115_v59 = vpop.f32.mrf.mxu1 }
 0x1de   : > { %v6745_v35 = vadd.f32 %v2002_v15, %v6622_v39  ;;  %v6748_v31 = vadd.f32 %v2115_v59, %v6625_v44 }
 0x1df   : > { %v2004_v46 = vpop.f32.mrf.mxu0  ;;  %v2117_v2 = vpop.f32.mrf.mxu1 }
 0x1e0   : > { %v6751_v3 = vadd.f32 %v2004_v46, %v6628_v58  ;;  %v6754_v62 = vadd.f32 %v2117_v2, %v6631_v40 }
 0x1e3   : > { %v2008_v22 = vpop.f32.mrf.mxu0  ;;  %v2121_v14 = vpop.f32.mrf.mxu1 }
 0x1e4   : > { %v6757_v60 = vadd.f32 %v2008_v22, %v6638_v36  ;;  %v6760_v8 = vadd.f32 %v2121_v14, %v6641_v18 }
 0x1e5   : > { %v2010_v39 = vpop.f32.mrf.mxu0  ;;  %v2123_v52 = vpop.f32.mrf.mxu1 }
 0x1e6   : > { %v6763_v44 = vadd.f32 %v2010_v39, %v6648_v6  ;;  %v6766_v61 = vadd.f32 %v2123_v52, %v6651_v56 }
 0x1e9   : > { %v2014_v58 = vpop.f32.mrf.mxu0  ;;  %v2127_v20 = vpop.f32.mrf.mxu1 }
 0x1ea   : > { %v6769_v40 = vadd.f32 %v2014_v58, %v6658_v19  ;;  %v6772_v57 = vadd.f32 %v2127_v20, %v6661_v48 }
 0x1eb   : > { %v2016_v36 = vpop.f32.mrf.mxu0  ;;  %v2129_v63 = vpop.f32.mrf.mxu1 }
 0x1ec   : > { %v6775_v18 = vadd.f32 %v2016_v36, %v6664_v45  ;;  %v6778_v27 = vadd.f32 %v2129_v63, %v6667_v7 }
 0x1ef   : > { %v2020_v6 = vpop.f32.mrf.mxu0  ;;  %v2133_v41 = vpop.f32.mrf.mxu1 }
 0x1f0   : > { %v6781_v56 = vadd.f32 %v2020_v6, %v6674_v0  ;;  %v6784_v42 = vadd.f32 %v2133_v41, %v6677_v23 }
 0x1f1   : > { %v2022_v19 = vpop.f32.mrf.mxu0  ;;  %v2135_v50 = vpop.f32.mrf.mxu1 }
 0x1f2   : > { %v6787_v48 = vadd.f32 %v2022_v19, %v6686_v12  ;;  %v6790_v11 = vadd.f32 %v2135_v50, %v6689_v16 }
 0x1f5   : > { %v2026_v45 = vpop.f32.mrf.mxu0  ;;  %v2139_v25 = vpop.f32.mrf.mxu1 }
 0x1f6   : > { %v6793_v7 = vadd.f32 %v2026_v45, %v6697_v26  ;;  %v6796_v10 = vadd.f32 %v2139_v25, %v6700_v28 }
 0x1f7   : > { %v2028_v0 = vpop.f32.mrf.mxu0  ;;  %v2141_v5 = vpop.f32.mrf.mxu1 }
 0x1f8   : > { %v2179_v23 = vadd.f32 %v2028_v0, %v6703_v37  ;;  %v2181_v47 = vadd.f32 %v2141_v5, %v6706_v9 }
 0x1fb   : > { %v2032_v34 = vpop.f32.mrf.mxu0  ;;  %v2145_v12 = vpop.f32.mrf.mxu1 }
 0x1fc   : > { %v2182_v51 = vadd.f32 %v2032_v34, %v6709_v33  ;;  %v2184_v16 = vadd.f32 %v2145_v12, %v6712_v29 }
 0x1fd   : > { %v2034_v55 = vpop.f32.mrf.mxu0  ;;  %v2147_v49 = vpop.f32.mrf.mxu1 }
 0x1fe   : > { %v6803_v26 = vadd.f32 %v2034_v55, %v6715_v1  ;;  %v6806_v28 = vadd.f32 %v2147_v49, %v6718_v43 }
 0x201   : > { %v2038_v13 = vpop.f32.mrf.mxu0  ;;  %v2151_v21 = vpop.f32.mrf.mxu1 }
 0x202   : > { %v2186_v37 = vadd.f32 %v2038_v13, %v6721_v4  ;;  %v2188_v9 = vadd.f32 %v2151_v21, %v6724_v38 }
 0x203   : > { %v2040_v15 = vpop.f32.mrf.mxu0  ;;  %v2153_v59 = vpop.f32.mrf.mxu1 }
 0x204   : > { %v2187_v33 = vadd.f32 %v2040_v15, %v6727_v17  ;;  %v2189_v29 = vadd.f32 %v2153_v59, %v6730_v30 }
 0x207   : > { %v2044_v46 = vpop.f32.mrf.mxu0  ;;  %v2157_v2 = vpop.f32.mrf.mxu1 }
 0x208   : > { %v2190_v1 = vadd.f32 %v2044_v46, %v6733_v24  ;;  %v2192_v22 = vadd.f32 %v2157_v2, %v6736_v32 }
 0x209   : > { %v2046_v43 = vpop.f32.mrf.mxu0  ;;  %v2159_v14 = vpop.f32.mrf.mxu1 }
 0x20a   : > { %v2191_v39 = vadd.f32 %v2046_v43, %v6739_v53  ;;  %v2193_v4 = vadd.f32 %v2159_v14, %v6742_v54 }
 0x20d   : > { %v6816_v52 = vpop.f32.mrf.mxu0  ;;  %v6818_v38 = vpop.f32.mrf.mxu1 }
 0x20f   : > { %v6820_v58 = vpop.f32.mrf.mxu0  ;;  %v6822_v17 = vpop.f32.mrf.mxu1 }
 0x213   : > { %v6824_v30 = vpop.f32.mrf.mxu0  ;;  %v6826_v20 = vpop.f32.mrf.mxu1 }
 0x215   : > { %v6828_v24 = vpop.f32.mrf.mxu0  ;;  %v6830_v32 = vpop.f32.mrf.mxu1 }
 0x219   : > { %v6832_v36 = vpop.f32.mrf.mxu0  ;;  %v6834_v53 = vpop.f32.mrf.mxu1 }
 0x21b   : > { %v6836_v54 = vpop.f32.mrf.mxu0  ;;  %v6838_v63 = vpop.f32.mrf.mxu1 }
 0x21f   : > { %v6840_v6 = vpop.f32.mrf.mxu0  ;;  %v6842_v41 = vpop.f32.mrf.mxu1 }
 0x221   : > { %v6844_v19 = vpop.f32.mrf.mxu0  ;;  %v6846_v50 = vpop.f32.mrf.mxu1 }
 0x225   : > { %v6848_v45 = vpop.f32.mrf.mxu0  ;;  %v6850_v25 = vpop.f32.mrf.mxu1 }
 0x227   : > { %v2351_v0 = vpop.f32.mrf.mxu0  ;;  %v2464_v5 = vpop.f32.mrf.mxu1 }
 0x228   : > { %v6852_v34 = vadd.f32 %v2351_v0, %v2179_v23  ;;  %v6854_v12 = vadd.f32 %v2464_v5, %v2181_v47 }
 0x22a   : > { %7272 = vst [vmem:[#allocation23_spill] sm:$0xff] %v6852_v34  ;;  %7273 = vst [vmem:[#allocation9_spill] sm:$0xff] %v6854_v12 }
 0x22b   : > { %v2355_v55 = vpop.f32.mrf.mxu0  ;;  %v2468_v49 = vpop.f32.mrf.mxu1 }
 0x22c   : > { %v6856_v13 = vadd.f32 %v2355_v55, %v2182_v51  ;;  %v6858_v21 = vadd.f32 %v2468_v49, %v2184_v16 }
 0x22d   : > { %v6860_v15 = vpop.f32.mrf.mxu0  ;;  %v6862_v59 = vpop.f32.mrf.mxu1 }
 0x22e   : > { %7274 = vst [vmem:[#allocation16_spill] sm:$0xff] %v6856_v13  ;;  %7275 = vst [vmem:[#allocation10_spill] sm:$0xff] %v6858_v21 }
 0x231   : > { %v2361_v46 = vpop.f32.mrf.mxu0  ;;  %v2474_v2 = vpop.f32.mrf.mxu1 }
 0x232   : > { %v6864_v43 = vadd.f32 %v2361_v46, %v2186_v37  ;;  %v6866_v14 = vadd.f32 %v2474_v2, %v2188_v9 }
 0x233   : > { %v2363_v23 = vpop.f32.mrf.mxu0  ;;  %v2476_v0 = vpop.f32.mrf.mxu1 }
 0x234   : > { %7276 = vst [vmem:[#allocation17_spill] sm:$0xff] %v6864_v43  ;;  %7277 = vst [vmem:[#allocation2_spill] sm:$0xff] %v6866_v14  ;;  %v6868_v47 = vadd.f32 %v2363_v23, %v2187_v33  ;;  %v6870_v5 = vadd.f32 %v2476_v0, %v2189_v29 }
 0x236   : > { %7278 = vst [vmem:[#allocation24_spill] sm:$0xff] %v6868_v47  ;;  %7279 = vst [vmem:[#allocation25_spill] sm:$0xff] %v6870_v5  ;;  %v3175_v47 = vlaneseq }
 0x237   : > { %v2367_v51 = vpop.f32.mrf.mxu0  ;;  %v2480_v55 = vpop.f32.mrf.mxu1 }
 0x238   : > { %v6872_v16 = vadd.f32 %v2367_v51, %v2190_v1  ;;  %v6874_v49 = vadd.f32 %v2480_v55, %v2192_v22  ;;  %v6924_v34 = vshrl.u32 %v3175_v47, 7 }
 0x239   : > { %v2369_v21 = vpop.f32.mrf.mxu0  ;;  %v2482_v13 = vpop.f32.mrf.mxu1 }
 0x23a   : > { %7280 = vst [vmem:[#allocation11_spill] sm:$0xff] %v6872_v16  ;;  %7281 = vst [vmem:[#allocation18_spill] sm:$0xff] %v6874_v49  ;;  %v6876_v12 = vadd.f32 %v2369_v21, %v2191_v39  ;;  %v6878_v37 = vadd.f32 %v2482_v13, %v2193_v4 }
 0x23b   : > { %7297 = vst [vmem:[#allocation8_spill] sm:$0xff] %v6924_v34 }
 0x23c   : > { %7282 = vst [vmem:[#allocation12_spill] sm:$0xff] %v6876_v12  ;;  %7283 = vst [vmem:[#allocation19_spill] sm:$0xff] %v6878_v37 }
 0x23d   : > { %v6880_v9 = vpop.f32.mrf.mxu0  ;;  %v6882_v46 = vpop.f32.mrf.mxu1 }
 0x23f   : > { %v6884_v33 = vpop.f32.mrf.mxu0  ;;  %v6886_v29 = vpop.f32.mrf.mxu1 }
 0x243   : > { %v6888_v2 = vpop.f32.mrf.mxu0  ;;  %v6890_v1 = vpop.f32.mrf.mxu1 }
 0x245   : > { %v6892_v22 = vpop.f32.mrf.mxu0  ;;  %v6894_v23 = vpop.f32.mrf.mxu1 }
 0x249   : > { %v6896_v39 = vpop.f32.mrf.mxu0  ;;  %v6898_v4 = vpop.f32.mrf.mxu1 }
 0x24a   : > { %7284 = vst [vmem:[#allocation13_spill] sm:$0xff] %v6898_v4 }
 0x24b   : > { %v6900_v13 = vpop.f32.mrf.mxu0  ;;  %v6902_v21 = vpop.f32.mrf.mxu1 }
 0x24c   : > { %7285 = vst [vmem:[#allocation28_spill] sm:$0xff] %v6900_v13  ;;  %7286 = vst [vmem:[#allocation26_spill] sm:$0xff] %v6902_v21 }
 0x24f   : > { %v6904_v0 = vpop.f32.mrf.mxu0  ;;  %v6906_v51 = vpop.f32.mrf.mxu1 }
 0x250   : > { %7287 = vst [vmem:[#allocation27_spill] sm:$0xff] %v6904_v0  ;;  %7288 = vst [vmem:[#allocation14_spill] sm:$0xff] %v6906_v51 }
 0x251   : > { %v6908_v55 = vpop.f32.mrf.mxu0  ;;  %v6910_v37 = vpop.f32.mrf.mxu1 }
 0x252   : > { %7289 = vst [vmem:[#allocation21_spill] sm:$0xff] %v6908_v55  ;;  %7290 = vst [vmem:[#allocation15_spill] sm:$0xff] %v6910_v37  ;;  %v3177_v37 = vsub.s32 0, %v6924_v34 }
 0x255   : > { %v6912_v12 = vpop.f32.mrf.mxu0  ;;  %v6914_v49 = vpop.f32.mrf.mxu1 }
 0x256   : > { %7291 = vst [vmem:[#allocation22_spill] sm:$0xff] %v6912_v12  ;;  %7292 = vst [vmem:[#allocation3_spill] sm:$0xff] %v6914_v49  ;;  %v3185_v12 = vsub.s32 2, %v6924_v34  ;;  %v3181_v49 = vsub.s32 1, %v6924_v34 }
 0x257   : > { %v6916_v16 = vpop.f32.mrf.mxu0  ;;  %v6918_v5 = vpop.f32.mrf.mxu1 }
 0x258   : > { %7293 = vst [vmem:[#allocation4_spill] sm:$0xff] %v6916_v16  ;;  %7294 = vst [vmem:[#allocation5_spill] sm:$0xff] %v6918_v5  ;;  %v3189_v16 = vsub.s32 3, %v6924_v34  ;;  %v2485_v34 = vadd.f32 %v6816_v52, %v6745_v35  ;;  %v2490_v35 = vadd.f32 %v6828_v24, %v6763_v44  ;;  %v2495_v52 = vadd.f32 %v6834_v53, %v6772_v57 }
 0x259   : > { %v2499_v44 = vadd.f32 %v6842_v41, %v6784_v42  ;;  %v2500_v57 = vadd.f32 %v6846_v50, %v6790_v11  ;;  %v2506_v42 = vadd.f32 %v6860_v15, %v6803_v26 }
 0x25b   : > { %v6920_v14 = vpop.f32.mrf.mxu0  ;;  %v6922_v43 = vpop.f32.mrf.mxu1 }
 0x25c   : > { %7295 = vst [vmem:[#allocation6_spill] sm:$0xff] %v6920_v14  ;;  %7296 = vst [vmem:[#allocation7_spill] sm:$0xff] %v6922_v43  ;;  %v3173_v14 = vld [vmem:[%s7192_s2] sm:$0xf] }
 0x25d   : > { %v6926_v51 = vpop.f32.mrf.mxu0  ;;  %v6928_v55 = vpop.f32.mrf.mxu1  ;;  %v6947_v0 = vrot.slane %v3173_v14, %v3185_v12  ;;  %v6949_v21 = vrot.slane %v3173_v14, %v3181_v49  ;;  %v6951_v13 = vrot.slane %v3173_v14, %v3189_v16  ;;  %v2488_v12 = vadd.f32 %v6822_v17, %v6754_v62 }
 0x25e   : > { %7298 = vst [vmem:[#allocation20_spill] sm:$0xff] %v6926_v51  ;;  %7299 = vst [vmem:[#allocation29_spill] sm:$0xff] %v6928_v55  ;;  %v6945_v55 = vrot.slane %v3173_v14, %v3177_v37  ;;  %v2489_v49 = vadd.f32 %v6824_v30, %v6757_v60  ;;  %v2491_v14 = vadd.f32 %v6826_v20, %v6760_v8  ;;  %v7311_v37 = vld [vmem:[#allocation3_spill] sm:$0xff] }
 0x25f   : > { %v2494_v62 = vadd.f32 %v6836_v54, %v6775_v18  ;;  %v2496_v60 = vadd.f32 %v6838_v63, %v6778_v27  ;;  %v2497_v8 = vadd.f32 %v6840_v6, %v6781_v56  ;;  %v2501_v18 = vadd.f32 %v6848_v45, %v6793_v7  ;;  %v7304_v54 = vld [vmem:[#allocation28_spill] sm:$0xff]  ;;  %v7305_v6 = vld [vmem:[#allocation26_spill] sm:$0xff] }
 0x260   : > { %v2503_v27 = vadd.f32 %v6850_v25, %v6796_v10  ;;  %v2817_v20 = vadd.f32 %v6886_v29, %v2488_v12  ;;  %v2818_v10 = vadd.f32 %v6888_v2, %v2489_v49  ;;  %v2820_v24 = vadd.f32 %v6890_v1, %v2491_v14  ;;  %v7307_v45 = vld [vmem:[#allocation14_spill] sm:$0xff]  ;;  %v7312_v29 = vld [vmem:[#allocation23_spill] sm:$0xff]  ;;  %v7313_v2 = vld [vmem:[#allocation4_spill] sm:$0xff] }
 0x261   : > { %v6937_v5 = vpop.f32.mrf.mxu0  ;;  %v6939_v47 = vpop.f32.mrf.mxu1  ;;  %v7008_v63 = vadd.f32 %v7304_v54, %v2494_v62  ;;  %v7011_v41 = vadd.f32 %v7305_v6, %v2496_v60  ;;  %v7017_v25 = vadd.f32 %v7307_v45, %v2499_v44  ;;  %v7033_v1 = vadd.f32 %v7313_v2, %v7312_v29  ;;  %v7316_v49 = vld [vmem:[#allocation16_spill] sm:$0xff]  ;;  %v7330_v29 = vld [vmem:[#allocation18_spill] sm:$0xff] }
 0x262   : > { %7300 = vst [vmem:[#allocation30_spill] sm:$0xff] %v6937_v5  ;;  %7301 = vst [vmem:[#allocation31_spill] sm:$0xff] %v6939_v47  ;;  %v2487_v5 = vadd.f32 %v6818_v38, %v6748_v31  ;;  %v2486_v47 = vadd.f32 %v6820_v58, %v6751_v3  ;;  %v2492_v31 = vadd.f32 %v6830_v32, %v6766_v61 }
 0x263   : > { %v6941_v43 = vpop.f32.mrf.mxu0  ;;  %v6943_v51 = vpop.f32.mrf.mxu1  ;;  %v2493_v3 = vadd.f32 %v6832_v36, %v6769_v40  ;;  %v2498_v61 = vadd.f32 %v6844_v19, %v6787_v48  ;;  %v2508_v48 = vadd.f32 %v6862_v59, %v6806_v28  ;;  %v2814_v58 = vadd.f32 %v6880_v9, %v2485_v34  ;;  %v7303_v36 = vld [vmem:[#allocation13_spill] sm:$0xff]  ;;  %v7306_v19 = vld [vmem:[#allocation27_spill] sm:$0xff]  ;;  %v7317_v14 = vld [vmem:[#allocation6_spill] sm:$0xff] }
 0x264   : > { %7302 = vst [vmem:[#allocation32_spill] sm:$0xff] %v6941_v43  ;;  %v4098_v43 = vmov 1966171168   ;;  %v2816_v17 = vadd.f32 %v6882_v46, %v2487_v5  ;;  %v2815_v7 = vadd.f32 %v6884_v33, %v2486_v47  ;;  %v2819_v32 = vadd.f32 %v6892_v22, %v2490_v35  ;;  %v7308_v34 = vld [vmem:[#allocation21_spill] sm:$0xff]  ;;  %v7309_v59 = vld [vmem:[#allocation15_spill] sm:$0xff]  ;;  %v7310_v5 = vld [vmem:[#allocation22_spill] sm:$0xff] }
 0x265   : > { %v6959_v4 = vunpack.c.l.s4 %v4098_v43  ;;  %v2821_v26 = vadd.f32 %v6894_v23, %v2492_v31  ;;  %v2822_v28 = vadd.f32 %v6896_v39, %v2493_v3  ;;  %v2824_v53 = vadd.f32 %v7303_v36, %v2495_v52  ;;  %v7314_v22 = vld [vmem:[#allocation9_spill] sm:$0xff]  ;;  %v7318_v31 = vld [vmem:[#allocation10_spill] sm:$0xff]  ;;  %v7319_v3 = vld [vmem:[#allocation7_spill] sm:$0xff] }
 0x266   : > { %v7014_v50 = vadd.f32 %v7306_v19, %v2497_v8  ;;  %v7020_v15 = vadd.f32 %v7308_v34, %v2498_v61  ;;  %v7023_v43 = vadd.f32 %v7309_v59, %v2500_v57  ;;  %v7026_v16 = vadd.f32 %v7310_v5, %v2501_v18  ;;  %v7315_v23 = vld [vmem:[#allocation5_spill] sm:$0xff]  ;;  %v7320_v62 = vld [vmem:[#allocation20_spill] sm:$0xff]  ;;  %v7324_v19 = vld [vmem:[#allocation2_spill] sm:$0xff] }
 0x267   : > { %v2696_v38 = vpop.f32.mrf.mxu0  ;;  %v2809_v40 = vpop.f32.mrf.mxu1  ;;  %v3377_v56 = vunpack.c.0.s8 %v6959_v4  ;;  %v7029_v9 = vadd.f32 %v7311_v37, %v2503_v27  ;;  %v7037_v39 = vadd.f32 %v7315_v23, %v7314_v22  ;;  %v7046_v35 = vadd.f32 %v7317_v14, %v7316_v49  ;;  %v7321_v8 = vld [vmem:[#allocation29_spill] sm:$0xff]  ;;  %v7326_v34 = vld [vmem:[#allocation24_spill] sm:$0xff] }
 0x268   : > { %v7050_v52 = vadd.f32 %v7319_v3, %v7318_v31  ;;  %v7053_v60 = vadd.f32 %v7320_v62, %v2506_v42  ;;  %v7056_v44 = vadd.f32 %v7321_v8, %v2508_v48  ;;  %v7322_v36 = vld [vmem:[#allocation17_spill] sm:$0xff]  ;;  %v7080_v2 = vadd.f32 %v2809_v40, %v7330_v29 }
 0x269   : > { %v2698_v11 = vpop.f32.mrf.mxu0  ;;  %v2811_v30 = vpop.f32.mrf.mxu1  ;;  %v7323_v54 = vld [vmem:[#allocation30_spill] sm:$0xff]  ;;  %v7325_v42 = vld [vmem:[#allocation31_spill] sm:$0xff]  ;;  %v7328_v5 = vld [vmem:[#allocation25_spill] sm:$0xff] }
 0x26a   : > { %v7062_v6 = vadd.f32 %v7323_v54, %v7322_v36  ;;  %v7066_v45 = vadd.f32 %v7325_v42, %v7324_v19  ;;  %v7074_v37 = vadd.f32 %v6943_v51, %v7328_v5  ;;  %v7332_v51 = vld [vmem:[#allocation19_spill] sm:$0xff] }
 0x26b   : > { %v7327_v48 = vld [vmem:[#allocation32_spill] sm:$0xff]  ;;  %v7090_v49 = vadd.f32 %v2811_v30, %v7332_v51 }
 0x26c   : > { %v7070_v59 = vadd.f32 %v7327_v48, %v7326_v34 }
 0x26d   : > { %v2981_v46 = vpop.f32.mrf.mxu0  ;;  %v3094_v33 = vpop.f32.mrf.mxu1 }
 0x26e   : > { %v3141_v47 = vadd.f32 %v2981_v46, %v2814_v58  ;;  %v3143_v12 = vadd.f32 %v3094_v33, %v2816_v17 }
 0x26f   : > { %v2983_v61 = vpop.f32.mrf.mxu0  ;;  %v3096_v57 = vpop.f32.mrf.mxu1 }
 0x270   : > { %v3195_v18 = vadd.f32 %v6945_v55, %v3141_v47  ;;  %v3197_v27 = vadd.f32 %v6947_v0, %v3143_v12  ;;  %v3142_v58 = vadd.f32 %v2983_v61, %v2815_v7  ;;  %v3144_v17 = vadd.f32 %v3096_v57, %v2817_v20  ;;  %v7329_v20 = vld [vmem:[#allocation11_spill] sm:$0xff]  ;;  %v7331_v47 = vld [vmem:[#allocation12_spill] sm:$0xff] }
 0x271   : > { %v2987_v46 = vpop.f32.mrf.mxu0  ;;  %v3100_v7 = vpop.f32.mrf.mxu1  ;;  %v7077_v33 = vadd.f32 %v2696_v38, %v7329_v20  ;;  %v7087_v12 = vadd.f32 %v2698_v11, %v7331_v47 }
 0x272   : > { %3422 = vst [vmem:[%s7042_s23] sm:$0xff] %v3195_v18  ;;  %3424 = vst [vmem:[%s7042_s23 + $0x10] sm:$0xff] %v3197_v27  ;;  %v3196_v22 = vadd.f32 %v6949_v21, %v3142_v58  ;;  %v3198_v23 = vadd.f32 %v6951_v13, %v3144_v17  ;;  %v3145_v14 = vadd.f32 %v2987_v46, %v2818_v10 }
 0x273   : > { %v3147_v31 = vadd.f32 %v3100_v7, %v2820_v24  ;;  %v2989_v3 = vpop.f32.mrf.mxu0  ;;  %v3102_v38 = vpop.f32.mrf.mxu1  ;;  %v3279_v62 = vmul.f32 %v3195_v18, %v3195_v18  ;;  %v3281_v8 = vmul.f32 %v3197_v27, %v3197_v27 }
 0x274   : > { %3423 = vst [vmem:[%s7042_s23 + $0x8] sm:$0xff] %v3196_v22  ;;  %3425 = vst [vmem:[%s7042_s23 + $0x18] sm:$0xff] %v3198_v23  ;;  %v3146_v40 = vadd.f32 %v2989_v3, %v2819_v32  ;;  %v3148_v61 = vadd.f32 %v3102_v38, %v2821_v26  ;;  %v3280_v57 = vmul.f32 %v3196_v22, %v3196_v22 }
 0x275   : > { %v3282_v58 = vmul.f32 %v3198_v23, %v3198_v23  ;;  %v3199_v11 = vadd.f32 %v6945_v55, %v3145_v14  ;;  %v3201_v17 = vadd.f32 %v6947_v0, %v3147_v31  ;;  %v2993_v30 = vpop.f32.mrf.mxu0  ;;  %v3106_v10 = vpop.f32.mrf.mxu1 }
 0x276   : > { %v3200_v24 = vadd.f32 %v6949_v21, %v3146_v40  ;;  %v3202_v36 = vadd.f32 %v6951_v13, %v3148_v61  ;;  %v3149_v54 = vadd.f32 %v2993_v30, %v2822_v28  ;;  %v3151_v19 = vadd.f32 %v3106_v10, %v2824_v53 }
 0x277   : > { %v3227_v42 = vadd.f32 %v3199_v11, %v3195_v18  ;;  %v3283_v32 = vmul.f32 %v3199_v11, %v3199_v11  ;;  %3426 = vst [vmem:[%s7042_s23 + $0x20] sm:$0xff] %v3199_v11  ;;  %v3253_v26 = vadd.f32 %v3201_v17, %v3197_v27  ;;  %v3285_v34 = vmul.f32 %v3201_v17, %v3201_v17  ;;  %v2995_v48 = vpop.f32.mrf.mxu0  ;;  %v3108_v5 = vpop.f32.mrf.mxu1 }
 0x278   : > { %3428 = vst [vmem:[%s7042_s23 + $0x30] sm:$0xff] %v3201_v17  ;;  %v3240_v46 = vadd.f32 %v3200_v24, %v3196_v22  ;;  %v3284_v7 = vmul.f32 %v3200_v24, %v3200_v24  ;;  %3427 = vst [vmem:[%s7042_s23 + $0x28] sm:$0xff] %v3200_v24  ;;  %v3266_v20 = vadd.f32 %v3202_v36, %v3198_v23 }
 0x279   : > { %v3286_v29 = vmul.f32 %v3202_v36, %v3202_v36  ;;  %3429 = vst [vmem:[%s7042_s23 + $0x38] sm:$0xff] %v3202_v36  ;;  %v3311_v47 = vadd.f32 %v3283_v32, %v3279_v62  ;;  %v3337_v51 = vadd.f32 %v3285_v34, %v3281_v8  ;;  %v3203_v28 = vadd.f32 %v6945_v55, %v3149_v54  ;;  %v2999_v18 = vpop.f32.mrf.mxu0  ;;  %v3112_v27 = vpop.f32.mrf.mxu1 }
 0x27a   : > { %v3205_v53 = vadd.f32 %v6947_v0, %v3151_v19  ;;  %v3324_v14 = vadd.f32 %v3284_v7, %v3280_v57  ;;  %v3150_v3 = vadd.f32 %v2995_v48, %v7008_v63  ;;  %v3152_v22 = vadd.f32 %v3108_v5, %v7011_v41 }
 0x27b   : > { %v3350_v31 = vadd.f32 %v3286_v29, %v3282_v58  ;;  %v3228_v38 = vadd.f32 %v3227_v42, %v3203_v28  ;;  %v3287_v40 = vmul.f32 %v3203_v28, %v3203_v28  ;;  %3430 = vst [vmem:[%s7042_s23 + $0x40] sm:$0xff] %v3203_v28  ;;  %v3001_v62 = vpop.f32.mrf.mxu0  ;;  %v3114_v8 = vpop.f32.mrf.mxu1  ;;  %v3153_v57 = vadd.f32 %v2999_v18, %v7014_v50 }
 0x27c   : > { %v3254_v23 = vadd.f32 %v3253_v26, %v3205_v53  ;;  %v3289_v61 = vmul.f32 %v3205_v53, %v3205_v53  ;;  %3432 = vst [vmem:[%s7042_s23 + $0x50] sm:$0xff] %v3205_v53  ;;  %v3204_v11 = vadd.f32 %v6949_v21, %v3150_v3  ;;  %v3206_v17 = vadd.f32 %v6951_v13, %v3152_v22 }
 0x27d   : > { %v3155_v63 = vadd.f32 %v3112_v27, %v7017_v25  ;;  %v3312_v58 = vadd.f32 %v3311_v47, %v3287_v40  ;;  %v3154_v30 = vadd.f32 %v3001_v62, %v7020_v15  ;;  %v3156_v10 = vadd.f32 %v3114_v8, %v7023_v43  ;;  %v3005_v24 = vpop.f32.mrf.mxu0  ;;  %v3118_v36 = vpop.f32.mrf.mxu1 }
 0x27e   : > { %v3338_v41 = vadd.f32 %v3337_v51, %v3289_v61  ;;  %v3241_v54 = vadd.f32 %v3240_v46, %v3204_v11  ;;  %v3288_v19 = vmul.f32 %v3204_v11, %v3204_v11  ;;  %3431 = vst [vmem:[%s7042_s23 + $0x48] sm:$0xff] %v3204_v11  ;;  %v3267_v42 = vadd.f32 %v3266_v20, %v3206_v17 }
 0x27f   : > { %v3290_v32 = vmul.f32 %v3206_v17, %v3206_v17  ;;  %3433 = vst [vmem:[%s7042_s23 + $0x58] sm:$0xff] %v3206_v17  ;;  %v3207_v50 = vadd.f32 %v6945_v55, %v3153_v57  ;;  %v3209_v25 = vadd.f32 %v6947_v0, %v3155_v63  ;;  %v3208_v15 = vadd.f32 %v6949_v21, %v3154_v30  ;;  %v3007_v26 = vpop.f32.mrf.mxu0  ;;  %v3120_v34 = vpop.f32.mrf.mxu1 }
 0x280   : > { %v3210_v43 = vadd.f32 %v6951_v13, %v3156_v10  ;;  %v3325_v48 = vadd.f32 %v3324_v14, %v3288_v19  ;;  %v3157_v46 = vadd.f32 %v3005_v24, %v7026_v16  ;;  %v3159_v7 = vadd.f32 %v3118_v36, %v7029_v9 }
 0x281   : > { %v3351_v5 = vadd.f32 %v3350_v31, %v3290_v32  ;;  %v3229_v20 = vadd.f32 %v3228_v38, %v3207_v50  ;;  %v3291_v29 = vmul.f32 %v3207_v50, %v3207_v50  ;;  %3434 = vst [vmem:[%s7042_s23 + $0x60] sm:$0xff] %v3207_v50  ;;  %v3255_v47 = vadd.f32 %v3254_v23, %v3209_v25  ;;  %v3011_v28 = vpop.f32.mrf.mxu0  ;;  %v3124_v53 = vpop.f32.mrf.mxu1 }
 0x282   : > { %v3293_v51 = vmul.f32 %v3209_v25, %v3209_v25  ;;  %3436 = vst [vmem:[%s7042_s23 + $0x70] sm:$0xff] %v3209_v25  ;;  %3435 = vst [vmem:[%s7042_s23 + $0x68] sm:$0xff] %v3208_v15  ;;  %v3242_v18 = vadd.f32 %v3241_v54, %v3208_v15  ;;  %v3292_v27 = vmul.f32 %v3208_v15, %v3208_v15 }
 0x283   : > { %3437 = vst [vmem:[%s7042_s23 + $0x78] sm:$0xff] %v3210_v43  ;;  %v3268_v3 = vadd.f32 %v3267_v42, %v3210_v43  ;;  %v3294_v14 = vmul.f32 %v3210_v43, %v3210_v43  ;;  %v3313_v31 = vadd.f32 %v3312_v58, %v3291_v29  ;;  %v3211_v9 = vadd.f32 %v6945_v55, %v3157_v46  ;;  %v3013_v38 = vpop.f32.mrf.mxu0  ;;  %v3126_v40 = vpop.f32.mrf.mxu1 }
 0x284   : > { %v3339_v16 = vadd.f32 %v3338_v41, %v3293_v51  ;;  %v3213_v22 = vadd.f32 %v6947_v0, %v3159_v7  ;;  %v3326_v23 = vadd.f32 %v3325_v48, %v3292_v27  ;;  %v3158_v62 = vadd.f32 %v3007_v26, %v7033_v1 }
 0x285   : > { %v3352_v61 = vadd.f32 %v3351_v5, %v3294_v14  ;;  %v3160_v8 = vadd.f32 %v3120_v34, %v7037_v39  ;;  %v3230_v11 = vadd.f32 %v3229_v20, %v3211_v9  ;;  %v3295_v17 = vmul.f32 %v3211_v9, %v3211_v9  ;;  %3438 = vst [vmem:[%s7042_s23 + $0x80] sm:$0xff] %v3211_v9  ;;  %v3017_v58 = vpop.f32.mrf.mxu0  ;;  %v3130_v41 = vpop.f32.mrf.mxu1 }
 0x286   : > { %v3256_v57 = vadd.f32 %v3255_v47, %v3213_v22  ;;  %v3297_v63 = vmul.f32 %v3213_v22, %v3213_v22  ;;  %3440 = vst [vmem:[%s7042_s23 + $0x90] sm:$0xff] %v3213_v22  ;;  %v3212_v30 = vadd.f32 %v6949_v21, %v3158_v62  ;;  %v3161_v24 = vadd.f32 %v3011_v28, %v7046_v35 }
 0x287   : > { %v3214_v10 = vadd.f32 %v6951_v13, %v3160_v8  ;;  %v3163_v1 = vadd.f32 %v3124_v53, %v7050_v52  ;;  %v3314_v36 = vadd.f32 %v3313_v31, %v3295_v17  ;;  %v3162_v54 = vadd.f32 %v3013_v38, %v7053_v60  ;;  %v3019_v42 = vpop.f32.mrf.mxu0  ;;  %v3132_v32 = vpop.f32.mrf.mxu1 }
 0x288   : > { %v3340_v39 = vadd.f32 %v3339_v16, %v3297_v63  ;;  %v3164_v19 = vadd.f32 %v3126_v40, %v7056_v44  ;;  %v3243_v50 = vadd.f32 %v3242_v18, %v3212_v30  ;;  %v3296_v25 = vmul.f32 %v3212_v30, %v3212_v30  ;;  %3439 = vst [vmem:[%s7042_s23 + $0x88] sm:$0xff] %v3212_v30 }
 0x289   : > { %v3269_v15 = vadd.f32 %v3268_v3, %v3214_v10  ;;  %v3298_v43 = vmul.f32 %v3214_v10, %v3214_v10  ;;  %3441 = vst [vmem:[%s7042_s23 + $0x98] sm:$0xff] %v3214_v10  ;;  %v3215_v35 = vadd.f32 %v6945_v55, %v3161_v24  ;;  %v3217_v52 = vadd.f32 %v6947_v0, %v3163_v1  ;;  %v3023_v46 = vpop.f32.mrf.mxu0  ;;  %v3136_v7 = vpop.f32.mrf.mxu1 }
 0x28a   : > { %v3216_v60 = vadd.f32 %v6949_v21, %v3162_v54  ;;  %v3218_v44 = vadd.f32 %v6951_v13, %v3164_v19  ;;  %v3327_v26 = vadd.f32 %v3326_v23, %v3296_v25  ;;  %v3165_v48 = vadd.f32 %v3017_v58, %v7062_v6  ;;  %v7333_v54 = vld [vmem:[#allocation8_spill] sm:$0xff] }
 0x28b   : > { %v3353_v34 = vadd.f32 %v3352_v61, %v3298_v43  ;;  %v3167_v5 = vadd.f32 %v3130_v41, %v7066_v45  ;;  %v3231_v20 = vadd.f32 %v3230_v11, %v3215_v35  ;;  %v3299_v29 = vmul.f32 %v3215_v35, %v3215_v35  ;;  %3442 = vst [vmem:[%s7042_s23 + $0xa0] sm:$0xff] %v3215_v35  ;;  %v3025_v38 = vpop.f32.mrf.mxu0  ;;  %v3138_v40 = vpop.f32.mrf.mxu1 }
 0x28c   : > { %v3257_v47 = vadd.f32 %v3256_v57, %v3217_v52  ;;  %v3301_v51 = vmul.f32 %v3217_v52, %v3217_v52  ;;  %3444 = vst [vmem:[%s7042_s23 + $0xb0] sm:$0xff] %v3217_v52  ;;  %3443 = vst [vmem:[%s7042_s23 + $0xa8] sm:$0xff] %v3216_v60  ;;  %v3244_v28 = vadd.f32 %v3243_v50, %v3216_v60 }
 0x28d   : > { %3445 = vst [vmem:[%s7042_s23 + $0xb8] sm:$0xff] %v3218_v44  ;;  %v3300_v53 = vmul.f32 %v3216_v60, %v3216_v60  ;;  %v3270_v18 = vadd.f32 %v3269_v15, %v3218_v44  ;;  %v3302_v27 = vmul.f32 %v3218_v44, %v3218_v44  ;;  %v3315_v3 = vadd.f32 %v3314_v36, %v3299_v29 }
 0x28e   : > { %v3341_v6 = vadd.f32 %v3340_v39, %v3301_v51  ;;  %v3219_v45 = vadd.f32 %v6945_v55, %v3165_v48  ;;  %v3221_v14 = vadd.f32 %v6947_v0, %v3167_v5  ;;  %v3166_v9 = vadd.f32 %v3019_v42, %v7070_v59 }
 0x28f   : > { %v3328_v31 = vadd.f32 %v3327_v26, %v3300_v53  ;;  %v3354_v16 = vadd.f32 %v3353_v34, %v3302_v27  ;;  %v3168_v22 = vadd.f32 %v3132_v32, %v7074_v37  ;;  %v3169_v57 = vadd.f32 %v3023_v46, %v7077_v33 }
 0x290   : > { %v3232_v23 = vadd.f32 %v3231_v20, %v3219_v45  ;;  %v3303_v61 = vmul.f32 %v3219_v45, %v3219_v45  ;;  %3446 = vst [vmem:[%s7042_s23 + $0xc0] sm:$0xff] %v3219_v45  ;;  %v3258_v62 = vadd.f32 %v3257_v47, %v3221_v14  ;;  %v3305_v8 = vmul.f32 %v3221_v14, %v3221_v14 }
 0x291   : > { %3448 = vst [vmem:[%s7042_s23 + $0xd0] sm:$0xff] %v3221_v14  ;;  %v3220_v11 = vadd.f32 %v6949_v21, %v3166_v9  ;;  %v3222_v17 = vadd.f32 %v6951_v13, %v3168_v22  ;;  %v3171_v59 = vadd.f32 %v3136_v7, %v7080_v2  ;;  %v3170_v58 = vadd.f32 %v3025_v38, %v7087_v12 }
 0x292   : > { %v3316_v63 = vadd.f32 %v3315_v3, %v3303_v61  ;;  %v3342_v37 = vadd.f32 %v3341_v6, %v3305_v8  ;;  %v3172_v41 = vadd.f32 %v3138_v40, %v7090_v49  ;;  %v3223_v33 = vadd.f32 %v6945_v55, %v3169_v57 }
 0x293   : > { %v3245_v30 = vadd.f32 %v3244_v28, %v3220_v11  ;;  %v3304_v10 = vmul.f32 %v3220_v11, %v3220_v11  ;;  %3447 = vst [vmem:[%s7042_s23 + $0xc8] sm:$0xff] %v3220_v11  ;;  %v3271_v24 = vadd.f32 %v3270_v18, %v3222_v17  ;;  %v3306_v1 = vmul.f32 %v3222_v17, %v3222_v17 }
 0x294   : > { %3449 = vst [vmem:[%s7042_s23 + $0xd8] sm:$0xff] %v3222_v17  ;;  %v3225_v2 = vadd.f32 %v6947_v0, %v3171_v59  ;;  %v3224_v36 = vadd.f32 %v6949_v21, %v3170_v58  ;;  %v3226_v12 = vadd.f32 %v6951_v13, %v3172_v41  ;;  %v7171_v19 = vsub.s32 %v3377_v56, %v7333_v54 }
 0x295   : > { %v3329_v39 = vadd.f32 %v3328_v31, %v3304_v10  ;;  %v3355_v49 = vadd.f32 %v3354_v16, %v3306_v1  ;;  %v3233_v42 = vadd.f32 %v3232_v23, %v3223_v33  ;;  %v3307_v32 = vmul.f32 %v3223_v33, %v3223_v33  ;;  %3450 = vst [vmem:[%s7042_s23 + $0xe0] sm:$0xff] %v3223_v33 }
 0x296   : > { %v3259_v50 = vadd.f32 %v3258_v62, %v3225_v2  ;;  %v3309_v25 = vmul.f32 %v3225_v2, %v3225_v2  ;;  %3452 = vst [vmem:[%s7042_s23 + $0xf0] sm:$0xff] %v3225_v2  ;;  %3451 = vst [vmem:[%s7042_s23 + $0xe8] sm:$0xff] %v3224_v36  ;;  %v3246_v0 = vadd.f32 %v3245_v30, %v3224_v36 }
 0x297   : > { %3453 = vst [vmem:[%s7042_s23 + $0xf8] sm:$0xff] %v3226_v12  ;;  %v3308_v55 = vmul.f32 %v3224_v36, %v3224_v36  ;;  %v3272_v21 = vadd.f32 %v3271_v24, %v3226_v12  ;;  %v3310_v15 = vmul.f32 %v3226_v12, %v3226_v12  ;;  %v3234_v13 = vrot.slane %v3233_v42, 4 }
 0x298   : > { %v3317_v43 = vadd.f32 %v3316_v63, %v3307_v32  ;;  %v3260_v35 = vrot.slane %v3259_v50, 4  ;;  %v3343_v52 = vadd.f32 %v3342_v37, %v3309_v25  ;;  %v3247_v60 = vrot.slane %v3246_v0, 4 }
 0x299   : > { %v3330_v4 = vadd.f32 %v3329_v39, %v3308_v55  ;;  %v3273_v56 = vrot.slane %v3272_v21, 4  ;;  %v3356_v44 = vadd.f32 %v3355_v49, %v3310_v15  ;;  %v3235_v26 = vadd.f32 %v3234_v13, %v3233_v42 }
 0x29a   : > { %v3318_v34 = vrot.slane %v3317_v43, 4  ;;  %v3261_v48 = vadd.f32 %v3260_v35, %v3259_v50  ;;  %v3344_v5 = vrot.slane %v3343_v52, 4  ;;  %v3248_v46 = vadd.f32 %v3247_v60, %v3246_v0 }
 0x29b   : > { %v3331_v7 = vrot.slane %v3330_v4, 4  ;;  %v3274_v20 = vadd.f32 %v3273_v56, %v3272_v21  ;;  %v3357_v29 = vrot.slane %v3356_v44, 4  ;;  %v3236_v47 = vrot.slane %v3235_v26, 2 }
 0x29c   : > { %v3319_v51 = vadd.f32 %v3318_v34, %v3317_v43  ;;  %v3262_v28 = vrot.slane %v3261_v48, 2  ;;  %v3345_v53 = vadd.f32 %v3344_v5, %v3343_v52  ;;  %v3249_v18 = vrot.slane %v3248_v46, 2 }
 0x29d   : > { %v3332_v27 = vadd.f32 %v3331_v7, %v3330_v4  ;;  %v3275_v3 = vrot.slane %v3274_v20, 2  ;;  %v3358_v6 = vadd.f32 %v3357_v29, %v3356_v44  ;;  %v3237_v45 = vadd.f32 %v3236_v47, %v3235_v26 }
 0x29e   : > { %v3320_v14 = vrot.slane %v3319_v51, 2  ;;  %v3263_v31 = vadd.f32 %v3262_v28, %v3261_v48  ;;  %v3346_v16 = vrot.slane %v3345_v53, 2  ;;  %v3250_v9 = vadd.f32 %v3249_v18, %v3248_v46 }
 0x29f   : > { %v3333_v22 = vrot.slane %v3332_v27, 2  ;;  %v3276_v38 = vadd.f32 %v3275_v3, %v3274_v20  ;;  %v3359_v40 = vrot.slane %v3358_v6, 2  ;;  %v3238_v23 = vrot.slane %v3237_v45, 1 }
 0x2a0   : > { %v3321_v61 = vadd.f32 %v3320_v14, %v3319_v51  ;;  %v3264_v62 = vrot.slane %v3263_v31, 1  ;;  %v3347_v8 = vadd.f32 %v3346_v16, %v3345_v53  ;;  %v3251_v11 = vrot.slane %v3250_v9, 1 }
 0x2a1   : > { %v3334_v17 = vadd.f32 %v3333_v22, %v3332_v27  ;;  %v3277_v57 = vrot.slane %v3276_v38, 1  ;;  %v3360_v59 = vadd.f32 %v3359_v40, %v3358_v6  ;;  %v3239_v63 = vadd.f32 %v3238_v23, %v3237_v45 }
 0x2a2   : > { %v3322_v37 = vrot.slane %v3321_v61, 1  ;;  %v3265_v58 = vadd.f32 %v3264_v62, %v3263_v31  ;;  %v3348_v41 = vrot.slane %v3347_v8, 1  ;;  %v3252_v30 = vadd.f32 %v3251_v11, %v3250_v9 }
 0x2a3   : > { %v3335_v10 = vrot.slane %v3334_v17, 1  ;;  %v3278_v24 = vadd.f32 %v3277_v57, %v3276_v38  ;;  %v3361_v1 = vrot.slane %v3360_v59, 1 }
 0x2a4   : > { %v3323_v33 = vadd.f32 %v3322_v37, %v3321_v61  ;;  %v3349_v2 = vadd.f32 %v3348_v41, %v3347_v8  ;;  %v3371_v12 = vcombine.low %v3239_v63, %v3252_v30 }
 0x2a5   : > { %v3336_v36 = vadd.f32 %v3335_v10, %v3334_v17  ;;  %v3362_v39 = vadd.f32 %v3361_v1, %v3360_v59  ;;  %v3372_v49 = vcombine.low %v3265_v58, %v3278_v24 }
 0x2a6   : > { %v3381_v42 = vrot.slane %v3371_v12, %v7171_v19 }
 0x2a7   : > { %v3373_v54 = vcombine.low %v3323_v33, %v3336_v36  ;;  %v3374_v32 = vcombine.low %v3349_v2, %v3362_v39  ;;  %v3388_v50 = vrot.slane %v3372_v49, %v7171_v19 }
 0x2a9   : > { %v3395_v25 = vrot.slane %v3373_v54, %v7171_v19  ;;  %v3402_v0 = vrot.slane %v3374_v32, %v7171_v19  ;;  %v3403_v55 = vcombine.low %v3381_v42, %v3388_v50 }
 0x2ab   : > { %v3404_v21 = vcombine.low %v3395_v25, %v3402_v0  ;;  %v3411_v15 = vrot.slane %v3403_v55, %v7171_v19 }
 0x2ad   : > { %v3418_v13 = vrot.slane %v3404_v21, %v7171_v19 }
 0x2af   : > { %v3419_v43 = vcombine.low %v3411_v15, %v3418_v13 }
 0x2b1   : > { %3421 = vst [vmem:[%s208_s27] sm:$0xff] %v3419_v43 }
 0x2b2 PF: > { %s15_s15 = sadd.s32 1, %s4095_s15  }
 0x2b3   : > { %p12_p4 = scmp.ge.s32.totalorder %s15_s15, 4  }
 0x2b5   :  { %14 = sbr.rel (!%p12_p4) target bundleno = 1 (0x1), region = 82 }

</bundles_post_ra>
